<compile_context>
chip_gen: v6e
topology: v6e:2x2x1
jax: 0.10.0
libtpu: 0.0.40
codegen_flags: <defaults>
</compile_context>

<pallas_src>
import numpy as np
import jax
import jax.numpy as jnp
from jax.experimental import pallas as pl
from jax.experimental.pallas import tpu as pltpu


# ---------------------------------------------------------------------------
# In-kernel helpers
# ---------------------------------------------------------------------------
def _pad1(x):
    """Zero-pad a (H, W, C) activation by 1 pixel on each spatial side."""
    H, W, C = x.shape
    zr = jnp.zeros((1, W, C), x.dtype)
    x = jnp.concatenate([zr, x, zr], axis=0)            # (H+2, W,   C)
    zc = jnp.zeros((H + 2, 1, C), x.dtype)
    return jnp.concatenate([zc, x, zc], axis=1)         # (H+2, W+2, C)


def _conv3x3_relu(x, w_ref, b_ref):
    """3x3 same-conv + bias + ReLU as a single im2col matmul.

    x: (H, W, Cin) f32,  w_ref: (9*Cin, Cout) bf16,  b_ref: (1, Cout) f32.
    Returns (H*W, Cout) f32 with rows ordered h*W + w.
    """
    H, W, Cin = x.shape
    xp = _pad1(x)
    cols = jnp.concatenate(
        [xp[dy:dy + H, dx:dx + W, :].reshape(H * W, Cin)
         for dy in range(3) for dx in range(3)],
        axis=1)                                          # (H*W, 9*Cin)
    acc = jnp.dot(cols.astype(jnp.bfloat16), w_ref[...],
                  preferred_element_type=jnp.float32)    # (H*W, Cout)
    return jnp.maximum(acc + b_ref[...], 0.0)


def _maxpool2(y, H, W, C):
    """2x2 stride-2 max pool on (H*W, C) rows ordered h*W + w -> (H//2, W//2, C)."""
    y = jnp.max(y.reshape(H * W // 2, 2, C), axis=1)     # pool along W
    y = jnp.max(y.reshape(H // 2, 2, W // 2, C), axis=1)  # pool along H
    return y


# ---------------------------------------------------------------------------
# Fused kernel: one image per grid step, whole network in VMEM
# ---------------------------------------------------------------------------
def fused_forward_kernel(x_ref, w1_ref, b1_ref, w2_ref, b2_ref, w3_ref, b3_ref,
                         pw1_ref, pb1_ref, pw2_ref, pb2_ref, o_ref):
    x = x_ref[0]                                                  # (16, 16, 1)

    h = _maxpool2(_conv3x3_relu(x, w1_ref, b1_ref), 16, 16, 32)   # (8, 8, 32)
    h = _maxpool2(_conv3x3_relu(h, w2_ref, b2_ref), 8, 8, 64)     # (4, 4, 64)
    h = _conv3x3_relu(h, w3_ref, b3_ref)                          # (16, 128)
    h = jnp.mean(h, axis=0, keepdims=True)                        # (1, 128) GAP

    z = jnp.maximum(
        jnp.dot(h.astype(jnp.bfloat16), pw1_ref[...],
                preferred_element_type=jnp.float32) + pb1_ref[...], 0.0)
    z = jnp.dot(z.astype(jnp.bfloat16), pw2_ref[...],
                preferred_element_type=jnp.float32) + pb2_ref[...]  # (1, 64)

    inv = jax.lax.rsqrt(
        jnp.maximum(jnp.sum(z * z, axis=1, keepdims=True), 1e-24))  # torch eps=1e-12
    o_ref[0] = (z * inv).astype(o_ref.dtype)


# ---------------------------------------------------------------------------
# Wrapper
# ---------------------------------------------------------------------------
def contrastive_forward_pallas(x_nchw, params):
    x = jnp.transpose(x_nchw, (0, 2, 3, 1)).astype(jnp.float32)   # NCHW -> NHWC
    N, H, W, Cin = x.shape

    def flat_bf16(w):  # (3, 3, Cin, Cout) -> (9*Cin, Cout) bf16 (matches im2col order)
        return w.reshape(9 * w.shape[2], w.shape[3]).astype(jnp.bfloat16)

    w1, w2, w3 = flat_bf16(params["w1"]), flat_bf16(params["w2"]), flat_bf16(params["w3"])
    pw1 = params["pw1"].astype(jnp.bfloat16)
    pw2 = params["pw2"].astype(jnp.bfloat16)
    b1, b2, b3 = params["b1"], params["b2"], params["b3"]
    pb1, pb2 = params["pb1"], params["pb2"]

    def const_spec(a):  # full-array block, constant index -> fetched once, VMEM-resident
        nd = a.ndim
        return pl.BlockSpec(a.shape, lambda n, nd=nd: (0,) * nd)

    out = pl.pallas_call(
        fused_forward_kernel,
        out_shape=jax.ShapeDtypeStruct((N, 1, 64), jnp.float32),
        grid=(N,),
        in_specs=[
            pl.BlockSpec((1, H, W, Cin), lambda n: (n, 0, 0, 0)),
            const_spec(w1), const_spec(b1),
            const_spec(w2), const_spec(b2),
            const_spec(w3), const_spec(b3),
            const_spec(pw1), const_spec(pb1),
            const_spec(pw2), const_spec(pb2),
        ],
        out_specs=pl.BlockSpec((1, 1, 64), lambda n: (n, 0, 0)),
        compiler_params=pltpu.CompilerParams(
            dimension_semantics=("parallel",)),   # batch split across v7x TensorCores
    )(x, w1, b1, w2, b2, w3, b3, pw1, pb1, pw2, pb2)

    return out.reshape(N, 64)


contrastive_forward = jax.jit(contrastive_forward_pallas)


# ---------------------------------------------------------------------------
# Pure-JAX f32 reference (same math, silent correctness check)
# ---------------------------------------------------------------------------
def ref_forward(x_nchw, params):
    x = jnp.transpose(x_nchw, (0, 2, 3, 1)).astype(jnp.float32)

    def conv3x3(x, w, b):
        N, H, W, Cin = x.shape
        Cout = w.shape[-1]
        xp = jnp.pad(x, ((0, 0), (1, 1), (1, 1), (0, 0)))
        acc = jnp.zeros((N, H, W, Cout), jnp.float32)
        for dy in range(3):
            for dx in range(3):
                acc = acc + jnp.einsum("nhwc,co->nhwo",
                                       xp[:, dy:dy + H, dx:dx + W, :], w[dy, dx],
                                       precision=jax.lax.Precision.HIGHEST)
        return jax.nn.relu(acc + b[0])

    def maxpool2(x):
        N, H, W, C = x.shape
        return jnp.max(x.reshape(N, H // 2, 2, W // 2, 2, C), axis=(2, 4))

    h = maxpool2(conv3x3(x, params["w1"], params["b1"]))
    h = maxpool2(conv3x3(h, params["w2"], params["b2"]))
    h = conv3x3(h, params["w3"], params["b3"]).mean(axis=(1, 2))
    z = jax.nn.relu(h @ params["pw1"] + params["pb1"][0])
    z = z @ params["pw2"] + params["pb2"][0]
    n = jnp.sqrt(jnp.sum(z * z, axis=1, keepdims=True))
    return z / jnp.maximum(n, 1e-12)


# ---------------------------------------------------------------------------
if __name__ == "__main__":
    keys = jax.random.split(jax.random.PRNGKey(0), 11)
    params = {
        "w1": 0.10 * jax.random.normal(keys[0], (3, 3, 1, 32), jnp.float32),
        "b1": 0.01 * jax.random.normal(keys[1], (1, 32), jnp.float32),
        "w2": 0.10 * jax.random.normal(keys[2], (3, 3, 32, 64), jnp.float32),
        "b2": 0.01 * jax.random.normal(keys[3], (1, 64), jnp.float32),
        "w3": 0.10 * jax.random.normal(keys[4], (3, 3, 64, 128), jnp.float32),
        "b3": 0.01 * jax.random.normal(keys[5], (1, 128), jnp.float32),
        "pw1": 0.10 * jax.random.normal(keys[6], (128, 128), jnp.float32),
        "pb1": 0.01 * jax.random.normal(keys[7], (1, 128), jnp.float32),
        "pw2": 0.10 * jax.random.normal(keys[8], (128, 64), jnp.float32),
        "pb2": 0.01 * jax.random.normal(keys[9], (1, 64), jnp.float32),
    }

    # batch=2, 1 input channel, 16x16 spatial (NCHW, as the PyTorch module expects)
    x = jax.random.normal(keys[10], (2, 1, 16, 16), jnp.float32)

    out = jax.block_until_ready(contrastive_forward(x, params))
    ref = jax.block_until_ready(ref_forward(x, params))

    assert out.shape == (2, 64)
    # bf16 matmul operands with f32 accumulation -> slightly relaxed tolerance
    np.testing.assert_allclose(np.asarray(out), np.asarray(ref),
                               atol=1e-2, rtol=1e-2)
    print("KERNEL_OK")
</pallas_src>

<mosaic_0001>
module attributes {stable_mosaic.version = 11 : i64} {
  func.func @fused_forward_kernel(%arg0: i32, %arg1: memref<1x16x16x1xf32, #tpu.memory_space<vmem>>, %arg2: memref<9x32xbf16, #tpu.memory_space<vmem>>, %arg3: memref<1x32xf32, #tpu.memory_space<vmem>>, %arg4: memref<288x64xbf16, #tpu.memory_space<vmem>>, %arg5: memref<1x64xf32, #tpu.memory_space<vmem>>, %arg6: memref<576x128xbf16, #tpu.memory_space<vmem>>, %arg7: memref<1x128xf32, #tpu.memory_space<vmem>>, %arg8: memref<128x128xbf16, #tpu.memory_space<vmem>>, %arg9: memref<1x128xf32, #tpu.memory_space<vmem>>, %arg10: memref<128x64xbf16, #tpu.memory_space<vmem>>, %arg11: memref<1x64xf32, #tpu.memory_space<vmem>>, %arg12: memref<1x1x64xf32, #tpu.memory_space<vmem>>) attributes {dimension_semantics = [#tpu.dimension_semantics<parallel>], iteration_bounds = array<i64: 2>, scalar_prefetch = 0 : i64, scratch_operands = 0 : i64, tpu.core_type = #tpu.core_type<tc>, window_params = [{transform_indices = @transform_0, window_bounds = array<i64: 1, 16, 16, 1>}, {pipeline_mode = #tpu.pipeline_mode<synchronous>, transform_indices = @transform_1, window_bounds = array<i64: 9, 32>}, {pipeline_mode = #tpu.pipeline_mode<synchronous>, transform_indices = @transform_2, window_bounds = array<i64: 1, 32>}, {pipeline_mode = #tpu.pipeline_mode<synchronous>, transform_indices = @transform_3, window_bounds = array<i64: 288, 64>}, {pipeline_mode = #tpu.pipeline_mode<synchronous>, transform_indices = @transform_4, window_bounds = array<i64: 1, 64>}, {pipeline_mode = #tpu.pipeline_mode<synchronous>, transform_indices = @transform_5, window_bounds = array<i64: 576, 128>}, {pipeline_mode = #tpu.pipeline_mode<synchronous>, transform_indices = @transform_6, window_bounds = array<i64: 1, 128>}, {pipeline_mode = #tpu.pipeline_mode<synchronous>, transform_indices = @transform_7, window_bounds = array<i64: 128, 128>}, {pipeline_mode = #tpu.pipeline_mode<synchronous>, transform_indices = @transform_8, window_bounds = array<i64: 1, 128>}, {pipeline_mode = #tpu.pipeline_mode<synchronous>, transform_indices = @transform_9, window_bounds = array<i64: 128, 64>}, {pipeline_mode = #tpu.pipeline_mode<synchronous>, transform_indices = @transform_10, window_bounds = array<i64: 1, 64>}, {transform_indices = @transform_11, window_bounds = array<i64: 1, 1, 64>}]} {
    %c0 = arith.constant 0 : index
    %c0_0 = arith.constant 0 : index
    %c0_1 = arith.constant 0 : index
    %c0_2 = arith.constant 0 : index
    %0 = vector.load %arg1[%c0, %c0_0, %c0_1, %c0_2] : memref<1x16x16x1xf32, #tpu.memory_space<vmem>>, vector<1x16x16x1xf32>
    %1 = vector.shape_cast %0 : vector<1x16x16x1xf32> to vector<16x16x1xf32>
    %cst = arith.constant 0.000000e+00 : f32
    %2 = vector.broadcast %cst : f32 to vector<1x16x1xf32>
    %3 = tpu.concatenate %2, %1, %2 in 0 : vector<1x16x1xf32>, vector<16x16x1xf32>, vector<1x16x1xf32> -> vector<18x16x1xf32>
    %cst_3 = arith.constant 0.000000e+00 : f32
    %4 = vector.broadcast %cst_3 : f32 to vector<18x1x1xf32>
    %5 = tpu.concatenate %4, %3, %4 in 1 : vector<18x1x1xf32>, vector<18x16x1xf32>, vector<18x1x1xf32> -> vector<18x18x1xf32>
    %6 = vector.extract_strided_slice %5 {offsets = [0, 0, 0], sizes = [16, 16, 1], strides = [1, 1, 1]} : vector<18x18x1xf32> to vector<16x16x1xf32>
    %7 = vector.shape_cast %6 : vector<16x16x1xf32> to vector<256x1xf32>
    %8 = vector.extract_strided_slice %5 {offsets = [0, 1, 0], sizes = [16, 16, 1], strides = [1, 1, 1]} : vector<18x18x1xf32> to vector<16x16x1xf32>
    %9 = vector.shape_cast %8 : vector<16x16x1xf32> to vector<256x1xf32>
    %10 = vector.extract_strided_slice %5 {offsets = [0, 2, 0], sizes = [16, 16, 1], strides = [1, 1, 1]} : vector<18x18x1xf32> to vector<16x16x1xf32>
    %11 = vector.shape_cast %10 : vector<16x16x1xf32> to vector<256x1xf32>
    %12 = vector.extract_strided_slice %5 {offsets = [1, 0, 0], sizes = [16, 16, 1], strides = [1, 1, 1]} : vector<18x18x1xf32> to vector<16x16x1xf32>
    %13 = vector.shape_cast %12 : vector<16x16x1xf32> to vector<256x1xf32>
    %14 = vector.extract_strided_slice %5 {offsets = [1, 1, 0], sizes = [16, 16, 1], strides = [1, 1, 1]} : vector<18x18x1xf32> to vector<16x16x1xf32>
    %15 = vector.shape_cast %14 : vector<16x16x1xf32> to vector<256x1xf32>
    %16 = vector.extract_strided_slice %5 {offsets = [1, 2, 0], sizes = [16, 16, 1], strides = [1, 1, 1]} : vector<18x18x1xf32> to vector<16x16x1xf32>
    %17 = vector.shape_cast %16 : vector<16x16x1xf32> to vector<256x1xf32>
    %18 = vector.extract_strided_slice %5 {offsets = [2, 0, 0], sizes = [16, 16, 1], strides = [1, 1, 1]} : vector<18x18x1xf32> to vector<16x16x1xf32>
    %19 = vector.shape_cast %18 : vector<16x16x1xf32> to vector<256x1xf32>
    %20 = vector.extract_strided_slice %5 {offsets = [2, 1, 0], sizes = [16, 16, 1], strides = [1, 1, 1]} : vector<18x18x1xf32> to vector<16x16x1xf32>
    %21 = vector.shape_cast %20 : vector<16x16x1xf32> to vector<256x1xf32>
    %22 = vector.extract_strided_slice %5 {offsets = [2, 2, 0], sizes = [16, 16, 1], strides = [1, 1, 1]} : vector<18x18x1xf32> to vector<16x16x1xf32>
    %23 = vector.shape_cast %22 : vector<16x16x1xf32> to vector<256x1xf32>
    %24 = tpu.concatenate %7, %9, %11, %13, %15, %17, %19, %21, %23 in 1 : vector<256x1xf32>, vector<256x1xf32>, vector<256x1xf32>, vector<256x1xf32>, vector<256x1xf32>, vector<256x1xf32>, vector<256x1xf32>, vector<256x1xf32>, vector<256x1xf32> -> vector<256x9xf32>
    %25 = arith.truncf %24 : vector<256x9xf32> to vector<256x9xbf16>
    %c0_4 = arith.constant 0 : index
    %c0_5 = arith.constant 0 : index
    %26 = vector.load %arg2[%c0_4, %c0_5] : memref<9x32xbf16, #tpu.memory_space<vmem>>, vector<9x32xbf16>
    %cst_6 = arith.constant dense<0.000000e+00> : vector<256x32xf32>
    %27 = tpu.matmul %25, %26, %cst_6 {dimension_numbers = #tpu.dot_dimension_numbers<[1], [0], [0], [1], [0, 0, 1, 1], [], []>} : vector<256x9xbf16>, vector<9x32xbf16>, vector<256x32xf32> -> vector<256x32xf32>
    %c0_7 = arith.constant 0 : index
    %c0_8 = arith.constant 0 : index
    %28 = vector.load %arg3[%c0_7, %c0_8] : memref<1x32xf32, #tpu.memory_space<vmem>>, vector<1x32xf32>
    %29 = vector.broadcast %28 : vector<1x32xf32> to vector<256x32xf32>
    %30 = arith.addf %27, %29 : vector<256x32xf32>
    %cst_9 = arith.constant 0.000000e+00 : f32
    %31 = vector.broadcast %cst_9 : f32 to vector<256x32xf32>
    %32 = arith.maximumf %30, %31 : vector<256x32xf32>
    %33 = vector.shape_cast %32 : vector<256x32xf32> to vector<128x2x32xf32>
    %cst_10 = arith.constant dense<0xFF800000> : vector<128x32xf32>
    %34 = vector.multi_reduction <maximumf>, %33, %cst_10 [1] : vector<128x2x32xf32> to vector<128x32xf32>
    %35 = vector.shape_cast %34 : vector<128x32xf32> to vector<8x2x8x32xf32>
    %cst_11 = arith.constant dense<0xFF800000> : vector<8x8x32xf32>
    %36 = vector.multi_reduction <maximumf>, %35, %cst_11 [1] : vector<8x2x8x32xf32> to vector<8x8x32xf32>
    %cst_12 = arith.constant 0.000000e+00 : f32
    %37 = vector.broadcast %cst_12 : f32 to vector<1x8x32xf32>
    %38 = tpu.concatenate %37, %36, %37 in 0 : vector<1x8x32xf32>, vector<8x8x32xf32>, vector<1x8x32xf32> -> vector<10x8x32xf32>
    %cst_13 = arith.constant 0.000000e+00 : f32
    %39 = vector.broadcast %cst_13 : f32 to vector<10x1x32xf32>
    %40 = tpu.concatenate %39, %38, %39 in 1 : vector<10x1x32xf32>, vector<10x8x32xf32>, vector<10x1x32xf32> -> vector<10x10x32xf32>
    %41 = vector.extract_strided_slice %40 {offsets = [0, 0, 0], sizes = [8, 8, 32], strides = [1, 1, 1]} : vector<10x10x32xf32> to vector<8x8x32xf32>
    %42 = vector.shape_cast %41 : vector<8x8x32xf32> to vector<64x32xf32>
    %43 = vector.extract_strided_slice %40 {offsets = [0, 1, 0], sizes = [8, 8, 32], strides = [1, 1, 1]} : vector<10x10x32xf32> to vector<8x8x32xf32>
    %44 = vector.shape_cast %43 : vector<8x8x32xf32> to vector<64x32xf32>
    %45 = vector.extract_strided_slice %40 {offsets = [0, 2, 0], sizes = [8, 8, 32], strides = [1, 1, 1]} : vector<10x10x32xf32> to vector<8x8x32xf32>
    %46 = vector.shape_cast %45 : vector<8x8x32xf32> to vector<64x32xf32>
    %47 = vector.extract_strided_slice %40 {offsets = [1, 0, 0], sizes = [8, 8, 32], strides = [1, 1, 1]} : vector<10x10x32xf32> to vector<8x8x32xf32>
    %48 = vector.shape_cast %47 : vector<8x8x32xf32> to vector<64x32xf32>
    %49 = vector.extract_strided_slice %40 {offsets = [1, 1, 0], sizes = [8, 8, 32], strides = [1, 1, 1]} : vector<10x10x32xf32> to vector<8x8x32xf32>
    %50 = vector.shape_cast %49 : vector<8x8x32xf32> to vector<64x32xf32>
    %51 = vector.extract_strided_slice %40 {offsets = [1, 2, 0], sizes = [8, 8, 32], strides = [1, 1, 1]} : vector<10x10x32xf32> to vector<8x8x32xf32>
    %52 = vector.shape_cast %51 : vector<8x8x32xf32> to vector<64x32xf32>
    %53 = vector.extract_strided_slice %40 {offsets = [2, 0, 0], sizes = [8, 8, 32], strides = [1, 1, 1]} : vector<10x10x32xf32> to vector<8x8x32xf32>
    %54 = vector.shape_cast %53 : vector<8x8x32xf32> to vector<64x32xf32>
    %55 = vector.extract_strided_slice %40 {offsets = [2, 1, 0], sizes = [8, 8, 32], strides = [1, 1, 1]} : vector<10x10x32xf32> to vector<8x8x32xf32>
    %56 = vector.shape_cast %55 : vector<8x8x32xf32> to vector<64x32xf32>
    %57 = vector.extract_strided_slice %40 {offsets = [2, 2, 0], sizes = [8, 8, 32], strides = [1, 1, 1]} : vector<10x10x32xf32> to vector<8x8x32xf32>
    %58 = vector.shape_cast %57 : vector<8x8x32xf32> to vector<64x32xf32>
    %59 = tpu.concatenate %42, %44, %46, %48, %50, %52, %54, %56, %58 in 1 : vector<64x32xf32>, vector<64x32xf32>, vector<64x32xf32>, vector<64x32xf32>, vector<64x32xf32>, vector<64x32xf32>, vector<64x32xf32>, vector<64x32xf32>, vector<64x32xf32> -> vector<64x288xf32>
    %60 = arith.truncf %59 : vector<64x288xf32> to vector<64x288xbf16>
    %c0_14 = arith.constant 0 : index
    %c0_15 = arith.constant 0 : index
    %61 = vector.load %arg4[%c0_14, %c0_15] : memref<288x64xbf16, #tpu.memory_space<vmem>>, vector<288x64xbf16>
    %cst_16 = arith.constant dense<0.000000e+00> : vector<64x64xf32>
    %62 = tpu.matmul %60, %61, %cst_16 {dimension_numbers = #tpu.dot_dimension_numbers<[1], [0], [0], [1], [0, 0, 1, 1], [], []>} : vector<64x288xbf16>, vector<288x64xbf16>, vector<64x64xf32> -> vector<64x64xf32>
    %c0_17 = arith.constant 0 : index
    %c0_18 = arith.constant 0 : index
    %63 = vector.load %arg5[%c0_17, %c0_18] : memref<1x64xf32, #tpu.memory_space<vmem>>, vector<1x64xf32>
    %64 = vector.broadcast %63 : vector<1x64xf32> to vector<64x64xf32>
    %65 = arith.addf %62, %64 : vector<64x64xf32>
    %cst_19 = arith.constant 0.000000e+00 : f32
    %66 = vector.broadcast %cst_19 : f32 to vector<64x64xf32>
    %67 = arith.maximumf %65, %66 : vector<64x64xf32>
    %68 = vector.shape_cast %67 : vector<64x64xf32> to vector<32x2x64xf32>
    %cst_20 = arith.constant dense<0xFF800000> : vector<32x64xf32>
    %69 = vector.multi_reduction <maximumf>, %68, %cst_20 [1] : vector<32x2x64xf32> to vector<32x64xf32>
    %70 = vector.shape_cast %69 : vector<32x64xf32> to vector<4x2x4x64xf32>
    %cst_21 = arith.constant dense<0xFF800000> : vector<4x4x64xf32>
    %71 = vector.multi_reduction <maximumf>, %70, %cst_21 [1] : vector<4x2x4x64xf32> to vector<4x4x64xf32>
    %cst_22 = arith.constant 0.000000e+00 : f32
    %72 = vector.broadcast %cst_22 : f32 to vector<1x4x64xf32>
    %73 = tpu.concatenate %72, %71, %72 in 0 : vector<1x4x64xf32>, vector<4x4x64xf32>, vector<1x4x64xf32> -> vector<6x4x64xf32>
    %cst_23 = arith.constant 0.000000e+00 : f32
    %74 = vector.broadcast %cst_23 : f32 to vector<6x1x64xf32>
    %75 = tpu.concatenate %74, %73, %74 in 1 : vector<6x1x64xf32>, vector<6x4x64xf32>, vector<6x1x64xf32> -> vector<6x6x64xf32>
    %76 = vector.extract_strided_slice %75 {offsets = [0, 0, 0], sizes = [4, 4, 64], strides = [1, 1, 1]} : vector<6x6x64xf32> to vector<4x4x64xf32>
    %77 = vector.shape_cast %76 : vector<4x4x64xf32> to vector<16x64xf32>
    %78 = vector.extract_strided_slice %75 {offsets = [0, 1, 0], sizes = [4, 4, 64], strides = [1, 1, 1]} : vector<6x6x64xf32> to vector<4x4x64xf32>
    %79 = vector.shape_cast %78 : vector<4x4x64xf32> to vector<16x64xf32>
    %80 = vector.extract_strided_slice %75 {offsets = [0, 2, 0], sizes = [4, 4, 64], strides = [1, 1, 1]} : vector<6x6x64xf32> to vector<4x4x64xf32>
    %81 = vector.shape_cast %80 : vector<4x4x64xf32> to vector<16x64xf32>
    %82 = vector.extract_strided_slice %75 {offsets = [1, 0, 0], sizes = [4, 4, 64], strides = [1, 1, 1]} : vector<6x6x64xf32> to vector<4x4x64xf32>
    %83 = vector.shape_cast %82 : vector<4x4x64xf32> to vector<16x64xf32>
    %84 = vector.extract_strided_slice %75 {offsets = [1, 1, 0], sizes = [4, 4, 64], strides = [1, 1, 1]} : vector<6x6x64xf32> to vector<4x4x64xf32>
    %85 = vector.shape_cast %84 : vector<4x4x64xf32> to vector<16x64xf32>
    %86 = vector.extract_strided_slice %75 {offsets = [1, 2, 0], sizes = [4, 4, 64], strides = [1, 1, 1]} : vector<6x6x64xf32> to vector<4x4x64xf32>
    %87 = vector.shape_cast %86 : vector<4x4x64xf32> to vector<16x64xf32>
    %88 = vector.extract_strided_slice %75 {offsets = [2, 0, 0], sizes = [4, 4, 64], strides = [1, 1, 1]} : vector<6x6x64xf32> to vector<4x4x64xf32>
    %89 = vector.shape_cast %88 : vector<4x4x64xf32> to vector<16x64xf32>
    %90 = vector.extract_strided_slice %75 {offsets = [2, 1, 0], sizes = [4, 4, 64], strides = [1, 1, 1]} : vector<6x6x64xf32> to vector<4x4x64xf32>
    %91 = vector.shape_cast %90 : vector<4x4x64xf32> to vector<16x64xf32>
    %92 = vector.extract_strided_slice %75 {offsets = [2, 2, 0], sizes = [4, 4, 64], strides = [1, 1, 1]} : vector<6x6x64xf32> to vector<4x4x64xf32>
    %93 = vector.shape_cast %92 : vector<4x4x64xf32> to vector<16x64xf32>
    %94 = tpu.concatenate %77, %79, %81, %83, %85, %87, %89, %91, %93 in 1 : vector<16x64xf32>, vector<16x64xf32>, vector<16x64xf32>, vector<16x64xf32>, vector<16x64xf32>, vector<16x64xf32>, vector<16x64xf32>, vector<16x64xf32>, vector<16x64xf32> -> vector<16x576xf32>
    %95 = arith.truncf %94 : vector<16x576xf32> to vector<16x576xbf16>
    %c0_24 = arith.constant 0 : index
    %c0_25 = arith.constant 0 : index
    %96 = vector.load %arg6[%c0_24, %c0_25] : memref<576x128xbf16, #tpu.memory_space<vmem>>, vector<576x128xbf16>
    %cst_26 = arith.constant dense<0.000000e+00> : vector<16x128xf32>
    %97 = tpu.matmul %95, %96, %cst_26 {dimension_numbers = #tpu.dot_dimension_numbers<[1], [0], [0], [1], [0, 0, 1, 1], [], []>} : vector<16x576xbf16>, vector<576x128xbf16>, vector<16x128xf32> -> vector<16x128xf32>
    %c0_27 = arith.constant 0 : index
    %c0_28 = arith.constant 0 : index
    %98 = vector.load %arg7[%c0_27, %c0_28] : memref<1x128xf32, #tpu.memory_space<vmem>>, vector<1x128xf32>
    %99 = vector.broadcast %98 : vector<1x128xf32> to vector<16x128xf32>
    %100 = arith.addf %97, %99 : vector<16x128xf32>
    %cst_29 = arith.constant 0.000000e+00 : f32
    %101 = vector.broadcast %cst_29 : f32 to vector<16x128xf32>
    %102 = arith.maximumf %100, %101 : vector<16x128xf32>
    %cst_30 = arith.constant dense<0.000000e+00> : vector<128xf32>
    %103 = vector.multi_reduction <add>, %102, %cst_30 [0] : vector<16x128xf32> to vector<128xf32>
    %104 = vector.shape_cast %103 : vector<128xf32> to vector<1x128xf32>
    %cst_31 = arith.constant 1.600000e+01 : f32
    %105 = vector.broadcast %cst_31 : f32 to vector<1x128xf32>
    %106 = arith.divf %104, %105 : vector<1x128xf32>
    %107 = arith.truncf %106 : vector<1x128xf32> to vector<1x128xbf16>
    %c0_32 = arith.constant 0 : index
    %c0_33 = arith.constant 0 : index
    %108 = vector.load %arg8[%c0_32, %c0_33] : memref<128x128xbf16, #tpu.memory_space<vmem>>, vector<128x128xbf16>
    %cst_34 = arith.constant dense<0.000000e+00> : vector<1x128xf32>
    %109 = tpu.matmul %107, %108, %cst_34 {dimension_numbers = #tpu.dot_dimension_numbers<[1], [0], [0], [1], [0, 0, 1, 1], [], []>} : vector<1x128xbf16>, vector<128x128xbf16>, vector<1x128xf32> -> vector<1x128xf32>
    %c0_35 = arith.constant 0 : index
    %c0_36 = arith.constant 0 : index
    %110 = vector.load %arg9[%c0_35, %c0_36] : memref<1x128xf32, #tpu.memory_space<vmem>>, vector<1x128xf32>
    %111 = arith.addf %109, %110 : vector<1x128xf32>
    %cst_37 = arith.constant 0.000000e+00 : f32
    %112 = vector.broadcast %cst_37 : f32 to vector<1x128xf32>
    %113 = arith.maximumf %111, %112 : vector<1x128xf32>
    %114 = arith.truncf %113 : vector<1x128xf32> to vector<1x128xbf16>
    %c0_38 = arith.constant 0 : index
    %c0_39 = arith.constant 0 : index
    %115 = vector.load %arg10[%c0_38, %c0_39] : memref<128x64xbf16, #tpu.memory_space<vmem>>, vector<128x64xbf16>
    %cst_40 = arith.constant dense<0.000000e+00> : vector<1x64xf32>
    %116 = tpu.matmul %114, %115, %cst_40 {dimension_numbers = #tpu.dot_dimension_numbers<[1], [0], [0], [1], [0, 0, 1, 1], [], []>} : vector<1x128xbf16>, vector<128x64xbf16>, vector<1x64xf32> -> vector<1x64xf32>
    %c0_41 = arith.constant 0 : index
    %c0_42 = arith.constant 0 : index
    %117 = vector.load %arg11[%c0_41, %c0_42] : memref<1x64xf32, #tpu.memory_space<vmem>>, vector<1x64xf32>
    %118 = arith.addf %116, %117 : vector<1x64xf32>
    %119 = arith.mulf %118, %118 : vector<1x64xf32>
    %cst_43 = arith.constant dense<0.000000e+00> : vector<1xf32>
    %120 = vector.multi_reduction <add>, %119, %cst_43 [1] : vector<1x64xf32> to vector<1xf32>
    %121 = vector.shape_cast %120 : vector<1xf32> to vector<1x1xf32>
    %cst_44 = arith.constant 1.000000e-24 : f32
    %122 = vector.broadcast %cst_44 : f32 to vector<1x1xf32>
    %123 = arith.maximumf %121, %122 : vector<1x1xf32>
    %124 = math.rsqrt %123 : vector<1x1xf32>
    %125 = vector.broadcast %124 : vector<1x1xf32> to vector<1x64xf32>
    %126 = arith.mulf %118, %125 : vector<1x64xf32>
    %c0_45 = arith.constant 0 : index
    %c0_46 = arith.constant 0 : index
    %c0_47 = arith.constant 0 : index
    %127 = vector.load %arg12[%c0_45, %c0_46, %c0_47] : memref<1x1x64xf32, #tpu.memory_space<vmem>>, vector<1x1x64xf32>
    %128 = vector.shape_cast %127 : vector<1x1x64xf32> to vector<1x64xf32>
    %129 = vector.shape_cast %126 : vector<1x64xf32> to vector<1x1x64xf32>
    tpu.vector_store %arg12[%c0_45, %c0_46, %c0_47], %129 {strides = array<i32>} : memref<1x1x64xf32, #tpu.memory_space<vmem>>, vector<1x1x64xf32>,
    return
  }
  func.func @transform_0(%arg0: i32) -> (i32, i32, i32, i32) {
    %c0_i32 = arith.constant 0 : i32
    %c0_i32_0 = arith.constant 0 : i32
    %c0_i32_1 = arith.constant 0 : i32
    %c0_i32_2 = arith.constant 0 : i32
    return %arg0, %c0_i32, %c0_i32_0, %c0_i32_1 : i32, i32, i32, i32
  }
  func.func @transform_1(%arg0: i32) -> (i32, i32) {
    %c0_i32 = arith.constant 0 : i32
    %c0_i32_0 = arith.constant 0 : i32
    %c0_i32_1 = arith.constant 0 : i32
    return %c0_i32, %c0_i32_0 : i32, i32
  }
  func.func @transform_2(%arg0: i32) -> (i32, i32) {
    %c0_i32 = arith.constant 0 : i32
    %c0_i32_0 = arith.constant 0 : i32
    %c0_i32_1 = arith.constant 0 : i32
    return %c0_i32, %c0_i32_0 : i32, i32
  }
  func.func @transform_3(%arg0: i32) -> (i32, i32) {
    %c0_i32 = arith.constant 0 : i32
    %c0_i32_0 = arith.constant 0 : i32
    %c0_i32_1 = arith.constant 0 : i32
    return %c0_i32, %c0_i32_0 : i32, i32
  }
  func.func @transform_4(%arg0: i32) -> (i32, i32) {
    %c0_i32 = arith.constant 0 : i32
    %c0_i32_0 = arith.constant 0 : i32
    %c0_i32_1 = arith.constant 0 : i32
    return %c0_i32, %c0_i32_0 : i32, i32
  }
  func.func @transform_5(%arg0: i32) -> (i32, i32) {
    %c0_i32 = arith.constant 0 : i32
    %c0_i32_0 = arith.constant 0 : i32
    %c0_i32_1 = arith.constant 0 : i32
    return %c0_i32, %c0_i32_0 : i32, i32
  }
  func.func @transform_6(%arg0: i32) -> (i32, i32) {
    %c0_i32 = arith.constant 0 : i32
    %c0_i32_0 = arith.constant 0 : i32
    %c0_i32_1 = arith.constant 0 : i32
    return %c0_i32, %c0_i32_0 : i32, i32
  }
  func.func @transform_7(%arg0: i32) -> (i32, i32) {
    %c0_i32 = arith.constant 0 : i32
    %c0_i32_0 = arith.constant 0 : i32
    %c0_i32_1 = arith.constant 0 : i32
    return %c0_i32, %c0_i32_0 : i32, i32
  }
  func.func @transform_8(%arg0: i32) -> (i32, i32) {
    %c0_i32 = arith.constant 0 : i32
    %c0_i32_0 = arith.constant 0 : i32
    %c0_i32_1 = arith.constant 0 : i32
    return %c0_i32, %c0_i32_0 : i32, i32
  }
  func.func @transform_9(%arg0: i32) -> (i32, i32) {
    %c0_i32 = arith.constant 0 : i32
    %c0_i32_0 = arith.constant 0 : i32
    %c0_i32_1 = arith.constant 0 : i32
    return %c0_i32, %c0_i32_0 : i32, i32
  }
  func.func @transform_10(%arg0: i32) -> (i32, i32) {
    %c0_i32 = arith.constant 0 : i32
    %c0_i32_0 = arith.constant 0 : i32
    %c0_i32_1 = arith.constant 0 : i32
    return %c0_i32, %c0_i32_0 : i32, i32
  }
  func.func @transform_11(%arg0: i32) -> (i32, i32, i32) {
    %c0_i32 = arith.constant 0 : i32
    %c0_i32_0 = arith.constant 0 : i32
    %c0_i32_1 = arith.constant 0 : i32
    return %arg0, %c0_i32, %c0_i32_0 : i32, i32, i32
  }
}

</mosaic_0001>

<bundles_post_ra>
// kernel: contrastive_forward_pallas.1
= control target key start
LH: loop header
LB: loop body
LE: loop exit
PB: predicated region body
PF: predicated region fallthrough
CT: control target
= control target key end

     0   :  { %s10146_s0 = inlined_call_operand.vmem [shape: f32[2,16,16,1], index: 0, kind: input, shape index: {}]   ;;  %s10147_s1 = inlined_call_operand.vmem [shape: bf16[9,32], index: 1, kind: input, shape index: {}]   ;;  %s10148_s2 = inlined_call_operand.vmem [shape: f32[1,32], index: 2, kind: input, shape index: {}]   ;;  %s10149_s3 = inlined_call_operand.vmem [shape: bf16[288,64], index: 3, kind: input, shape index: {}]   ;;  %s10150_s4 = inlined_call_operand.vmem [shape: f32[1,64], index: 4, kind: input, shape index: {}]   ;;  %s10151_s5 = inlined_call_operand.vmem [shape: bf16[576,128], index: 5, kind: input, shape index: {}]   ;;  %s10152_s6 = inlined_call_operand.vmem [shape: f32[1,128], index: 6, kind: input, shape index: {}]   ;;  %s10153_s7 = inlined_call_operand.vmem [shape: bf16[128,128], index: 7, kind: input, shape index: {}]   ;;  %s10154_s8 = inlined_call_operand.vmem [shape: f32[1,128], index: 8, kind: input, shape index: {}]   ;;  %s10155_s9 = inlined_call_operand.vmem [shape: bf16[128,64], index: 9, kind: input, shape index: {}]   ;;  %s10156_s10 = inlined_call_operand.vmem [shape: f32[1,64], index: 10, kind: input, shape index: {}]   ;;  %s10157_s11 = inlined_call_operand.hbm [shape: f32[2,1,64], index: 11, kind: output, shape index: {}]  }
   0x1   :  { %10168 = sst [smem:[#allocation5_spill]] %s10146_s0 }
   0x2   :  { %10169 = sst [smem:[#allocation6_spill]] %s10147_s1 }
   0x3   :  { %16 = vsyncpa [#allocation3], 0 }
   0x4   :  { %18 = vsyncpa [#allocation3 + $0x1], 0  ;;  %s7356_s17 = smov 0   ;;  %s7358_s18 = smov 0  }
   0x5   :  { %s7360_s19 = smov 0   ;;  %s7362_s20 = smov 0  }
   0x6 LB: > { %s7377_s21 = sadd.s32 4294967295, %s7278_s20   ;;  %s5971_s22 = sadd.s32 4294967294, %s7278_s20   ;;  %s7278_s20 = sphi %s7362_s20, %s10201_s20   ;;  %s7274_s19 = sphi %s7360_s19, %s10200_s19   ;;  %s7270_s18 = sphi %s7358_s18, %s10199_s18   ;;  %s7266_s17 = sphi %s7356_s17, %s10198_s17  }
   0x7   : > { %s7381_s23 = sadd.s32 1, %s7278_s20   ;;  %s267_s24 = sadd.s32 1, %s7274_s19 }
   0x8   : > { %s264_s25 = ssub.s32 %s7278_s20, %s7381_s23  ;;  %p277_p0 = scmp.ne.s32.totalorder %s7274_s19, %s7270_s18 }
   0x9   : > { %p265_p1 = scmp.eq.s32.totalorder %s264_s25, 0  ;;  %p278_p2 = scmp.eq.s32.totalorder %s7377_s21, 1 }
   0xa   : > { %p283_p3 = scmp.ne.s32.totalorder %s7270_s18, %s7266_s17  ;;  %p284_p4 = scmp.eq.s32.totalorder %s5971_s22, 1 }
   0xb   : > { %s7392_s26 = scalar_select %p265_p1, %s7274_s19, %s267_s24  }
   0xc   : > { %p7394_p5 = por %p278_p2, %p277_p0  ;;  %p7398_p6 = por %p284_p4, %p283_p3 }
   0xd   : > { %p5974_p7 = scmp.ge.s32.totalorder %s7278_s20, 1  ;;  %p340_p8 = scmp.lt.s32.totalorder %s7278_s20, 3 }
   0xf   : > { %p341_p9 = pnand %p5974_p7, %p340_p8 }
  0x10   : > { %p379_p10 = scmp.lt.s32.totalorder (!%p341_p9), %s7377_s21, 1  ;;  %s10172_s0 = sld [smem:[#allocation5_spill]] (!%p341_p9) }
  0x11   : > { %344 = sbr.rel (%p341_p9) target bundleno = 2136 (0x858), region = 64  ;;  %s7281_s15 = smov (!%p341_p9), 2  }
  0x12   : > { %s7282_s16 = smov (!%p341_p9), 1   ;;  %s7283_s22 = smov (!%p341_p9), 3  }
  0x13   : > { %s10158_s24 = smov (!%p341_p9), 4   ;;  %s7285_s25 = smov (!%p341_p9), 5  }
  0x14   : > { %s7288_s12 = smov (!%p341_p9), 8   ;;  %s10173_s1 = sld [smem:[#allocation6_spill]] (!%p341_p9) }
  0x16   : > { %vm450_vm0 = vcmask 1040384   ;;  %v10160_v0 = vmov 0.0   ;;  %vm697_vm1 = vcmask 1045504   ;;  %vm616_vm2 = vcmask 1046528   ;;  %s380_s29 = scalar_select %p379_p10, %s7377_s21, 1 }
  0x17   : > { %v7405_v1 = vrot.slane %v10160_v0, 7  ;;  %vm1901_vm3 = vcmask 1043456   ;;  %vm1902_vm4 = vcmask 1044480   ;;  %vm1558_vm5 = vcmask 7168  }
  0x18   : > { %s6085_s30 = sshll.u32 %s380_s29, 8  ;;  %s7286_s29 = smov 6   ;;  %vm1591_vm6 = vcmask 15360   ;;  %vm1624_vm7 = vcmask 23552   ;;  %vm1657_vm8 = vcmask 31744   ;;  %vm1690_vm9 = vcmask 39936  }
  0x19   : > { %v7410_v2 = vsel %vm450_vm0, 0.0, %v7405_v1  ;;  %v7414_v3 = vsel %vm450_vm0, %v7405_v1, 0.0  ;;  %v699_v4 = vrot.slane %v7405_v1, 2  ;;  %v618_v5 = vrot.slane %v7405_v1, 1  ;;  %s7438_s14 = scalar_lea.vmem %s10172_s0, %s6085_s30  ;;  %s7287_s30 = smov 7  }
  0x1a   : > { %v10162_v6 = vrot.slane %v7410_v2, 2  ;;  %v10163_v7 = vrot.slane %v7414_v3, 2  ;;  %v10164_v8 = vrot.slane %v7410_v2, 1  ;;  %v10165_v9 = vrot.slane %v7414_v3, 1  ;;  %v387_v16 = vld [vmem:[%s7438_s14 + $0x10] sm:$0xff]  ;;  %v388_v17 = vld [vmem:[%s7438_s14 + $0x18] sm:$0xff] }
  0x1b   : > { %v385_v18 = vld [vmem:[%s7438_s14] sm:$0xff]  ;;  %v456_v19 = vrot.slane %v387_v16, 7  ;;  %v457_v20 = vrot.slane %v388_v17, 7  ;;  %v386_v21 = vld [vmem:[%s7438_s14 + $0x8] sm:$0xff]  ;;  %vm1723_vm10 = vcmask 48128   ;;  %vm1756_vm11 = vcmask 56320  }
  0x1c   : > { %v700_v10 = vsel %vm697_vm1, %v10162_v6, %v699_v4  ;;  %v702_v11 = vsel %vm697_vm1, %v699_v4, %v10163_v7  ;;  %v619_v12 = vsel %vm616_vm2, %v10164_v8, %v618_v5  ;;  %v621_v13 = vsel %vm616_vm2, %v618_v5, %v10165_v9  ;;  %v389_v23 = vld [vmem:[%s7438_s14 + $0x20] sm:$0xff]  ;;  %v390_v24 = vld [vmem:[%s7438_s14 + $0x28] sm:$0xff] }
  0x1d   : > { %v7440_v14 = vpack.i.bf16 %v702_v11, %v700_v10  ;;  %v7442_v15 = vpack.i.bf16 %v621_v13, %v619_v12  ;;  %v453_v22 = vrot.slane %v385_v18, 7  ;;  %v454_v25 = vrot.slane %v386_v21, 7 }
  0x1e   : > { %v459_v26 = vrot.slane %v389_v23, 7  ;;  %v460_v27 = vrot.slane %v390_v24, 7  ;;  %v7455_v28 = vsel %vm450_vm0, %v456_v19, %v457_v20  ;;  %v7458_v29 = vsel %vm450_vm0, 0.0, %v456_v19  ;;  %v391_v19 = vld [vmem:[%s7438_s14 + $0x30] sm:$0xff] }
  0x1f   : > { %6374 = vrot.lane.b32.xlu1 %v7440_v14, %s7281_s15  ;;  %6369 = vrot.lane.b32.xlu0 %v7442_v15, %s7282_s16  ;;  %v7461_v30 = vsel %vm450_vm0, 0.0, %v453_v22  ;;  %v569_v31 = vsel %vm450_vm0, %v457_v20, 0.0  ;;  %v6383_v32 = vpack.i.bf16 %v7455_v28, %v7458_v29  ;;  %v7467_v33 = vsel %vm450_vm0, %v453_v22, %v454_v25  ;;  %v392_v20 = vld [vmem:[%s7438_s14 + $0x38] sm:$0xff] }
  0x20   : > { %v568_v34 = vsel %vm450_vm0, %v454_v25, 0.0  ;;  %v703_v35 = vrot.slane %v7461_v30, 2  ;;  %v6378_v36 = vpack.i.bf16 %v7467_v33, %v7461_v30  ;;  %v704_v37 = vrot.slane %v7467_v33, 2 }
  0x21   : > { %v706_v38 = vrot.slane %v568_v34, 2  ;;  %v622_v39 = vrot.slane %v7461_v30, 1  ;;  %v623_v40 = vrot.slane %v7467_v33, 1  ;;  %v625_v41 = vrot.slane %v568_v34, 1  ;;  %v393_v34 = vld [vmem:[%s7438_s14 + $0x40] sm:$0xff] }
  0x22   : > { %v627_v42 = vrot.slane %v7458_v29, 1  ;;  %v628_v43 = vrot.slane %v7455_v28, 1  ;;  %v705_v44 = vsel %vm697_vm1, %v703_v35, %v704_v37  ;;  %v630_v46 = vrot.slane %v569_v31, 1 }
  0x23   : > { %6384 = vrot.lane.b32.xlu1 %v6383_v32, %s7283_s22  ;;  %6379 = vrot.lane.b32.xlu0 %v6378_v36, %s7283_s22  ;;  %v707_v45 = vsel %vm697_vm1, %v704_v37, %v706_v38  ;;  %v708_v47 = vrot.slane %v7458_v29, 2  ;;  %v624_v49 = vsel %vm616_vm2, %v622_v39, %v623_v40  ;;  %v626_v50 = vsel %vm616_vm2, %v623_v40, %v625_v41  ;;  %v394_v39 = vld [vmem:[%s7438_s14 + $0x48] sm:$0xff] }
  0x24   : > { %v6393_v48 = vpack.i.bf16 %v707_v45, %v705_v44  ;;  %v629_v51 = vsel %vm616_vm2, %v627_v42, %v628_v43  ;;  %v6388_v52 = vpack.i.bf16 %v626_v50, %v624_v49  ;;  %v631_v53 = vsel %vm616_vm2, %v628_v43, %v630_v46 }
  0x25   : > { %v709_v54 = vrot.slane %v7455_v28, 2  ;;  %v6403_v55 = vpack.i.bf16 %v631_v53, %v629_v51  ;;  %v711_v56 = vrot.slane %v569_v31, 2  ;;  %v7492_v58 = vsel %vm450_vm0, 0.0, %v459_v26 }
  0x26   : > { %v7496_v60 = vsel %vm450_vm0, %v459_v26, %v460_v27  ;;  %v570_v61 = vsel %vm450_vm0, %v460_v27, 0.0  ;;  %v632_v63 = vrot.slane %v7492_v58, 1  ;;  %v713_v16 = vrot.slane %v7492_v58, 2 }
  0x27   : > { %6394 = vrot.lane.b32.xlu1 %v6393_v48, %s7281_s15  ;;  %6389 = vrot.lane.b32.xlu0 %v6388_v52, %s7282_s16  ;;  %v710_v57 = vsel %vm697_vm1, %v708_v47, %v709_v54  ;;  %v712_v59 = vsel %vm697_vm1, %v709_v54, %v711_v56  ;;  %v633_v4 = vrot.slane %v7496_v60, 1  ;;  %v635_v5 = vrot.slane %v570_v61, 1 }
  0x28   : > { %v6413_v62 = vpack.i.bf16 %v712_v59, %v710_v57  ;;  %v6423_v10 = vpack.i.bf16 %v7496_v60, %v7492_v58  ;;  %v714_v17 = vrot.slane %v7496_v60, 2  ;;  %v716_v18 = vrot.slane %v570_v61, 2 }
  0x29   : > { %v634_v11 = vsel %vm616_vm2, %v632_v63, %v633_v4  ;;  %v636_v12 = vsel %vm616_vm2, %v633_v4, %v635_v5  ;;  %v462_v21 = vrot.slane %v391_v19, 7  ;;  %v463_v24 = vrot.slane %v392_v20, 7  ;;  %v395_v63 = vld [vmem:[%s7438_s14 + $0x50] sm:$0xff]  ;;  %v7143_v4 = vld [vmem:[%s10173_s1] sm:$0x1f]  }
  0x2a   : > { %v6433_v13 = vpack.i.bf16 %v636_v12, %v634_v11  ;;  %v715_v22 = vsel %vm697_vm1, %v713_v16, %v714_v17  ;;  %v717_v23 = vsel %vm697_vm1, %v714_v17, %v716_v18  ;;  %v465_v42 = vrot.slane %v393_v34, 7  ;;  %v396_v11 = vld [vmem:[%s7438_s14 + $0x58] sm:$0xff] }
  0x2b   : > { %6404 = vrot.lane.b32.xlu1 %v6403_v55, %s10158_s24  ;;  %6399 = vrot.lane.b32.xlu0 %v6388_v52, %s10158_s24  ;;  %v6448_v25 = vpack.i.bf16 %v717_v23, %v715_v22  ;;  %v7522_v26 = vsel %vm450_vm0, 0.0, %v462_v21  ;;  %v7525_v27 = vsel %vm450_vm0, %v462_v21, %v463_v24  ;;  %v571_v31 = vsel %vm450_vm0, %v463_v24, 0.0 }
  0x2c   : > { %v638_v35 = vrot.slane %v7525_v27, 1  ;;  %v640_v36 = vrot.slane %v571_v31, 1  ;;  %v718_v37 = vrot.slane %v7522_v26, 2  ;;  %v719_v38 = vrot.slane %v7525_v27, 2 }
  0x2d   : > { %v6473_v40 = vpack.i.bf16 %v7525_v27, %v7522_v26  ;;  %v721_v41 = vrot.slane %v571_v31, 2  ;;  %v466_v45 = vrot.slane %v394_v39, 7  ;;  %v7547_v49 = vsel %vm450_vm0, 0.0, %v465_v42 }
  0x2e   : > { %v641_v44 = vsel %vm616_vm2, %v638_v35, %v640_v36  ;;  %v720_v47 = vsel %vm697_vm1, %v718_v37, %v719_v38  ;;  %v642_v53 = vrot.slane %v7547_v49, 1  ;;  %v7289_v12 = vmov 65535   ;;  %v398_v36 = vld [vmem:[%s7438_s14 + $0x68] sm:$0xff] }
  0x2f   : > { %6414 = vrot.lane.b32.xlu1 %v6413_v62, %s7285_s25  ;;  %6409 = vrot.lane.b32.xlu0 %v6393_v48, %s7285_s25  ;;  %v722_v48 = vsel %vm697_vm1, %v719_v38, %v721_v41  ;;  %v7550_v50 = vsel %vm450_vm0, %v465_v42, %v466_v45  ;;  %v572_v51 = vsel %vm450_vm0, %v466_v45, 0.0  ;;  %v468_v16 = vrot.slane %v395_v63, 7 }
  0x30   : > { %v6493_v52 = vpack.i.bf16 %v722_v48, %v720_v47  ;;  %v643_v54 = vrot.slane %v7550_v50, 1  ;;  %v6503_v56 = vpack.i.bf16 %v7550_v50, %v7547_v49  ;;  %v724_v5 = vrot.slane %v7550_v50, 2 }
  0x31   : > { %v469_v20 = vrot.slane %v396_v11, 7  ;;  %v7580_v23 = vsel %vm450_vm0, 0.0, %v468_v16  ;;  %v400_v11 = vld [vmem:[%s7438_s14 + $0x78] sm:$0xff]  ;;  %vm1789_vm12 = vcmask 64512   ;;  %vm1852_vm13 = vcmask 72704  }
  0x32   : > { %v644_v57 = vsel %vm616_vm2, %v642_v53, %v643_v54  ;;  %v647_v31 = vrot.slane %v7580_v23, 1  ;;  %v728_v38 = vrot.slane %v7580_v23, 2  ;;  %vm2805_vm14 = vcmask 254976  }
  0x33   : > { %6424 = vrot.lane.b32.xlu1 %v6423_v10, %s7286_s29  ;;  %6419 = vrot.lane.b32.xlu0 %v6383_v32, %s7286_s29  ;;  %v637_v32 = vrot.slane %v7522_v26, 1  ;;  %v7583_v24 = vsel %vm450_vm0, %v468_v16, %v469_v20  ;;  %vm3702_vm15 = vcmask 261120  }
  0x34   : > { %v6553_v37 = vpack.i.bf16 %v7583_v24, %v7580_v23  ;;  %v729_v41 = vrot.slane %v7583_v24, 2 }
  0x35   : > { %v639_v43 = vsel %vm616_vm2, %v637_v32, %v638_v35  ;;  %v648_v32 = vrot.slane %v7583_v24, 1  ;;  %v397_v35 = vld [vmem:[%s7438_s14 + $0x60] sm:$0xff] }
  0x36   : > { %v6483_v46 = vpack.i.bf16 %v641_v44, %v639_v43  ;;  %v471_v43 = vrot.slane %v397_v35, 7  ;;  %v472_v44 = vrot.slane %v398_v36, 7 }
  0x37   : > { %6434 = vrot.lane.b32.xlu1 %v6433_v13, %s7287_s30  ;;  %6429 = vrot.lane.b32.xlu0 %v6403_v55, %s7287_s30  ;;  %v649_v39 = vsel %vm616_vm2, %v647_v31, %v648_v32 }
  0x38   : > { %v7605_v48 = vsel %vm450_vm0, %v471_v43, %v472_v44 }
  0x3b   : > { %6444 = vrot.lane.b32.xlu1 %v6403_v55, %s7282_s16  ;;  %6439 = vrot.lane.b32.xlu0 %v6413_v62, %s7288_s12  ;;  %v645_v55 = vrot.slane %v572_v51, 1 }
  0x3d   : > { %v646_v59 = vsel %vm616_vm2, %v643_v54, %v645_v55  ;;  %v653_v55 = vrot.slane %v7605_v48, 1 }
  0x3e   : > { %v6513_v61 = vpack.i.bf16 %v646_v59, %v644_v57 }
  0x3f   : > { %6454 = vrot.lane.b32.xlu1 %v6433_v13, %s7282_s16  ;;  %6449 = vrot.lane.b32.xlu0 %v6448_v25, %s7288_s12 }
  0x43   : > { %6464 = vrot.lane.b32.xlu1 %v6448_v25, %s7281_s15  ;;  %6459 = vrot.lane.b32.xlu0 %v6413_v62, %s7281_s15  ;;  %v723_v62 = vrot.slane %v7547_v49, 2 }
  0x45   : > { %v725_v18 = vsel %vm697_vm1, %v723_v62, %v724_v5 }
  0x47   : > { %6474 = vrot.lane.b32.xlu1 %v6473_v40, %s7283_s22  ;;  %6469 = vrot.lane.b32.xlu0 %v6423_v10, %s7283_s22  ;;  %v726_v10 = vrot.slane %v572_v51, 2  ;;  %v7608_v51 = vsel %vm450_vm0, 0.0, %v471_v43 }
  0x48   : > { %v652_v54 = vrot.slane %v7608_v51, 1  ;;  %v6583_v57 = vpack.i.bf16 %v7605_v48, %v7608_v51  ;;  %v733_v63 = vrot.slane %v7608_v51, 2 }
  0x49   : > { %v727_v19 = vsel %vm697_vm1, %v724_v5, %v726_v10  ;;  %v399_v10 = vld [vmem:[%s7438_s14 + $0x70] sm:$0xff] }
  0x4a   : > { %v6528_v22 = vpack.i.bf16 %v727_v19, %v725_v18  ;;  %v654_v59 = vsel %vm616_vm2, %v652_v54, %v653_v55  ;;  %v474_v16 = vrot.slane %v399_v10, 7 }
  0x4b   : > { %6484 = vrot.lane.b32.xlu1 %v6483_v46, %s10158_s24  ;;  %6479 = vrot.lane.b32.xlu0 %v6433_v13, %s10158_s24  ;;  %v1903_v13 = vsel %vm1901_vm3, 4294967295, %v7289_v12  ;;  %s10174_s24 = smov 4   ;;  %vm3959_vm3 = vcmask 1041409  }
  0x4c   : > { %v1904_v17 = vsel %vm1902_vm4, %v1903_v13, 0 }
  0x4d   : > { %v1906_v21 = vand.u32 %v7143_v4, %v1904_v17  ;;  %v734_v4 = vrot.slane %v7605_v48, 2  ;;  %v475_v17 = vrot.slane %v400_v11, 7 }
  0x4f   : > { %6494 = vrot.lane.b32.xlu1 %v6493_v52, %s7285_s25  ;;  %6489 = vrot.lane.b32.xlu0 %v6448_v25, %s7285_s25  ;;  %v573_v25 = vsel %vm450_vm0, %v469_v20, 0.0  ;;  %v735_v12 = vsel %vm697_vm1, %v733_v63, %v734_v4  ;;  %v7634_v19 = vsel %vm450_vm0, %v474_v16, %v475_v17  ;;  %v7637_v20 = vsel %vm450_vm0, 0.0, %v474_v16 }
  0x50   : > { %6216 = vmatprep.subr.bf16.mxu0 %v1906_v21  ;;  %v650_v34 = vrot.slane %v573_v25, 1  ;;  %v731_v42 = vrot.slane %v573_v25, 2  ;;  %v658_v25 = vrot.slane %v7634_v19, 1  ;;  %v6633_v35 = vpack.i.bf16 %v7634_v19, %v7637_v20 }
  0x51   : > { %6217 = vmatpush3.bf16.msra.mxu0 %v1906_v21  ;;  %v575_v21 = vsel %vm450_vm0, %v475_v17, 0.0  ;;  %v738_v36 = vrot.slane %v7637_v20, 2 }
  0x52   : > { %v732_v47 = vsel %vm697_vm1, %v729_v41, %v731_v42  ;;  %v660_v31 = vrot.slane %v575_v21, 1 }
  0x53   : > { %6504 = vrot.lane.b32.xlu1 %v6503_v56, %s7286_s29  ;;  %6499 = vrot.lane.b32.xlu0 %v6473_v40, %s7286_s29  ;;  %v651_v40 = vsel %vm616_vm2, %v648_v32, %v650_v34  ;;  %v401_v32 = vld [vmem:[%s7438_s14 + $0x80] sm:$0xff]  ;;  %v402_v34 = vld [vmem:[%s7438_s14 + $0x88] sm:$0xff] }
  0x54   : > { %v6563_v45 = vpack.i.bf16 %v651_v40, %v649_v39  ;;  %v739_v39 = vrot.slane %v7634_v19, 2  ;;  %v741_v40 = vrot.slane %v575_v21, 2  ;;  %v478_v42 = vrot.slane %v402_v34, 7 }
  0x57   : > { %6514 = vrot.lane.b32.xlu1 %v6513_v61, %s7287_s30  ;;  %6509 = vrot.lane.b32.xlu0 %v6483_v46, %s7287_s30 }
  0x5b   : > { %6524 = vrot.lane.b32.xlu1 %v6483_v46, %s7282_s16  ;;  %6519 = vrot.lane.b32.xlu0 %v6493_v52, %s7288_s12  ;;  %v730_v46 = vsel %vm697_vm1, %v728_v38, %v729_v41  ;;  %v661_v38 = vsel %vm616_vm2, %v658_v25, %v660_v31  ;;  %v477_v41 = vrot.slane %v401_v32, 7 }
  0x5c   : > { %v6573_v53 = vpack.i.bf16 %v732_v47, %v730_v46 }
  0x5d   : > { %v7659_v46 = vsel %vm450_vm0, %v477_v41, %v478_v42  ;;  %v7662_v47 = vsel %vm450_vm0, 0.0, %v477_v41 }
  0x5e   : > { %v662_v54 = vrot.slane %v7662_v47, 1  ;;  %v743_v16 = vrot.slane %v7662_v47, 2  ;;  %v744_v17 = vrot.slane %v7659_v46, 2 }
  0x5f   : > { %6534 = vrot.lane.b32.xlu1 %v6513_v61, %s7282_s16  ;;  %6529 = vrot.lane.b32.xlu0 %v6528_v22, %s7288_s12 }
  0x63   : > { %6544 = vrot.lane.b32.xlu1 %v6528_v22, %s7281_s15  ;;  %6539 = vrot.lane.b32.xlu0 %v6493_v52, %s7281_s15  ;;  %v574_v52 = vsel %vm450_vm0, %v472_v44, 0.0  ;;  %v740_v44 = vsel %vm697_vm1, %v738_v36, %v739_v39  ;;  %v745_v36 = vsel %vm697_vm1, %v743_v16, %v744_v17 }
  0x64   : > { %v736_v5 = vrot.slane %v574_v52, 2 }
  0x66   : > { %v737_v13 = vsel %vm697_vm1, %v734_v4, %v736_v5  ;;  %v404_v5 = vld [vmem:[%s7438_s14 + $0x98] sm:$0xff] }
  0x67   : > { %6554 = vrot.lane.b32.xlu1 %v6553_v37, %s7283_s22  ;;  %6549 = vrot.lane.b32.xlu0 %v6503_v56, %s7283_s22  ;;  %v655_v56 = vrot.slane %v574_v52, 1  ;;  %v6608_v18 = vpack.i.bf16 %v737_v13, %v735_v12  ;;  %v576_v52 = vsel %vm450_vm0, %v478_v42, 0.0  ;;  %v481_v12 = vrot.slane %v404_v5, 7 }
  0x69   : > { %v656_v62 = vsel %vm616_vm2, %v653_v55, %v655_v56  ;;  %v663_v55 = vrot.slane %v7659_v46, 1  ;;  %v665_v56 = vrot.slane %v576_v52, 1  ;;  %v577_v34 = vsel %vm450_vm0, %v481_v12, 0.0 }
  0x6b   : > { %6564 = vrot.lane.b32.xlu1 %v6563_v45, %s10174_s24  ;;  %6559 = vrot.lane.b32.xlu0 %v6513_v61, %s10174_s24  ;;  %v6593_v61 = vpack.i.bf16 %v656_v62, %v654_v59  ;;  %v664_v59 = vsel %vm616_vm2, %v662_v54, %v663_v55  ;;  %v666_v62 = vsel %vm616_vm2, %v663_v55, %v665_v56  ;;  %v751_v55 = vrot.slane %v577_v34, 2 }
  0x6c   : > { %v7688_v10 = vpack.i.bf16 %v666_v62, %v664_v59 }
  0x6f   : > { %6574 = vrot.lane.b32.xlu1 %v6573_v53, %s7285_s25  ;;  %6569 = vrot.lane.b32.xlu0 %v6528_v22, %s7285_s25  ;;  %v657_v22 = vrot.slane %v7637_v20, 1 }
  0x73   : > { %6584 = vrot.lane.b32.xlu1 %v6583_v57, %s7286_s29  ;;  %6579 = vrot.lane.b32.xlu0 %v6553_v37, %s7286_s29  ;;  %v659_v37 = vsel %vm616_vm2, %v657_v22, %v658_v25  ;;  %v405_v22 = vld [vmem:[%s7438_s14 + $0xa0] sm:$0xff]  ;;  %v406_v25 = vld [vmem:[%s7438_s14 + $0xa8] sm:$0xff] }
  0x74   : > { %v6643_v43 = vpack.i.bf16 %v661_v38, %v659_v37  ;;  %v483_v38 = vrot.slane %v405_v22, 7 }
  0x77   : > { %6594 = vrot.lane.b32.xlu1 %v6593_v61, %s7287_s30  ;;  %6589 = vrot.lane.b32.xlu0 %v6563_v45, %s7287_s30 }
  0x7b   : > { %6604 = vrot.lane.b32.xlu1 %v6563_v45, %s7282_s16  ;;  %6599 = vrot.lane.b32.xlu0 %v6573_v53, %s7288_s12  ;;  %v742_v45 = vsel %vm697_vm1, %v739_v39, %v741_v40  ;;  %v484_v39 = vrot.slane %v406_v25, 7 }
  0x7d   : > { %v7725_v59 = vsel %vm450_vm0, %v483_v38, %v484_v39  ;;  %v7731_v62 = vsel %vm450_vm0, %v484_v39, 0.0 }
  0x7e   : > { %v675_v22 = vrot.slane %v7731_v62, 1 }
  0x7f   : > { %6614 = vrot.lane.b32.xlu1 %v6593_v61, %s7282_s16  ;;  %6609 = vrot.lane.b32.xlu0 %v6608_v18, %s7288_s12 }
  0x83   : > { %6624 = vrot.lane.b32.xlu1 %v6608_v18, %s7281_s15  ;;  %6619 = vrot.lane.b32.xlu0 %v6573_v53, %s7281_s15  ;;  %v7666_v53 = vpack.i.bf16 %v742_v45, %v740_v44  ;;  %v670_v44 = vrot.slane %v577_v34, 1 }
  0x87   : > { %6634 = vrot.lane.b32.xlu1 %v6633_v35, %s7283_s22  ;;  %6629 = vrot.lane.b32.xlu0 %v6583_v57, %s7283_s22  ;;  %v7675_v57 = vpack.i.bf16 %v7659_v46, %v7662_v47 }
  0x8b   : > { %6644 = vrot.lane.b32.xlu1 %v6643_v43, %s10174_s24  ;;  %6639 = vrot.lane.b32.xlu0 %v6593_v61, %s10174_s24  ;;  %v403_v61 = vld [vmem:[%s7438_s14 + $0x90] sm:$0xff] }
  0x8c   : > { %v480_v11 = vrot.slane %v403_v61, 7 }
  0x8e   : > { %v7702_v31 = vsel %vm450_vm0, 0.0, %v480_v11  ;;  %v7706_v32 = vsel %vm450_vm0, %v480_v11, %v481_v12 }
  0x8f   : > { %6654 = vrot.lane.b32.xlu1 %v7666_v53, %s7285_s25  ;;  %6649 = vrot.lane.b32.xlu0 %v6608_v18, %s7285_s25  ;;  %v746_v18 = vrot.slane %v576_v52, 2  ;;  %v667_v41 = vrot.slane %v7702_v31, 1  ;;  %v668_v42 = vrot.slane %v7706_v32, 1  ;;  %v748_v45 = vrot.slane %v7702_v31, 2 }
  0x90   : > { %v749_v52 = vrot.slane %v7706_v32, 2 }
  0x91   : > { %v7681_v63 = vpop.permute.xlu1 %6374  ;;  %v7683_v4 = vpop.permute.xlu0 %6369  ;;  %v747_v37 = vsel %vm697_vm1, %v744_v17, %v746_v18  ;;  %v669_v5 = vsel %vm616_vm2, %v667_v41, %v668_v42  ;;  %v671_v11 = vsel %vm616_vm2, %v668_v42, %v670_v44  ;;  %v673_v18 = vrot.slane %v7725_v59, 1 }
  0x92   : > { %v7720_v54 = vpack.i.bf16 %v747_v37, %v745_v36  ;;  %v750_v12 = vsel %vm697_vm1, %v748_v45, %v749_v52  ;;  %v752_v16 = vsel %vm697_vm1, %v749_v52, %v751_v55  ;;  %v6372_v25 = vunpack.i.h.bf16 %v7683_v4  ;;  %v7769_v55 = vld [vmem:[%s7438_s14 + $0xb0] sm:$0xff] }
  0x93   : > { %6664 = vrot.lane.b32.xlu1 %v7675_v57, %s7286_s29  ;;  %6659 = vrot.lane.b32.xlu0 %v6633_v35, %s7286_s29  ;;  %v6371_v34 = vunpack.i.l.bf16 %v7683_v4  ;;  %v7756_v41 = vpack.i.bf16 %v7706_v32, %v7702_v31  ;;  %v7758_v42 = vpack.i.bf16 %v671_v11, %v669_v5  ;;  %v7760_v4 = vpack.i.bf16 %v752_v16, %v750_v12 }
  0x94   : > { %v6377_v44 = vunpack.i.h.bf16 %v7681_v63  ;;  %v6376_v45 = vunpack.i.l.bf16 %v7681_v63  ;;  %v676_v52 = vsel %vm616_vm2, %v673_v18, %v675_v22  ;;  %v1560_v5 = vsel %vm1558_vm5, %v7405_v1, %v6372_v25 }
  0x95   : > { %v7691_v13 = vpop.permute.xlu1 %6384  ;;  %v7695_v21 = vpop.permute.xlu0 %6379  ;;  %v1559_v11 = vsel %vm1558_vm5, %v7410_v2, %v6371_v34  ;;  %v486_v0 = vrot.slane %v7769_v55, 7 }
  0x97   : > { %6674 = vrot.lane.b32.xlu1 %v7688_v10, %s7287_s30  ;;  %6669 = vrot.lane.b32.xlu0 %v6643_v43, %s7287_s30 }
  0x99   : > { %v7709_v35 = vpop.permute.xlu1 %6394  ;;  %v6390_v40 = vpop.permute.xlu0 %6389 }
  0x9a   : > { %v6392_v37 = vunpack.i.h.bf16 %v6390_v40  ;;  %v6397_v12 = vunpack.i.h.bf16 %v7709_v35  ;;  %v6396_v63 = vunpack.i.l.bf16 %v7709_v35 }
  0x9b   : > { %6684 = vrot.lane.b32.xlu1 %v6643_v43, %s7282_s16  ;;  %6679 = vrot.lane.b32.xlu0 %v7666_v53, %s7288_s12  ;;  %v7728_v43 = vsel %vm450_vm0, 0.0, %v483_v38  ;;  %v6391_v38 = vunpack.i.l.bf16 %v6390_v40 }
  0x9c   : > { %v672_v17 = vrot.slane %v7728_v43, 1  ;;  %v7789_v35 = vpack.i.bf16 %v7725_v59, %v7728_v43 }
  0x9d   : > { %v7722_v56 = vpop.permute.xlu1 %6404  ;;  %v7733_v61 = vpop.permute.xlu0 %6399  ;;  %v1561_v22 = vsel %vm1558_vm5, %v7461_v30, %v6391_v38  ;;  %v1593_v30 = vsel %vm1591_vm6, %v1560_v5, %v6377_v44 }
  0x9e   : > { %v674_v40 = vsel %vm616_vm2, %v672_v17, %v673_v18  ;;  %v6381_v17 = vunpack.i.l.bf16 %v7695_v21  ;;  %v1562_v18 = vsel %vm1558_vm5, %v7467_v33, %v6392_v37  ;;  %v6386_v33 = vunpack.i.l.bf16 %v7691_v13 }
  0x9f   : > { %6694 = vrot.lane.b32.xlu1 %v7688_v10, %s7282_s16  ;;  %6689 = vrot.lane.b32.xlu0 %v7720_v54, %s7288_s12  ;;  %v7791_v34 = vpack.i.bf16 %v676_v52, %v674_v40  ;;  %v1592_v37 = vsel %vm1591_vm6, %v1559_v11, %v6376_v45  ;;  %v1595_v38 = vsel %vm1591_vm6, %v1562_v18, %v6397_v12  ;;  %v6402_v40 = vunpack.i.h.bf16 %v7733_v61 }
  0xa0   : > { %v1594_v6 = vsel %vm1591_vm6, %v1561_v22, %v6396_v63  ;;  %v6401_v52 = vunpack.i.l.bf16 %v7733_v61  ;;  %v6406_v11 = vunpack.i.l.bf16 %v7722_v56 }
  0xa1   : > { %v7748_v36 = vpop.permute.xlu1 %6414  ;;  %v7750_v39 = vpop.permute.xlu0 %6409  ;;  %v1627_v61 = vsel %vm1624_vm7, %v1594_v6, %v6386_v33 }
  0xa2   : > { %v6412_v45 = vunpack.i.h.bf16 %v7750_v39  ;;  %v6411_v44 = vunpack.i.l.bf16 %v7750_v39 }
  0xa3   : > { %6704 = vrot.lane.b32.xlu1 %v7720_v54, %s7281_s15  ;;  %6699 = vrot.lane.b32.xlu0 %v7666_v53, %s7281_s15  ;;  %v6382_v53 = vunpack.i.h.bf16 %v7695_v21  ;;  %v6387_v21 = vunpack.i.h.bf16 %v7691_v13  ;;  %v1625_v13 = vsel %vm1624_vm7, %v1592_v37, %v6381_v17 }
  0xa4   : > { %v1658_v22 = vsel %vm1657_vm8, %v1625_v13, %v6401_v52 }
  0xa5   : > { %v7777_v16 = vpop.permute.xlu1 %6424  ;;  %v6420_v25 = vpop.permute.xlu0 %6419  ;;  %v1626_v8 = vsel %vm1624_vm7, %v1593_v30, %v6382_v53  ;;  %v1628_v53 = vsel %vm1624_vm7, %v1595_v38, %v6387_v21  ;;  %v1691_v6 = vsel %vm1690_vm9, %v1658_v22, %v6411_v44  ;;  %v1660_v44 = vsel %vm1657_vm8, %v1627_v61, %v6406_v11 }
  0xa6   : > { %v6422_v12 = vunpack.i.h.bf16 %v6420_v25  ;;  %v6421_v63 = vunpack.i.l.bf16 %v6420_v25  ;;  %v1659_v39 = vsel %vm1657_vm8, %v1626_v8, %v6402_v40  ;;  %v6416_v25 = vunpack.i.l.bf16 %v7748_v36  ;;  %v408_v40 = vld [vmem:[%s7438_s14 + $0xb8] sm:$0xff] }
  0xa7   : > { %6714 = vrot.lane.b32.xlu1 %v7756_v41, %s7283_s22  ;;  %6709 = vrot.lane.b32.xlu0 %v7675_v57, %s7283_s22  ;;  %v6407_v57 = vunpack.i.h.bf16 %v7722_v56  ;;  %v6417_v56 = vunpack.i.h.bf16 %v7748_v36  ;;  %v1692_v21 = vsel %vm1690_vm9, %v1659_v39, %v6412_v45  ;;  %v6427_v33 = vunpack.i.h.bf16 %v7777_v16 }
  0xa8   : > { %v6426_v30 = vunpack.i.l.bf16 %v7777_v16  ;;  %v1724_v8 = vsel %vm1723_vm10, %v1691_v6, %v6421_v63  ;;  %v1725_v36 = vsel %vm1723_vm10, %v1692_v21, %v6422_v12  ;;  %v1693_v6 = vsel %vm1690_vm9, %v1660_v44, %v6416_v25 }
  0xa9   : > { %v6435_v7 = vpop.permute.xlu1 %6434  ;;  %v6430_v5 = vpop.permute.xlu0 %6429  ;;  %v1661_v39 = vsel %vm1657_vm8, %v1628_v53, %v6407_v57 }
  0xaa   : > { %v6432_v18 = vunpack.i.h.bf16 %v6430_v5  ;;  %v6431_v17 = vunpack.i.l.bf16 %v6430_v5  ;;  %v6437_v52 = vunpack.i.h.bf16 %v6435_v7  ;;  %v6436_v13 = vunpack.i.l.bf16 %v6435_v7 }
  0xab   : > { %6724 = vrot.lane.b32.xlu1 %v7758_v42, %s10174_s24  ;;  %6719 = vrot.lane.b32.xlu0 %v7688_v10, %s10174_s24  ;;  %v1694_v7 = vsel %vm1690_vm9, %v1661_v39, %v6417_v56  ;;  %v753_v56 = vrot.slane %v7728_v43, 2 }
  0xac   : > { %v1757_v45 = vsel %vm1756_vm11, %v1724_v8, %v6431_v17  ;;  %v1758_v16 = vsel %vm1756_vm11, %v1725_v36, %v6432_v18  ;;  %v1726_v18 = vsel %vm1723_vm10, %v1693_v6, %v6426_v30  ;;  %v1727_v11 = vsel %vm1723_vm10, %v1694_v7, %v6427_v33  ;;  %v409_v8 = vld [vmem:[%s7438_s14 + $0xc0] sm:$0xff]  ;;  %v410_v36 = vld [vmem:[%s7438_s14 + $0xc8] sm:$0xff] }
  0xad   : > { %v7820_v37 = vpop.permute.xlu1 %6444  ;;  %v6440_v10 = vpop.permute.xlu0 %6439  ;;  %v1759_v53 = vsel %vm1756_vm11, %v1726_v18, %v6436_v13  ;;  %v1760_v17 = vsel %vm1756_vm11, %v1727_v11, %v6437_v52  ;;  %v7873_v13 = vsel %vm450_vm0, 0.0, %v486_v0 }
  0xae   : > { %v6442_v38 = vunpack.i.h.bf16 %v6440_v10  ;;  %v6441_v5 = vunpack.i.l.bf16 %v6440_v10  ;;  %v487_v10 = vrot.slane %v408_v40, 7 }
  0xaf   : > { %6734 = vrot.lane.b32.xlu1 %v7760_v4, %s7285_s25  ;;  %6729 = vrot.lane.b32.xlu0 %v7720_v54, %s7285_s25 }
  0xb0   : > { %v1790_v63 = vsel %vm1789_vm12, %v1757_v45, %v6441_v5  ;;  %v1791_v12 = vsel %vm1789_vm12, %v1758_v16, %v6442_v38  ;;  %v754_v38 = vrot.slane %v7725_v59, 2  ;;  %v756_v5 = vrot.slane %v7731_v62, 2 }
  0xb1   : > { %v7837_v22 = vpop.permute.xlu1 %6454  ;;  %v6450_v21 = vpop.permute.xlu0 %6449  ;;  %v1822_v54 = vpack.c.bf16 %v1791_v12, %v1790_v63  ;;  %v579_v62 = vsel %vm450_vm0, %v487_v10, 0.0  ;;  %v489_v45 = vrot.slane %v409_v8, 7  ;;  %v490_v16 = vrot.slane %v410_v36, 7 }
  0xb2   : > { %v6452_v57 = vunpack.i.h.bf16 %v6450_v21  ;;  %v6451_v61 = vunpack.i.l.bf16 %v6450_v21  ;;  %v755_v39 = vsel %vm697_vm1, %v753_v56, %v754_v38  ;;  %v757_v63 = vsel %vm697_vm1, %v754_v38, %v756_v5 }
  0xb3   : > { %6744 = vrot.lane.b32.xlu1 %v7789_v35, %s7286_s29  ;;  %6739 = vrot.lane.b32.xlu0 %v7756_v41, %s7286_s29  ;;  %v7868_v41 = vsel %vm450_vm0, %v486_v0, %v487_v10  ;;  %v677_v0 = vrot.slane %v7873_v13, 1  ;;  %v680_v6 = vrot.slane %v579_v62, 1  ;;  %v7891_v7 = vpack.i.bf16 %v757_v63, %v755_v39 }
  0xb4   : > { %6218 = vmatprep.mubr.msk.bf16.mxu0 %vm1852_vm13, %v1822_v54  ;;  %v1792_v25 = vsel %vm1789_vm12, %v1759_v53, %v6451_v61  ;;  %v1793_v33 = vsel %vm1789_vm12, %v1760_v17, %v6452_v57  ;;  %v678_v55 = vrot.slane %v7868_v41, 1  ;;  %v7894_v21 = vsel %vm450_vm0, %v489_v45, %v490_v16 }
  0xb5   : > { %v7855_v30 = vpop.permute.xlu1 %6464  ;;  %v7861_v40 = vpop.permute.xlu0 %6459  ;;  %v1823_v52 = vpack.c.bf16 %v1793_v33, %v1792_v25  ;;  %v7897_v54 = vsel %vm450_vm0, 0.0, %v489_v45  ;;  %v7900_v10 = vsel %vm450_vm0, %v490_v16, 0.0  ;;  %v758_v57 = vrot.slane %v7873_v13, 2 }
  0xb6   : > { %v759_v61 = vrot.slane %v7868_v41, 2  ;;  %v761_v53 = vrot.slane %v579_v62, 2  ;;  %v681_v17 = vsel %vm616_vm2, %v678_v55, %v680_v6  ;;  %v682_v56 = vrot.slane %v7897_v54, 1 }
  0xb7   : > { %6754 = vrot.lane.b32.xlu1 %v7791_v34, %s7287_s30  ;;  %6749 = vrot.lane.b32.xlu0 %v7758_v42, %s7287_s30  ;;  %v683_v25 = vrot.slane %v7894_v21, 1  ;;  %v685_v33 = vrot.slane %v7900_v10, 1  ;;  %v7921_v5 = vpack.i.bf16 %v7868_v41, %v7873_v13  ;;  %v6457_v45 = vunpack.i.h.bf16 %v7837_v22 }
  0xb8   : > { %6219 = vmatmul.mubr.msk.bf16.vlgmr.msra.gmra.mxu0 %vm1852_vm13, %v1823_v52  ;;  %v760_v52 = vsel %vm697_vm1, %v758_v57, %v759_v61  ;;  %v762_v62 = vsel %vm697_vm1, %v759_v61, %v761_v53  ;;  %v6456_v16 = vunpack.i.l.bf16 %v7837_v22  ;;  %v6446_v6 = vunpack.i.l.bf16 %v7820_v37 }
  0xb9   : > { %v7879_v44 = vpop.permute.xlu1 %6474  ;;  %v7883_v12 = vpop.permute.xlu0 %6469  ;;  %v684_v39 = vsel %vm616_vm2, %v682_v56, %v683_v25  ;;  %v686_v63 = vsel %vm616_vm2, %v683_v25, %v685_v33  ;;  %v6466_v57 = vunpack.i.l.bf16 %v7855_v30  ;;  %v6462_v22 = vunpack.i.h.bf16 %v7861_v40 }
  0xba   : > { %v6461_v61 = vunpack.i.l.bf16 %v7861_v40  ;;  %v7952_v56 = vpack.i.bf16 %v7894_v21, %v7897_v54  ;;  %v6476_v25 = vunpack.i.l.bf16 %v7879_v44  ;;  %v7956_v33 = vpack.i.bf16 %v686_v63, %v684_v39 }
  0xbb   : > { %6764 = vrot.lane.b32.xlu1 %v7758_v42, %s7282_s16  ;;  %6759 = vrot.lane.b32.xlu0 %v7760_v4, %s7288_s12  ;;  %v679_v42 = vsel %vm616_vm2, %v677_v0, %v678_v55  ;;  %v7936_v0 = vld [vmem:[%s7438_s14 + $0xd0] sm:$0xff]  ;;  %v6447_v55 = vunpack.i.h.bf16 %v7820_v37  ;;  %v6477_v37 = vunpack.i.h.bf16 %v7879_v44  ;;  %v1566_v40 = vsel %vm1558_vm5, %v7496_v60, %v6457_v45 }
  0xbc   : > { %v7925_v36 = vpack.i.bf16 %v681_v17, %v679_v42  ;;  %v6467_v42 = vunpack.i.h.bf16 %v7855_v30  ;;  %v7948_v17 = vpack.i.bf16 %v762_v62, %v760_v52  ;;  %v1565_v52 = vsel %vm1558_vm5, %v7492_v58, %v6456_v16 }
  0xbd   : > { %v7902_v18 = vpop.permute.xlu1 %6484  ;;  %v7904_v11 = vpop.permute.xlu0 %6479  ;;  %v6472_v62 = vunpack.i.h.bf16 %v7883_v12  ;;  %v6471_v9 = vunpack.i.l.bf16 %v7883_v12  ;;  %v1564_v44 = vsel %vm1558_vm5, %v7455_v28, %v6447_v55  ;;  %v1563_v39 = vsel %vm1558_vm5, %v7458_v29, %v6446_v6 }
  0xbe   : > { %v1598_v63 = vsel %vm1591_vm6, %v1565_v52, %v6466_v57  ;;  %v1599_v60 = vsel %vm1591_vm6, %v1566_v40, %v6467_v42  ;;  %v1597_v58 = vsel %vm1591_vm6, %v1564_v44, %v6462_v22  ;;  %v1596_v12 = vsel %vm1591_vm6, %v1563_v39, %v6461_v61 }
  0xbf   : > { %6774 = vrot.lane.b32.xlu1 %v7791_v34, %s7282_s16  ;;  %6769 = vrot.lane.b32.xlu0 %v7891_v7, %s7288_s12  ;;  %v6482_v45 = vunpack.i.h.bf16 %v7904_v11  ;;  %v6481_v16 = vunpack.i.l.bf16 %v7904_v11  ;;  %v1631_v28 = vsel %vm1624_vm7, %v1598_v63, %v6476_v25  ;;  %v1632_v29 = vsel %vm1624_vm7, %v1599_v60, %v6477_v37 }
  0xc0   : > { %v1630_v57 = vsel %vm1624_vm7, %v1597_v58, %v6472_v62  ;;  %v6487_v11 = vunpack.i.h.bf16 %v7902_v18  ;;  %v6486_v25 = vunpack.i.l.bf16 %v7902_v18 }
  0xc1   : > { %v7917_v38 = vpop.permute.xlu1 %6494  ;;  %v7923_v8 = vpop.permute.xlu0 %6489 }
  0xc2   : > { %v6492_v55 = vunpack.i.h.bf16 %v7923_v8  ;;  %v6491_v6 = vunpack.i.l.bf16 %v7923_v8  ;;  %v6497_v52 = vunpack.i.h.bf16 %v7917_v38 }
  0xc3   : > { %6784 = vrot.lane.b32.xlu1 %v7891_v7, %s7281_s15  ;;  %6779 = vrot.lane.b32.xlu0 %v7760_v4, %s7281_s15 }
  0xc5   : > { %v7946_v53 = vpop.permute.xlu1 %6504  ;;  %v6500_v30 = vpop.permute.xlu0 %6499 }
  0xc6   : > { %v6502_v22 = vunpack.i.h.bf16 %v6500_v30  ;;  %v6501_v61 = vunpack.i.l.bf16 %v6500_v30  ;;  %v6496_v30 = vunpack.i.l.bf16 %v7917_v38  ;;  %v6507_v39 = vunpack.i.h.bf16 %v7946_v53  ;;  %v412_v38 = vld [vmem:[%s7438_s14 + $0xd8] sm:$0xff] }
  0xc7   : > { %6794 = vrot.lane.b32.xlu1 %v7921_v5, %s7283_s22  ;;  %6789 = vrot.lane.b32.xlu0 %v7789_v35, %s7283_s22  ;;  %v1629_v35 = vsel %vm1624_vm7, %v1596_v12, %v6471_v9  ;;  %v1663_v9 = vsel %vm1657_vm8, %v1630_v57, %v6482_v45  ;;  %v6506_v63 = vunpack.i.l.bf16 %v7946_v53  ;;  %v1664_v53 = vsel %vm1657_vm8, %v1631_v28, %v6486_v25 }
  0xc8   : > { %v1662_v8 = vsel %vm1657_vm8, %v1629_v35, %v6481_v16  ;;  %v1696_v18 = vsel %vm1690_vm9, %v1663_v9, %v6492_v55  ;;  %v1665_v35 = vsel %vm1657_vm8, %v1632_v29, %v6487_v11 }
  0xc9   : > { %v6515_v4 = vpop.permute.xlu1 %6514  ;;  %v6510_v42 = vpop.permute.xlu0 %6509  ;;  %v1695_v44 = vsel %vm1690_vm9, %v1662_v8, %v6491_v6  ;;  %v1729_v58 = vsel %vm1723_vm10, %v1696_v18, %v6502_v22  ;;  %v1697_v8 = vsel %vm1690_vm9, %v1664_v53, %v6496_v30 }
  0xca   : > { %v6512_v40 = vunpack.i.h.bf16 %v6510_v42  ;;  %v6511_v37 = vunpack.i.l.bf16 %v6510_v42  ;;  %v1728_v60 = vsel %vm1723_vm10, %v1695_v44, %v6501_v61  ;;  %v6517_v16 = vunpack.i.h.bf16 %v6515_v4 }
  0xcb   : > { %6804 = vrot.lane.b32.xlu1 %v7925_v36, %s10174_s24  ;;  %6799 = vrot.lane.b32.xlu0 %v7791_v34, %s10174_s24  ;;  %v6516_v42 = vunpack.i.l.bf16 %v6515_v4  ;;  %v1698_v4 = vsel %vm1690_vm9, %v1665_v35, %v6497_v52  ;;  %v763_v52 = vrot.slane %v7897_v54, 2 }
  0xcc   : > { %v1761_v6 = vsel %vm1756_vm11, %v1728_v60, %v6511_v37  ;;  %v1762_v55 = vsel %vm1756_vm11, %v1729_v58, %v6512_v40  ;;  %v493_v40 = vrot.slane %v412_v38, 7  ;;  %v1731_v28 = vsel %vm1723_vm10, %v1698_v4, %v6507_v39  ;;  %v413_v60 = vld [vmem:[%s7438_s14 + $0xe0] sm:$0xff]  ;;  %v414_v58 = vld [vmem:[%s7438_s14 + $0xe8] sm:$0xff] }
  0xcd   : > { %v7995_v62 = vpop.permute.xlu1 %6524  ;;  %v6520_v34 = vpop.permute.xlu0 %6519  ;;  %v1764_v30 = vsel %vm1756_vm11, %v1731_v28, %v6517_v16 }
  0xce   : > { %v6522_v12 = vunpack.i.h.bf16 %v6520_v34  ;;  %v6521_v45 = vunpack.i.l.bf16 %v6520_v34  ;;  %v766_v34 = vrot.slane %v7900_v10, 2  ;;  %v581_v10 = vsel %vm450_vm0, %v493_v40, 0.0 }
  0xcf   : > { %6814 = vrot.lane.b32.xlu1 %v7948_v17, %s7285_s25  ;;  %6809 = vrot.lane.b32.xlu0 %v7891_v7, %s7285_s25  ;;  %v1730_v7 = vsel %vm1723_vm10, %v1697_v8, %v6506_v63  ;;  %v764_v63 = vrot.slane %v7894_v21, 2  ;;  %v690_v4 = vrot.slane %v581_v10, 1 }
  0xd0   : > { %v1794_v57 = vsel %vm1789_vm12, %v1761_v6, %v6521_v45  ;;  %v1795_v22 = vsel %vm1789_vm12, %v1762_v55, %v6522_v12  ;;  %v1763_v25 = vsel %vm1756_vm11, %v1730_v7, %v6516_v42  ;;  %v495_v6 = vrot.slane %v413_v60, 7 }
  0xd1   : > { %v8014_v61 = vpop.permute.xlu1 %6534  ;;  %v6530_v37 = vpop.permute.xlu0 %6529  ;;  %v1824_v9 = vpack.c.bf16 %v1795_v22, %v1794_v57  ;;  %v496_v55 = vrot.slane %v414_v58, 7  ;;  %v765_v35 = vsel %vm697_vm1, %v763_v52, %v764_v63  ;;  %v767_v57 = vsel %vm697_vm1, %v764_v63, %v766_v34 }
  0xd2   : > { %v6532_v29 = vunpack.i.h.bf16 %v6530_v37  ;;  %v6531_v11 = vunpack.i.l.bf16 %v6530_v37  ;;  %v8068_v7 = vpack.i.bf16 %v767_v57, %v765_v35 }
  0xd3   : > { %6824 = vrot.lane.b32.xlu1 %v7952_v56, %s7286_s29  ;;  %6819 = vrot.lane.b32.xlu0 %v7921_v5, %s7286_s29  ;;  %v10175_v5 = vrot.slane %v7936_v0, 7  ;;  %v8071_v28 = vsel %vm450_vm0, %v495_v6, %v496_v55 }
  0xd4   : > { %6222 = vmatprep.mubr.msk.bf16.mxu0 %vm1852_vm13, %v1824_v9  ;;  %v1797_v44 = vsel %vm1789_vm12, %v1764_v30, %v6532_v29  ;;  %v1796_v18 = vsel %vm1789_vm12, %v1763_v25, %v6531_v11  ;;  %v8074_v29 = vsel %vm450_vm0, 0.0, %v495_v6  ;;  %v8077_v11 = vsel %vm450_vm0, %v496_v55, 0.0 }
  0xd5   : > { %v8030_v39 = vpop.permute.xlu1 %6544  ;;  %v8036_v12 = vpop.permute.xlu0 %6539  ;;  %v1825_v45 = vpack.c.bf16 %v1797_v44, %v1796_v18  ;;  %v8041_v38 = vsel %vm450_vm0, 0.0, %v10175_v5  ;;  %v10176_v16 = vmov %v10175_v5  ;;  %v692_v63 = vrot.slane %v8074_v29, 1 }
  0xd6   : > { %v8048_v42 = vsel %vm450_vm0, %v10176_v16, %v493_v40  ;;  %v687_v0 = vrot.slane %v8041_v38, 1  ;;  %v768_v37 = vrot.slane %v8041_v38, 2  ;;  %v771_v40 = vrot.slane %v581_v10, 2 }
  0xd7   : > { %6834 = vrot.lane.b32.xlu1 %v7956_v33, %s7287_s30  ;;  %6829 = vrot.lane.b32.xlu0 %v7925_v36, %s7287_s30  ;;  %v688_v8 = vrot.slane %v8048_v42, 1  ;;  %v769_v9 = vrot.slane %v8048_v42, 2  ;;  %v693_v34 = vrot.slane %v8071_v28, 1  ;;  %v695_v60 = vrot.slane %v8077_v11, 1 }
  0xd8   : > { %6223 = vmatmul.mubr.msk.bf16.gmra.mxu0 %vm1852_vm13, %v1825_v45  ;;  %v8098_v5 = vpack.i.bf16 %v8048_v42, %v8041_v38  ;;  %v6537_v6 = vunpack.i.h.bf16 %v8014_v61  ;;  %v6536_v55 = vunpack.i.l.bf16 %v8014_v61  ;;  %v6542_v61 = vunpack.i.h.bf16 %v8036_v12 }
  0xd9   : > { %v8054_v53 = vpop.permute.xlu1 %6554  ;;  %v8059_v22 = vpop.permute.xlu0 %6549  ;;  %v691_v52 = vsel %vm616_vm2, %v688_v8, %v690_v4  ;;  %v770_v44 = vsel %vm697_vm1, %v768_v37, %v769_v9  ;;  %v772_v18 = vsel %vm697_vm1, %v769_v9, %v771_v40  ;;  %v694_v35 = vsel %vm616_vm2, %v692_v63, %v693_v34 }
  0xda   : > { %v8102_v10 = vpack.i.bf16 %v772_v18, %v770_v44  ;;  %v696_v57 = vsel %vm616_vm2, %v693_v34, %v695_v60  ;;  %v6547_v4 = vunpack.i.h.bf16 %v8030_v39  ;;  %v6546_v37 = vunpack.i.l.bf16 %v8030_v39 }
  0xdb   : > { %6844 = vrot.lane.b32.xlu1 %v7925_v36, %s7282_s16  ;;  %6839 = vrot.lane.b32.xlu0 %v7948_v17, %s7288_s12  ;;  %v689_v36 = vsel %vm616_vm2, %v687_v0, %v688_v8  ;;  %v6527_v0 = vunpack.i.h.bf16 %v7995_v62  ;;  %v6526_v8 = vunpack.i.l.bf16 %v7995_v62  ;;  %v6541_v9 = vunpack.i.l.bf16 %v8036_v12 }
  0xdc   : > { %v8100_v16 = vpack.i.bf16 %v691_v52, %v689_v36  ;;  %v8122_v36 = vpack.i.bf16 %v8071_v28, %v8074_v29  ;;  %v6557_v52 = vunpack.i.h.bf16 %v8054_v53  ;;  %v6556_v62 = vunpack.i.l.bf16 %v8054_v53 }
  0xdd   : > { %v8079_v25 = vpop.permute.xlu1 %6564  ;;  %v8081_v30 = vpop.permute.xlu0 %6559  ;;  %v8126_v18 = vpack.i.bf16 %v696_v57, %v694_v35  ;;  %v1569_v39 = vsel %vm1558_vm5, %v7547_v49, %v6536_v55  ;;  %v6552_v12 = vunpack.i.h.bf16 %v8059_v22  ;;  %v6551_v63 = vunpack.i.l.bf16 %v8059_v22 }
  0xde   : > { %v1568_v34 = vsel %vm1558_vm5, %v7525_v27, %v6527_v0  ;;  %v1567_v53 = vsel %vm1558_vm5, %v7522_v26, %v6526_v8  ;;  %v1602_v60 = vsel %vm1591_vm6, %v1569_v39, %v6546_v37  ;;  %v6561_v55 = vunpack.i.l.bf16 %v8081_v30 }
  0xdf   : > { %6854 = vrot.lane.b32.xlu1 %v7956_v33, %s7282_s16  ;;  %6849 = vrot.lane.b32.xlu0 %v8068_v7, %s7288_s12  ;;  %v1601_v49 = vsel %vm1591_vm6, %v1568_v34, %v6542_v61  ;;  %v1600_v22 = vsel %vm1591_vm6, %v1567_v53, %v6541_v9  ;;  %v1635_v27 = vsel %vm1624_vm7, %v1602_v60, %v6556_v62  ;;  %v6567_v9 = vunpack.i.h.bf16 %v8079_v25 }
  0xe1   : > { %v8094_v58 = vpop.permute.xlu1 %6574  ;;  %v6570_v45 = vpop.permute.xlu0 %6569 }
  0xe2   : > { %v6572_v57 = vunpack.i.h.bf16 %v6570_v45  ;;  %v6571_v0 = vunpack.i.l.bf16 %v6570_v45  ;;  %v6577_v39 = vunpack.i.h.bf16 %v8094_v58 }
  0xe3   : > { %6864 = vrot.lane.b32.xlu1 %v8068_v7, %s7281_s15  ;;  %6859 = vrot.lane.b32.xlu0 %v7948_v17, %s7281_s15  ;;  %v1570_v17 = vsel %vm1558_vm5, %v7550_v50, %v6537_v6  ;;  %v6562_v6 = vunpack.i.h.bf16 %v8081_v30  ;;  %v6566_v30 = vunpack.i.l.bf16 %v8079_v25 }
  0xe4   : > { %v1603_v50 = vsel %vm1591_vm6, %v1570_v17, %v6547_v4  ;;  %v1633_v4 = vsel %vm1624_vm7, %v1600_v22, %v6551_v63 }
  0xe5   : > { %v8118_v40 = vpop.permute.xlu1 %6584  ;;  %v6580_v44 = vpop.permute.xlu0 %6579  ;;  %v1636_v26 = vsel %vm1624_vm7, %v1603_v50, %v6557_v52  ;;  %v1666_v45 = vsel %vm1657_vm8, %v1633_v4, %v6561_v55 }
  0xe6   : > { %v6582_v37 = vunpack.i.h.bf16 %v6580_v44  ;;  %v6581_v61 = vunpack.i.l.bf16 %v6580_v44  ;;  %v6576_v44 = vunpack.i.l.bf16 %v8094_v58  ;;  %v1699_v63 = vsel %vm1690_vm9, %v1666_v45, %v6571_v0  ;;  %v415_v45 = vld [vmem:[%s7438_s14 + $0xf0] sm:$0xff] }
  0xe7   : > { %6874 = vrot.lane.b32.xlu1 %v8098_v5, %s7283_s22  ;;  %6869 = vrot.lane.b32.xlu0 %v7952_v56, %s7283_s22  ;;  %v1634_v56 = vsel %vm1624_vm7, %v1601_v49, %v6552_v12  ;;  %v6587_v25 = vunpack.i.h.bf16 %v8118_v40  ;;  %v6586_v53 = vunpack.i.l.bf16 %v8118_v40  ;;  %v1668_v40 = vsel %vm1657_vm8, %v1635_v27, %v6566_v30 }
  0xe8   : > { %v1667_v52 = vsel %vm1657_vm8, %v1634_v56, %v6562_v6  ;;  %v1669_v0 = vsel %vm1657_vm8, %v1636_v26, %v6567_v9 }
  0xe9   : > { %v6595_v35 = vpop.permute.xlu1 %6594  ;;  %v6590_v8 = vpop.permute.xlu0 %6589  ;;  %v1700_v34 = vsel %vm1690_vm9, %v1667_v52, %v6572_v57 }
  0xea   : > { %v6592_v17 = vunpack.i.h.bf16 %v6590_v8  ;;  %v6591_v62 = vunpack.i.l.bf16 %v6590_v8  ;;  %v1733_v50 = vsel %vm1723_vm10, %v1700_v34, %v6582_v37  ;;  %v6597_v58 = vunpack.i.h.bf16 %v6595_v35 }
  0xeb   : > { %6884 = vrot.lane.b32.xlu1 %v8100_v16, %s10174_s24  ;;  %6879 = vrot.lane.b32.xlu0 %v7956_v33, %s10174_s24  ;;  %v1732_v33 = vsel %vm1723_vm10, %v1699_v63, %v6581_v61  ;;  %v6596_v6 = vunpack.i.l.bf16 %v6595_v35  ;;  %v1701_v37 = vsel %vm1690_vm9, %v1668_v40, %v6576_v44  ;;  %v1702_v35 = vsel %vm1690_vm9, %v1669_v0, %v6577_v39 }
  0xec   : > { %v1765_v55 = vsel %vm1756_vm11, %v1732_v33, %v6591_v62  ;;  %v1766_v57 = vsel %vm1756_vm11, %v1733_v50, %v6592_v17  ;;  %v773_v17 = vrot.slane %v8074_v29, 2  ;;  %v1734_v27 = vsel %vm1723_vm10, %v1701_v37, %v6586_v53 }
  0xed   : > { %v8162_v12 = vpop.permute.xlu1 %6604  ;;  %v6600_v60 = vpop.permute.xlu0 %6599  ;;  %v1735_v26 = vsel %vm1723_vm10, %v1702_v35, %v6587_v25  ;;  %v1767_v52 = vsel %vm1756_vm11, %v1734_v27, %v6596_v6  ;;  %v774_v39 = vrot.slane %v8071_v28, 2  ;;  %v776_v63 = vrot.slane %v8077_v11, 2 }
  0xee   : > { %v6602_v49 = vunpack.i.h.bf16 %v6600_v60  ;;  %v6601_v22 = vunpack.i.l.bf16 %v6600_v60  ;;  %v1768_v44 = vsel %vm1756_vm11, %v1735_v26, %v6597_v58  ;;  %v498_v60 = vrot.slane %v415_v45, 7 }
  0xef   : > { %6894 = vrot.lane.b32.xlu1 %v8102_v10, %s7285_s25  ;;  %6889 = vrot.lane.b32.xlu0 %v8068_v7, %s7285_s25  ;;  %v416_v7 = vld [vmem:[%s7438_s14 + $0xf8] sm:$0xff]  ;;  %s7295_s14 = smov [#allocation2]  }
  0xf0   : > { %v1798_v8 = vsel %vm1789_vm12, %v1765_v55, %v6601_v22  ;;  %v1799_v4 = vsel %vm1789_vm12, %v1766_v57, %v6602_v49  ;;  %v499_v33 = vrot.slane %v416_v7, 7  ;;  %v777_v22 = vsel %vm697_vm1, %v774_v39, %v776_v63  ;;  %s7222_s0 = sshll.u32 %s7295_s14, 4  ;;  %s7223_s0 = int_to_ptr.vmem [resolvable:$false] %s7222_s0 }
  0xf1   : > { %v8180_v56 = vpop.permute.xlu1 %6614  ;;  %v6610_v61 = vpop.permute.xlu0 %6609  ;;  %v1826_v62 = vpack.c.bf16 %v1799_v4, %v1798_v8  ;;  %v566_v6 = vsel %vm450_vm0, 0.0, %v498_v60  ;;  %v6607_v63 = vunpack.i.h.bf16 %v8162_v12 }
  0xf2   : > { %v6612_v9 = vunpack.i.h.bf16 %v6610_v61  ;;  %v6611_v30 = vunpack.i.l.bf16 %v6610_v61  ;;  %v500_v58 = vsel %vm450_vm0, %v498_v60, %v499_v33  ;;  %v583_v55 = vsel %vm450_vm0, %v499_v33, 0.0 }
  0xf3   : > { %6904 = vrot.lane.b32.xlu1 %v8122_v36, %s7286_s29  ;;  %6899 = vrot.lane.b32.xlu0 %v8098_v5, %s7286_s29  ;;  %v775_v5 = vsel %vm697_vm1, %v773_v17, %v774_v39  ;;  %v780_v0 = vrot.slane %v566_v6, 1  ;;  %v781_v8 = vrot.slane %v500_v58, 1  ;;  %v783_v4 = vrot.slane %v583_v55, 1 }
  0xf4   : > { %6226 = vmatprep.mubr.msk.bf16.mxu0 %vm1852_vm13, %v1826_v62  ;;  %v1801_v34 = vsel %vm1789_vm12, %v1768_v44, %v6612_v9  ;;  %v1800_v25 = vsel %vm1789_vm12, %v1767_v52, %v6611_v30  ;;  %v8214_v40 = vpack.i.bf16 %v777_v22, %v775_v5  ;;  %v785_v61 = vrot.slane %v566_v6, 2 }
  0xf5   : > { %v6625_v53 = vpop.permute.xlu1 %6624  ;;  %v6620_v50 = vpop.permute.xlu0 %6619  ;;  %v1827_v49 = vpack.c.bf16 %v1801_v34, %v1800_v25  ;;  %v786_v62 = vrot.slane %v500_v58, 2  ;;  %v788_v17 = vrot.slane %v583_v55, 2  ;;  %v784_v45 = vsel %vm616_vm2, %v781_v8, %v783_v4 }
  0xf6   : > { %v8228_v26 = vpack.i.bf16 %v500_v58, %v566_v6  ;;  %v6617_v52 = vunpack.i.h.bf16 %v8180_v56  ;;  %v6616_v44 = vunpack.i.l.bf16 %v8180_v56  ;;  %v6606_v34 = vunpack.i.l.bf16 %v8162_v12 }
  0xf7   : > { %6914 = vrot.lane.b32.xlu1 %v8126_v18, %s7287_s30  ;;  %6909 = vrot.lane.b32.xlu0 %v8100_v16, %s7287_s30  ;;  %v787_v9 = vsel %vm697_vm1, %v785_v61, %v786_v62  ;;  %v789_v30 = vsel %vm697_vm1, %v786_v62, %v788_v17  ;;  %v6627_v25 = vunpack.i.h.bf16 %v6625_v53  ;;  %v6626_v60 = vunpack.i.l.bf16 %v6625_v53 }
  0xf8   : > { %6227 = vmatmul.mubr.msk.bf16.gmra.mxu0 %vm1852_vm13, %v1827_v49  ;;  %v6622_v33 = vunpack.i.h.bf16 %v6620_v50  ;;  %v6621_v49 = vunpack.i.l.bf16 %v6620_v50  ;;  %v8244_v22 = vpack.i.bf16 %v789_v30, %v787_v9  ;;  %v6983_v55 = vpack.i.bf16 %v7405_v1, %v7410_v2 }
  0xf9   : > { %v6635_v11 = vpop.permute.xlu1 %6634  ;;  %v6630_v57 = vpop.permute.xlu0 %6629  ;;  %v1574_v12 = vsel %vm1558_vm5, %v7605_v48, %v6617_v52  ;;  %v1573_v53 = vsel %vm1558_vm5, %v7608_v51, %v6616_v44  ;;  %v1572_v50 = vsel %vm1558_vm5, %v7583_v24, %v6607_v63 }
  0xfa   : > { %v6637_v56 = vunpack.i.h.bf16 %v6635_v11  ;;  %v6636_v58 = vunpack.i.l.bf16 %v6635_v11  ;;  %v1571_v11 = vsel %vm1558_vm5, %v7580_v23, %v6606_v34  ;;  %v1607_v4 = vsel %vm1591_vm6, %v1574_v12, %v6627_v25 }
  0xfb   : > { %6924 = vrot.lane.b32.xlu1 %v8100_v16, %s7282_s16  ;;  %6919 = vrot.lane.b32.xlu0 %v8102_v10, %s7288_s12  ;;  %v782_v16 = vsel %vm616_vm2, %v780_v0, %v781_v8  ;;  %v6632_v0 = vunpack.i.h.bf16 %v6630_v57  ;;  %v1606_v8 = vsel %vm1591_vm6, %v1573_v53, %v6626_v60  ;;  %v1605_v48 = vsel %vm1591_vm6, %v1572_v50, %v6622_v33 }
  0xfc   : > { %v8236_v39 = vpack.i.bf16 %v784_v45, %v782_v16  ;;  %v1604_v51 = vsel %vm1591_vm6, %v1571_v11, %v6621_v49  ;;  %v1639_v24 = vsel %vm1624_vm7, %v1606_v8, %v6636_v58  ;;  %v1640_v23 = vsel %vm1624_vm7, %v1607_v4, %v6637_v56 }
  0xfd   : > { %v8216_v37 = vpop.permute.xlu1 %6644  ;;  %v8218_v35 = vpop.permute.xlu0 %6639 }
  0xfe   : > { %v6641_v61 = vunpack.i.l.bf16 %v8218_v35  ;;  %v6647_v44 = vunpack.i.h.bf16 %v8216_v37 }
  0xff   : > { %6934 = vrot.lane.b32.xlu1 %v8126_v18, %s7282_s16  ;;  %6929 = vrot.lane.b32.xlu0 %v8214_v40, %s7288_s12  ;;  %s7291_s16 = smov 32  }
 0x100   : > { %v1673_v4 = vsel %vm1657_vm8, %v1640_v23, %v6647_v44 }
 0x101   : > { %v8226_v7 = vpop.permute.xlu1 %6654  ;;  %v6650_v27 = vpop.permute.xlu0 %6649 }
 0x102   : > { %v6652_v17 = vunpack.i.h.bf16 %v6650_v27  ;;  %v6651_v16 = vunpack.i.l.bf16 %v6650_v27  ;;  %v6657_v60 = vunpack.i.h.bf16 %v8226_v7  ;;  %v6656_v33 = vunpack.i.l.bf16 %v8226_v7 }
 0x103   : > { %6944 = vrot.lane.b32.xlu1 %v8214_v40, %s7281_s15  ;;  %6939 = vrot.lane.b32.xlu0 %v8102_v10, %s7281_s15  ;;  %v6631_v10 = vunpack.i.l.bf16 %v6630_v57  ;;  %v6642_v57 = vunpack.i.h.bf16 %v8218_v35  ;;  %v6646_v35 = vunpack.i.l.bf16 %v8216_v37  ;;  %s377_s15 = sand.u32 1, %s7270_s18  }
 0x105   : > { %v8242_v5 = vpop.permute.xlu1 %6664  ;;  %v6660_v6 = vpop.permute.xlu0 %6659  ;;  %v1637_v9 = vsel %vm1624_vm7, %v1604_v51, %v6631_v10 }
 0x106   : > { %v6662_v30 = vunpack.i.h.bf16 %v6660_v6  ;;  %v6661_v52 = vunpack.i.l.bf16 %v6660_v6  ;;  %v1670_v27 = vsel %vm1657_vm8, %v1637_v9, %v6641_v61  ;;  %v6667_v37 = vunpack.i.h.bf16 %v8242_v5 }
 0x107   : > { %6954 = vrot.lane.b32.xlu1 %v8228_v26, %s7283_s22  ;;  %6949 = vrot.lane.b32.xlu0 %v8122_v36, %s7283_s22  ;;  %v1638_v36 = vsel %vm1624_vm7, %v1605_v48, %v6632_v0  ;;  %v1703_v56 = vsel %vm1690_vm9, %v1670_v27, %v6651_v16  ;;  %v6666_v6 = vunpack.i.l.bf16 %v8242_v5  ;;  %v1672_v5 = vsel %vm1657_vm8, %v1639_v24, %v6646_v35  ;;  %s10166_s22 = smov 64  }
 0x108   : > { %v1671_v25 = vsel %vm1657_vm8, %v1638_v36, %v6642_v57  ;;  %v1705_v61 = vsel %vm1690_vm9, %v1672_v5, %v6656_v33 }
 0x109   : > { %v6675_v62 = vpop.permute.xlu1 %6674  ;;  %v6670_v45 = vpop.permute.xlu0 %6669  ;;  %v1704_v58 = vsel %vm1690_vm9, %v1671_v25, %v6652_v17 }
 0x10a   : > { %v6672_v63 = vunpack.i.h.bf16 %v6670_v45  ;;  %v6671_v34 = vunpack.i.l.bf16 %v6670_v45  ;;  %v1737_v53 = vsel %vm1723_vm10, %v1704_v58, %v6662_v30  ;;  %v6677_v7 = vunpack.i.h.bf16 %v6675_v62 }
 0x10b   : > { %6964 = vrot.lane.b32.xlu1 %v8236_v39, %s10174_s24  ;;  %6959 = vrot.lane.b32.xlu0 %v8126_v18, %s10174_s24  ;;  %v1736_v18 = vsel %vm1723_vm10, %v1703_v56, %v6661_v52  ;;  %v6676_v50 = vunpack.i.l.bf16 %v6675_v62  ;;  %v1706_v62 = vsel %vm1690_vm9, %v1673_v4, %v6657_v60  ;;  %v1738_v45 = vsel %vm1723_vm10, %v1705_v61, %v6666_v6 }
 0x10c   : > { %v1769_v11 = vsel %vm1756_vm11, %v1736_v18, %v6671_v34  ;;  %v1770_v8 = vsel %vm1756_vm11, %v1737_v53, %v6672_v63  ;;  %v1739_v9 = vsel %vm1723_vm10, %v1706_v62, %v6667_v37 }
 0x10d   : > { %v8280_v49 = vpop.permute.xlu1 %6684  ;;  %v6680_v12 = vpop.permute.xlu0 %6679  ;;  %v1771_v24 = vsel %vm1756_vm11, %v1738_v45, %v6676_v50  ;;  %v1772_v23 = vsel %vm1756_vm11, %v1739_v9, %v6677_v7 }
 0x10e   : > { %v6682_v0 = vunpack.i.h.bf16 %v6680_v12  ;;  %v6681_v10 = vunpack.i.l.bf16 %v6680_v12  ;;  %v6686_v33 = vunpack.i.l.bf16 %v8280_v49 }
 0x10f   : > { %6974 = vrot.lane.b32.xlu1 %v8244_v22, %s7285_s25  ;;  %6969 = vrot.lane.b32.xlu0 %v8214_v40, %s7285_s25  ;;  %s6082_s25 = sshll.u32 %s7377_s21, 4  ;;  %s7224_s21 = scalar_lea.vmem %s7223_s0, 32 }
 0x110   : > { %v1802_v48 = vsel %vm1789_vm12, %v1769_v11, %v6681_v10  ;;  %v1803_v51 = vsel %vm1789_vm12, %v1770_v8, %v6682_v0  ;;  %s5914_s24 = scalar_lea.hbm %s10157_s11, %s6082_s25 }
 0x111   : > { %v6695_v57 = vpop.permute.xlu1 %6694  ;;  %v1828_v17 = vpack.c.bf16 %v1803_v51, %v1802_v48  ;;  %v6690_v16 = vpop.permute.xlu0 %6689 }
 0x112   : > { %v6692_v40 = vunpack.i.h.bf16 %v6690_v16  ;;  %v6691_v36 = vunpack.i.l.bf16 %v6690_v16  ;;  %v6696_v60 = vunpack.i.l.bf16 %v6695_v57 }
 0x113   : > { %6984 = vrot.lane.b32.xlu1 %v6983_v55, %s7286_s29  ;;  %6979 = vrot.lane.b32.xlu0 %v8228_v26, %s7286_s29  ;;  %s378_s29 = scalar_lea.vmem [#allocation2], %s377_s15 }
 0x114   : > { %6230 = vmatprep.mubr.msk.bf16.mxu0 %vm1852_vm13, %v1828_v17  ;;  %v1805_v30 = vsel %vm1789_vm12, %v1772_v23, %v6692_v40  ;;  %v1804_v52 = vsel %vm1789_vm12, %v1771_v24, %v6691_v36  ;;  %v1577_v0 = vsel %vm1558_vm5, %v7662_v47, %v6696_v60 }
 0x115   : > { %v6705_v44 = vpop.permute.xlu1 %6704  ;;  %v1829_v35 = vpack.c.bf16 %v1805_v30, %v1804_v52  ;;  %v6700_v63 = vpop.permute.xlu0 %6699 }
 0x116   : > { %v6707_v56 = vunpack.i.h.bf16 %v6705_v44  ;;  %v6706_v58 = vunpack.i.l.bf16 %v6705_v44  ;;  %v6702_v37 = vunpack.i.h.bf16 %v6700_v63  ;;  %v6701_v6 = vunpack.i.l.bf16 %v6700_v63 }
 0x117   : > { %6994 = vrot.lane.b32.xlu1 %v7442_v15, %s7287_s30  ;;  %6989 = vrot.lane.b32.xlu0 %v8236_v39, %s7287_s30  ;;  %v6697_v15 = vunpack.i.h.bf16 %v6695_v57  ;;  %v6687_v39 = vunpack.i.h.bf16 %v8280_v49  ;;  %v1575_v49 = vsel %vm1558_vm5, %v7637_v20, %v6686_v33  ;;  %s7293_s30 = smov 96  }
 0x118   : > { %6231 = vmatmul.mubr.msk.bf16.gmra.mxu0 %vm1852_vm13, %v1829_v35  ;;  %v1610_v11 = vsel %vm1591_vm6, %v1577_v0, %v6706_v58  ;;  %v1608_v4 = vsel %vm1591_vm6, %v1575_v49, %v6701_v6 }
 0x119   : > { %v6715_v1 = vpop.permute.xlu1 %6714  ;;  %v6710_v55 = vpop.permute.xlu0 %6709  ;;  %v1578_v53 = vsel %vm1558_vm5, %v7659_v46, %v6697_v15  ;;  %v1576_v50 = vsel %vm1558_vm5, %v7634_v19, %v6687_v39 }
 0x11a   : > { %v6717_v12 = vunpack.i.h.bf16 %v6715_v1  ;;  %v6716_v18 = vunpack.i.l.bf16 %v6715_v1  ;;  %v6712_v10 = vunpack.i.h.bf16 %v6710_v55  ;;  %v6711_v7 = vunpack.i.l.bf16 %v6710_v55 }
 0x11b   : > { %7004 = vrot.lane.b32.xlu1 %v7440_v14, %s7288_s12  ;;  %6999 = vrot.lane.b32.xlu0 %v8244_v22, %s7288_s12  ;;  %v1611_v8 = vsel %vm1591_vm6, %v1578_v53, %v6707_v56  ;;  %v1609_v5 = vsel %vm1591_vm6, %v1576_v50, %v6702_v37  ;;  %s10197_s12 = smov 64  }
 0x11c   : > { %v1643_v47 = vsel %vm1624_vm7, %v1610_v11, %v6716_v18  ;;  %v1644_v57 = vsel %vm1624_vm7, %v1611_v8, %v6717_v12  ;;  %v1641_v20 = vsel %vm1624_vm7, %v1608_v4, %v6711_v7  ;;  %v1642_v17 = vsel %vm1624_vm7, %v1609_v5, %v6712_v10 }
 0x11d   : > { %v8322_v26 = vpop.permute.xlu1 %6724  ;;  %v6720_v34 = vpop.permute.xlu0 %6719 }
 0x11e   : > { %v6722_v46 = vunpack.i.h.bf16 %v6720_v34  ;;  %v6721_v48 = vunpack.i.l.bf16 %v6720_v34  ;;  %v6727_v9 = vunpack.i.h.bf16 %v8322_v26  ;;  %v6726_v40 = vunpack.i.l.bf16 %v8322_v26 }
 0x120   : > { %v1674_v23 = vsel %vm1657_vm8, %v1641_v20, %v6721_v48  ;;  %v1675_v30 = vsel %vm1657_vm8, %v1642_v17, %v6722_v46  ;;  %v1676_v37 = vsel %vm1657_vm8, %v1643_v47, %v6726_v40  ;;  %v1677_v6 = vsel %vm1657_vm8, %v1644_v57, %v6727_v9 }
 0x121   : > { %v8324_v27 = vpop.permute.xlu1 %6734  ;;  %v6730_v25 = vpop.permute.xlu0 %6729 }
 0x122   : > { %v6732_v61 = vunpack.i.h.bf16 %v6730_v25  ;;  %v6731_v19 = vunpack.i.l.bf16 %v6730_v25  ;;  %v6737_v52 = vunpack.i.h.bf16 %v8324_v27  ;;  %v6736_v44 = vunpack.i.l.bf16 %v8324_v27 }
 0x124   : > { %v1707_v63 = vsel %vm1690_vm9, %v1674_v23, %v6731_v19  ;;  %v1708_v1 = vsel %vm1690_vm9, %v1675_v30, %v6732_v61  ;;  %v1710_v53 = vsel %vm1690_vm9, %v1677_v6, %v6737_v52 }
 0x125   : > { %v6745_v14 = vpop.permute.xlu1 %6744  ;;  %v6740_v22 = vpop.permute.xlu0 %6739 }
 0x126   : > { %v6742_v16 = vunpack.i.h.bf16 %v6740_v22  ;;  %v6741_v45 = vunpack.i.l.bf16 %v6740_v22  ;;  %v6747_v55 = vunpack.i.h.bf16 %v6745_v14  ;;  %v6746_v34 = vunpack.i.l.bf16 %v6745_v14 }
 0x127   : > { %v1709_v22 = vsel %vm1690_vm9, %v1676_v37, %v6736_v44 }
 0x128   : > { %v1740_v26 = vsel %vm1723_vm10, %v1707_v63, %v6741_v45  ;;  %v1741_v15 = vsel %vm1723_vm10, %v1708_v1, %v6742_v16  ;;  %v1742_v7 = vsel %vm1723_vm10, %v1709_v22, %v6746_v34  ;;  %v1743_v50 = vsel %vm1723_vm10, %v1710_v53, %v6747_v55 }
 0x129   : > { %v6755_v51 = vpop.permute.xlu1 %6754  ;;  %v6750_v62 = vpop.permute.xlu0 %6749 }
 0x12a   : > { %v6752_v36 = vunpack.i.h.bf16 %v6750_v62  ;;  %v6751_v24 = vunpack.i.l.bf16 %v6750_v62  ;;  %v6757_v33 = vunpack.i.h.bf16 %v6755_v51  ;;  %v6756_v56 = vunpack.i.l.bf16 %v6755_v51 }
 0x12c   : > { %v1773_v58 = vsel %vm1756_vm11, %v1740_v26, %v6751_v24  ;;  %v1774_v27 = vsel %vm1756_vm11, %v1741_v15, %v6752_v36  ;;  %v1775_v8 = vsel %vm1756_vm11, %v1742_v7, %v6756_v56  ;;  %v1776_v5 = vsel %vm1756_vm11, %v1743_v50, %v6757_v33 }
 0x12d   : > { %v6765_v35 = vpop.permute.xlu1 %6764  ;;  %v6760_v25 = vpop.permute.xlu0 %6759 }
 0x12e   : > { %v6762_v60 = vunpack.i.h.bf16 %v6760_v25  ;;  %v6761_v39 = vunpack.i.l.bf16 %v6760_v25  ;;  %v6767_v9 = vunpack.i.h.bf16 %v6765_v35  ;;  %v6766_v40 = vunpack.i.l.bf16 %v6765_v35 }
 0x130   : > { %v1806_v12 = vsel %vm1789_vm12, %v1773_v58, %v6761_v39  ;;  %v1807_v14 = vsel %vm1789_vm12, %v1774_v27, %v6762_v60  ;;  %v1580_v15 = vsel %vm1558_vm5, %v7706_v32, %v6767_v9  ;;  %v1579_v35 = vsel %vm1558_vm5, %v7702_v31, %v6766_v40 }
 0x131   : > { %v6775_v18 = vpop.permute.xlu1 %6774  ;;  %v1830_v0 = vpack.c.bf16 %v1807_v14, %v1806_v12  ;;  %v6770_v10 = vpop.permute.xlu0 %6769 }
 0x132   : > { %v6772_v49 = vunpack.i.h.bf16 %v6770_v10  ;;  %v6771_v11 = vunpack.i.l.bf16 %v6770_v10  ;;  %v6777_v16 = vunpack.i.h.bf16 %v6775_v18  ;;  %v6776_v45 = vunpack.i.l.bf16 %v6775_v18 }
 0x133   : > { %6234 = vmatprep.mubr.msk.bf16.mxu0 %vm1852_vm13, %v1830_v0 }
 0x134   : > { %v1809_v4 = vsel %vm1789_vm12, %v1776_v5, %v6772_v49  ;;  %v1808_v46 = vsel %vm1789_vm12, %v1775_v8, %v6771_v11  ;;  %v1582_v55 = vsel %vm1558_vm5, %v7725_v59, %v6777_v16  ;;  %v1581_v34 = vsel %vm1558_vm5, %v7728_v43, %v6776_v45 }
 0x135   : > { %v6785_v48 = vpop.permute.xlu1 %6784  ;;  %v1831_v51 = vpack.c.bf16 %v1809_v4, %v1808_v46  ;;  %v6780_v47 = vpop.permute.xlu0 %6779 }
 0x136   : > { %v6787_v36 = vunpack.i.h.bf16 %v6785_v48  ;;  %v6786_v24 = vunpack.i.l.bf16 %v6785_v48  ;;  %v6782_v23 = vunpack.i.h.bf16 %v6780_v47  ;;  %v6781_v30 = vunpack.i.l.bf16 %v6780_v47 }
 0x137   : > { %6235 = vmatmul.mubr.msk.bf16.gmra.mxu0 %vm1852_vm13, %v1831_v51 }
 0x138   : > { %v1614_v60 = vsel %vm1591_vm6, %v1581_v34, %v6786_v24  ;;  %v1615_v39 = vsel %vm1591_vm6, %v1582_v55, %v6787_v36  ;;  %v1613_v33 = vsel %vm1591_vm6, %v1580_v15, %v6782_v23  ;;  %v1612_v56 = vsel %vm1591_vm6, %v1579_v35, %v6781_v30 }
 0x139   : > { %v6795_v57 = vpop.permute.xlu1 %6794  ;;  %v6790_v61 = vpop.permute.xlu0 %6789 }
 0x13a   : > { %v6797_v44 = vunpack.i.h.bf16 %v6795_v57  ;;  %v6796_v63 = vunpack.i.l.bf16 %v6795_v57  ;;  %v6792_v25 = vunpack.i.h.bf16 %v6790_v61  ;;  %v6791_v26 = vunpack.i.l.bf16 %v6790_v61 }
 0x13c   : > { %v1647_v43 = vsel %vm1624_vm7, %v1614_v60, %v6796_v63  ;;  %v1648_v37 = vsel %vm1624_vm7, %v1615_v39, %v6797_v44  ;;  %v1645_v31 = vsel %vm1624_vm7, %v1612_v56, %v6791_v26  ;;  %v1646_v14 = vsel %vm1624_vm7, %v1613_v33, %v6792_v25 }
 0x13d   : > { %v8370_v19 = vpop.permute.xlu1 %6804  ;;  %v6800_v62 = vpop.permute.xlu0 %6799 }
 0x13e   : > { %v6802_v59 = vunpack.i.h.bf16 %v6800_v62  ;;  %v6801_v58 = vunpack.i.l.bf16 %v6800_v62  ;;  %v6807_v53 = vunpack.i.h.bf16 %v8370_v19  ;;  %v6806_v0 = vunpack.i.l.bf16 %v8370_v19 }
 0x140   : > { %v1678_v50 = vsel %vm1657_vm8, %v1645_v31, %v6801_v58  ;;  %v1679_v49 = vsel %vm1657_vm8, %v1646_v14, %v6802_v59  ;;  %v1680_v9 = vsel %vm1657_vm8, %v1647_v43, %v6806_v0  ;;  %v1681_v40 = vsel %vm1657_vm8, %v1648_v37, %v6807_v53 }
 0x141   : > { %v8372_v20 = vpop.permute.xlu1 %6814  ;;  %v6810_v17 = vpop.permute.xlu0 %6809 }
 0x142   : > { %v6812_v6 = vunpack.i.h.bf16 %v6810_v17  ;;  %v6811_v32 = vunpack.i.l.bf16 %v6810_v17  ;;  %v6817_v11 = vunpack.i.h.bf16 %v8372_v20  ;;  %v6816_v8 = vunpack.i.l.bf16 %v8372_v20 }
 0x144   : > { %v1711_v4 = vsel %vm1690_vm9, %v1678_v50, %v6811_v32  ;;  %v1712_v46 = vsel %vm1690_vm9, %v1679_v49, %v6812_v6  ;;  %v1713_v30 = vsel %vm1690_vm9, %v1680_v9, %v6816_v8  ;;  %v7290_v32 = vmov 1983009808  }
 0x145   : > { %v6825_v52 = vpop.permute.xlu1 %6824  ;;  %v6820_v1 = vpop.permute.xlu0 %6819 }
 0x146   : > { %v6822_v18 = vunpack.i.h.bf16 %v6820_v1  ;;  %v6821_v22 = vunpack.i.l.bf16 %v6820_v1  ;;  %v6827_v48 = vunpack.i.h.bf16 %v6825_v52  ;;  %v6826_v51 = vunpack.i.l.bf16 %v6825_v52 }
 0x147   : > { %v1714_v52 = vsel %vm1690_vm9, %v1681_v40, %v6817_v11 }
 0x148   : > { %v1744_v57 = vsel %vm1723_vm10, %v1711_v4, %v6821_v22  ;;  %v1745_v61 = vsel %vm1723_vm10, %v1712_v46, %v6822_v18  ;;  %v1746_v1 = vsel %vm1723_vm10, %v1713_v30, %v6826_v51  ;;  %v1747_v55 = vsel %vm1723_vm10, %v1714_v52, %v6827_v48 }
 0x149   : > { %v6835_v27 = vpop.permute.xlu1 %6834  ;;  %v6830_v12 = vpop.permute.xlu0 %6829  ;;  %v2137_v46 = vlaneseq }
 0x14a   : > { %v6832_v10 = vunpack.i.h.bf16 %v6830_v12  ;;  %v6831_v7 = vunpack.i.l.bf16 %v6830_v12  ;;  %v6837_v17 = vunpack.i.h.bf16 %v6835_v27  ;;  %v6836_v16 = vunpack.i.l.bf16 %v6835_v27 }
 0x14b   : > { %v8422_v12 = vunpack.c.l.s4 %v7290_v32 }
 0x14c   : > { %v1777_v45 = vsel %vm1756_vm11, %v1744_v57, %v6831_v7  ;;  %v1778_v20 = vsel %vm1756_vm11, %v1745_v61, %v6832_v10  ;;  %v1779_v26 = vsel %vm1756_vm11, %v1746_v1, %v6836_v16  ;;  %v1780_v15 = vsel %vm1756_vm11, %v1747_v55, %v6837_v17 }
 0x14d   : > { %v8396_v5 = vpop.permute.xlu1 %6844  ;;  %v6840_v47 = vpop.permute.xlu0 %6839  ;;  %v2136_v4 = vunpack.c.0.s8 %v8422_v12 }
 0x14e   : > { %v6842_v19 = vunpack.i.h.bf16 %v6840_v47  ;;  %v6841_v62 = vunpack.i.l.bf16 %v6840_v47  ;;  %v6847_v18 = vunpack.i.h.bf16 %v8396_v5  ;;  %v6846_v22 = vunpack.i.l.bf16 %v8396_v5 }
 0x150   : > { %v1810_v36 = vsel %vm1789_vm12, %v1777_v45, %v6841_v62  ;;  %v1811_v24 = vsel %vm1789_vm12, %v1778_v20, %v6842_v19  ;;  %v1584_v57 = vsel %vm1558_vm5, %v7868_v41, %v6847_v18  ;;  %v1583_v61 = vsel %vm1558_vm5, %v7873_v13, %v6846_v22 }
 0x151   : > { %v6855_v23 = vpop.permute.xlu1 %6854  ;;  %v1832_v44 = vpack.c.bf16 %v1811_v24, %v1810_v36  ;;  %v6850_v63 = vpop.permute.xlu0 %6849 }
 0x152   : > { %v6852_v34 = vunpack.i.h.bf16 %v6850_v63  ;;  %v6851_v25 = vunpack.i.l.bf16 %v6850_v63  ;;  %v6857_v31 = vunpack.i.h.bf16 %v6855_v23  ;;  %v6856_v14 = vunpack.i.l.bf16 %v6855_v23 }
 0x153   : > { %6238 = vmatprep.mubr.msk.bf16.mxu0 %vm1852_vm13, %v1832_v44 }
 0x154   : > { %v1813_v35 = vsel %vm1789_vm12, %v1780_v15, %v6852_v34  ;;  %v1812_v60 = vsel %vm1789_vm12, %v1779_v26, %v6851_v25  ;;  %v1586_v48 = vsel %vm1558_vm5, %v7894_v21, %v6857_v31  ;;  %v1585_v51 = vsel %vm1558_vm5, %v7897_v54, %v6856_v14 }
 0x155   : > { %v6865_v39 = vpop.permute.xlu1 %6864  ;;  %v1833_v33 = vpack.c.bf16 %v1813_v35, %v1812_v60  ;;  %v6860_v56 = vpop.permute.xlu0 %6859 }
 0x156   : > { %v6867_v53 = vunpack.i.h.bf16 %v6865_v39  ;;  %v6866_v0 = vunpack.i.l.bf16 %v6865_v39  ;;  %v6862_v10 = vunpack.i.h.bf16 %v6860_v56  ;;  %v6861_v7 = vunpack.i.l.bf16 %v6860_v56 }
 0x157   : > { %6239 = vmatmul.mubr.msk.bf16.gmra.mxu0 %vm1852_vm13, %v1833_v33 }
 0x158   : > { %v1618_v19 = vsel %vm1591_vm6, %v1585_v51, %v6866_v0  ;;  %v1619_v62 = vsel %vm1591_vm6, %v1586_v48, %v6867_v53  ;;  %v1617_v17 = vsel %vm1591_vm6, %v1584_v57, %v6862_v10  ;;  %v1616_v16 = vsel %vm1591_vm6, %v1583_v61, %v6861_v7 }
 0x159   : > { %v6875_v59 = vpop.permute.xlu1 %6874  ;;  %v6870_v58 = vpop.permute.xlu0 %6869 }
 0x15a   : > { %v6877_v49 = vunpack.i.h.bf16 %v6875_v59  ;;  %v6876_v11 = vunpack.i.l.bf16 %v6875_v59  ;;  %v6872_v47 = vunpack.i.h.bf16 %v6870_v58  ;;  %v6871_v5 = vunpack.i.l.bf16 %v6870_v58 }
 0x15c   : > { %v1651_v54 = vsel %vm1624_vm7, %v1618_v19, %v6876_v11  ;;  %v1652_v9 = vsel %vm1624_vm7, %v1619_v62, %v6877_v49  ;;  %v1649_v13 = vsel %vm1624_vm7, %v1616_v16, %v6871_v5  ;;  %v1650_v24 = vsel %vm1624_vm7, %v1617_v17, %v6872_v47 }
 0x15d   : > { %v8418_v27 = vpop.permute.xlu1 %6884  ;;  %v6880_v43 = vpop.permute.xlu0 %6879  ;;  %v2138_v11 = vshrl.u32 %v2137_v46, 7 }
 0x15e   : > { %v6882_v21 = vunpack.i.h.bf16 %v6880_v43  ;;  %v6881_v45 = vunpack.i.l.bf16 %v6880_v43  ;;  %v6887_v52 = vunpack.i.h.bf16 %v8418_v27  ;;  %v6886_v44 = vunpack.i.l.bf16 %v8418_v27 }
 0x160   : > { %v1682_v55 = vsel %vm1657_vm8, %v1649_v13, %v6881_v45  ;;  %v1683_v34 = vsel %vm1657_vm8, %v1650_v24, %v6882_v21  ;;  %v1684_v14 = vsel %vm1657_vm8, %v1651_v54, %v6886_v44  ;;  %v1685_v18 = vsel %vm1657_vm8, %v1652_v9, %v6887_v52 }
 0x161   : > { %v8420_v37 = vpop.permute.xlu1 %6894  ;;  %v6890_v6 = vpop.permute.xlu0 %6889  ;;  %v8482_v54 = vsub.s32 %v2136_v4, %v2138_v11 }
 0x162   : > { %v6892_v40 = vunpack.i.h.bf16 %v6890_v6  ;;  %v6891_v41 = vunpack.i.l.bf16 %v6890_v6  ;;  %v6897_v25 = vunpack.i.h.bf16 %v8420_v37  ;;  %v6896_v26 = vunpack.i.l.bf16 %v8420_v37 }
 0x164   : > { %v1715_v35 = vsel %vm1690_vm9, %v1682_v55, %v6891_v41  ;;  %v1716_v60 = vsel %vm1690_vm9, %v1683_v34, %v6892_v40  ;;  %v1717_v10 = vsel %vm1690_vm9, %v1684_v14, %v6896_v26  ;;  %v1718_v7 = vsel %vm1690_vm9, %v1685_v18, %v6897_v25 }
 0x165   : > { %v8426_v50 = vpop.permute.xlu1 %6904  ;;  %v6900_v8 = vpop.permute.xlu0 %6899 }
 0x166   : > { %v6902_v23 = vunpack.i.h.bf16 %v6900_v8  ;;  %v6901_v30 = vunpack.i.l.bf16 %v6900_v8  ;;  %v6907_v39 = vunpack.i.h.bf16 %v8426_v50  ;;  %v6906_v33 = vunpack.i.l.bf16 %v8426_v50 }
 0x168   : > { %v1748_v59 = vsel %vm1723_vm10, %v1715_v35, %v6901_v30  ;;  %v1749_v58 = vsel %vm1723_vm10, %v1716_v60, %v6902_v23  ;;  %v1750_v8 = vsel %vm1723_vm10, %v1717_v10, %v6906_v33  ;;  %v1751_v48 = vsel %vm1723_vm10, %v1718_v7, %v6907_v39 }
 0x169   : > { %v6915_v20 = vpop.permute.xlu1 %6914  ;;  %v6910_v36 = vpop.permute.xlu0 %6909 }
 0x16a   : > { %v6912_v63 = vunpack.i.h.bf16 %v6910_v36  ;;  %v6911_v1 = vunpack.i.l.bf16 %v6910_v36  ;;  %v6917_v6 = vunpack.i.h.bf16 %v6915_v20  ;;  %v6916_v32 = vunpack.i.l.bf16 %v6915_v20  ;;  %v8478_v20 = vld [vmem:[%s10148_s2] ss:$0 sm:$0xff] }
 0x16c   : > { %v1781_v37 = vsel %vm1756_vm11, %v1748_v59, %v6911_v1  ;;  %v1782_v31 = vsel %vm1756_vm11, %v1749_v58, %v6912_v63  ;;  %v1783_v5 = vsel %vm1756_vm11, %v1750_v8, %v6916_v32  ;;  %v1784_v57 = vsel %vm1756_vm11, %v1751_v48, %v6917_v6 }
 0x16d   : > { %v8451_v15 = vpop.permute.xlu1 %6924  ;;  %v6920_v56 = vpop.permute.xlu0 %6919 }
 0x16e   : > { %v6922_v27 = vunpack.i.h.bf16 %v6920_v56  ;;  %v6921_v43 = vunpack.i.l.bf16 %v6920_v56  ;;  %v6927_v61 = vunpack.i.h.bf16 %v8451_v15  ;;  %v6926_v9 = vunpack.i.l.bf16 %v8451_v15 }
 0x170   : > { %v1814_v22 = vsel %vm1789_vm12, %v1781_v37, %v6921_v43  ;;  %v1815_v53 = vsel %vm1789_vm12, %v1782_v31, %v6922_v27  ;;  %v1588_v24 = vsel %vm1558_vm5, %v8048_v42, %v6927_v61  ;;  %v1587_v15 = vsel %vm1558_vm5, %v8041_v38, %v6926_v9 }
 0x171   : > { %v6935_v0 = vpop.permute.xlu1 %6934  ;;  %v1834_v50 = vpack.c.bf16 %v1815_v53, %v1814_v22  ;;  %v6930_v49 = vpop.permute.xlu0 %6929 }
 0x172   : > { %v6932_v51 = vunpack.i.h.bf16 %v6930_v49  ;;  %v6931_v47 = vunpack.i.l.bf16 %v6930_v49  ;;  %v6937_v46 = vunpack.i.h.bf16 %v6935_v0  ;;  %v6936_v16 = vunpack.i.l.bf16 %v6935_v0 }
 0x173   : > { %6242 = vmatprep.mubr.msk.bf16.mxu0 %vm1852_vm13, %v1834_v50 }
 0x174   : > { %v1817_v19 = vsel %vm1789_vm12, %v1784_v57, %v6932_v51  ;;  %v1816_v62 = vsel %vm1789_vm12, %v1783_v5, %v6931_v47  ;;  %v1590_v12 = vsel %vm1558_vm5, %v8071_v28, %v6937_v46  ;;  %v1589_v4 = vsel %vm1558_vm5, %v8074_v29, %v6936_v16 }
 0x175   : > { %v6945_v17 = vpop.permute.xlu1 %6944  ;;  %v1835_v21 = vpack.c.bf16 %v1817_v19, %v1816_v62  ;;  %v6940_v45 = vpop.permute.xlu0 %6939  ;;  %vm3961_vm5 = vcmask 1042434  }
 0x176   : > { %v6947_v40 = vunpack.i.h.bf16 %v6945_v17  ;;  %v6946_v41 = vunpack.i.l.bf16 %v6945_v17  ;;  %v6942_v36 = vunpack.i.h.bf16 %v6940_v45  ;;  %v6941_v23 = vunpack.i.l.bf16 %v6940_v45 }
 0x177   : > { %6243 = vmatmul.mubr.msk.bf16.gmra.mxu0 %vm1852_vm13, %v1835_v21 }
 0x178   : > { %v6220_v13 = vpop.f32.mrf.mxu0  ;;  %v1622_v35 = vsel %vm1591_vm6, %v1589_v4, %v6946_v41  ;;  %v1623_v60 = vsel %vm1591_vm6, %v1590_v12, %v6947_v40  ;;  %v1621_v28 = vsel %vm1591_vm6, %v1588_v24, %v6942_v36  ;;  %v1620_v29 = vsel %vm1591_vm6, %v1587_v15, %v6941_v23 }
 0x179   : > { %v1951_v30 = vadd.f32 %v6220_v13, %v8478_v20  ;;  %v6955_v52 = vpop.permute.xlu1 %6954  ;;  %v6950_v1 = vpop.permute.xlu0 %6949  ;;  %vm3963_vm6 = vcmask 1043459  }
 0x17a   : > { %v6957_v44 = vunpack.i.h.bf16 %v6955_v52  ;;  %v6956_v63 = vunpack.i.l.bf16 %v6955_v52  ;;  %v1942_v55 = vpop.f32.mrf.mxu0  ;;  %v6952_v25 = vunpack.i.h.bf16 %v6950_v1  ;;  %v6951_v26 = vunpack.i.l.bf16 %v6950_v1 }
 0x17b   : > { %v2071_v34 = vmax.f32 %v1951_v30, 0.0  ;;  %v1943_v42 = vadd.f32 %v8478_v20, %v1942_v55 }
 0x17c   : > { %v6221_v39 = vpop.f32.mrf.mxu0  ;;  %v8502_v59 = vsel %vm1624_vm7, %v1622_v35, %v6956_v63  ;;  %v8507_v27 = vsel %vm1624_vm7, %v1623_v60, %v6957_v44  ;;  %v8510_v38 = vsel %vm1624_vm7, %v1620_v29, %v6951_v26  ;;  %v8513_v43 = vsel %vm1624_vm7, %v1621_v28, %v6952_v25 }
 0x17d   : > { %v2167_v33 = vcombine.high %v2071_v34, %v2071_v34  ;;  %v2174_v56 = vrot.slane %v2071_v34, %v8482_v54  ;;  %v8504_v58 = vpop.permute.xlu1 %6964  ;;  %v2069_v6 = vmax.f32 %v1943_v42, 0.0  ;;  %v1954_v14 = vadd.f32 %v6221_v39, %v8478_v20 }
 0x17e   : > { %v6967_v0 = vunpack.i.h.bf16 %v8504_v58  ;;  %v6966_v49 = vunpack.i.l.bf16 %v8504_v58  ;;  %vm3965_vm7 = vcmask 1044484  }
 0x17f   : > { %v2181_v32 = vrot.slane %v2167_v33, %v8482_v54  ;;  %v2182_v37 = vcombine.high %v2174_v56, %v2174_v56  ;;  %v2862_v31 = vsel %vm2805_vm14, %v2174_v56, -inf  ;;  %v2133_v22 = vcombine.high %v2069_v6, %v2069_v6 }
 0x180   : > { %v2863_v18 = vrot.slane %v2862_v31, 4  ;;  %v2140_v53 = vrot.slane %v2069_v6, %v8482_v54  ;;  %v2072_v61 = vmax.f32 %v1954_v14, 0.0 }
 0x181   : > { %v2183_v10 = vcombine.high %v2181_v32, %v2181_v32  ;;  %v2869_v7 = vsel %vm2805_vm14, %v2182_v37, -inf  ;;  %v2876_v50 = vsel %vm2805_vm14, %v2181_v32, -inf  ;;  %v2147_v51 = vrot.slane %v2133_v22, %v8482_v54 }
 0x182   : > { %v2864_v11 = vmax.f32 %v2862_v31, %v2863_v18  ;;  %v2870_v8 = vrot.slane %v2869_v7, 4  ;;  %v2877_v48 = vrot.slane %v2876_v50, 4  ;;  %v2148_v5 = vcombine.high %v2140_v53, %v2140_v53 }
 0x183   : > { %v2883_v47 = vsel %vm2805_vm14, %v2183_v10, -inf  ;;  %v2806_v57 = vsel %vm2805_vm14, %v2140_v53, -inf  ;;  %v2149_v16 = vcombine.high %v2147_v51, %v2147_v51  ;;  %v2820_v9 = vsel %vm2805_vm14, %v2147_v51, -inf }
 0x184   : > { %v2865_v19 = vrot.slane %v2864_v11, 2  ;;  %v2871_v62 = vmax.f32 %v2869_v7, %v2870_v8  ;;  %v2878_v17 = vmax.f32 %v2876_v50, %v2877_v48  ;;  %v2884_v46 = vrot.slane %v2883_v47, 4 }
 0x185   : > { %v2807_v21 = vrot.slane %v2806_v57, 4  ;;  %v2813_v45 = vsel %vm2805_vm14, %v2148_v5, -inf  ;;  %v2821_v30 = vrot.slane %v2820_v9, 4  ;;  %v2827_v52 = vsel %vm2805_vm14, %v2149_v16, -inf  ;;  %v6960_v16 = vpop.permute.xlu0 %6959 }
 0x186   : > { %v2866_v40 = vmax.f32 %v2864_v11, %v2865_v19  ;;  %v2872_v41 = vrot.slane %v2871_v62, 2  ;;  %v2879_v36 = vrot.slane %v2878_v17, 2  ;;  %v2885_v13 = vmax.f32 %v2883_v47, %v2884_v46 }
 0x187   : > { %v2808_v24 = vmax.f32 %v2806_v57, %v2807_v21  ;;  %v2814_v23 = vrot.slane %v2813_v45, 4  ;;  %v2822_v34 = vmax.f32 %v2820_v9, %v2821_v30  ;;  %v2828_v25 = vrot.slane %v2827_v52, 4 }
 0x188   : > { %v2867_v12 = vrot.slane %v2866_v40, 1  ;;  %v2873_v4 = vmax.f32 %v2871_v62, %v2872_v41  ;;  %v2880_v44 = vmax.f32 %v2878_v17, %v2879_v36  ;;  %v2886_v63 = vrot.slane %v2885_v13, 2 }
 0x189   : > { %v2809_v1 = vrot.slane %v2808_v24, 2  ;;  %v2815_v55 = vmax.f32 %v2813_v45, %v2814_v23  ;;  %v2823_v39 = vrot.slane %v2822_v34, 2  ;;  %v2829_v29 = vmax.f32 %v2827_v52, %v2828_v25 }
 0x18a   : > { %v2868_v26 = vmax.f32 %v2866_v40, %v2867_v12  ;;  %v2874_v42 = vrot.slane %v2873_v4, 1  ;;  %v2881_v15 = vrot.slane %v2880_v44, 1  ;;  %v2887_v35 = vmax.f32 %v2885_v13, %v2886_v63 }
 0x18b   : > { %v2810_v60 = vmax.f32 %v2808_v24, %v2809_v1  ;;  %v2816_v28 = vrot.slane %v2815_v55, 2  ;;  %v2184_v32 = vcombine.high %v2072_v61, %v2072_v61  ;;  %v2824_v14 = vmax.f32 %v2822_v34, %v2823_v39  ;;  %v6975_v1 = vpop.permute.xlu1 %6974  ;;  %v6970_v39 = vpop.permute.xlu0 %6969 }
 0x18c   : > { %v2875_v33 = vmax.f32 %v2873_v4, %v2874_v42  ;;  %v2882_v56 = vmax.f32 %v2880_v44, %v2881_v15  ;;  %v2888_v6 = vrot.slane %v2887_v35, 1  ;;  %v2830_v18 = vrot.slane %v2829_v29, 2  ;;  %v1945_v42 = vpop.f32.mrf.mxu0 }
 0x18d   : > { %v2811_v37 = vrot.slane %v2810_v60, 1  ;;  %v2817_v31 = vmax.f32 %v2815_v55, %v2816_v28  ;;  %v3704_v53 = vsel %vm3702_vm15, %v2868_v26, -inf  ;;  %v2191_v7 = vrot.slane %v2072_v61, %v8482_v54 }
 0x18e   : > { %v2889_v22 = vmax.f32 %v2887_v35, %v2888_v6  ;;  %v3707_v10 = vsel %vm3702_vm15, %v2875_v33, -inf  ;;  %v2825_v8 = vrot.slane %v2824_v14, 1  ;;  %v2831_v48 = vmax.f32 %v2829_v29, %v2830_v18 }
 0x18f   : > { %v2812_v50 = vmax.f32 %v2810_v60, %v2811_v37  ;;  %v2818_v11 = vrot.slane %v2817_v31, 1  ;;  %v3710_v51 = vsel %vm3702_vm15, %v2882_v56, -inf  ;;  %v2198_v47 = vrot.slane %v2184_v32, %v8482_v54 }
 0x190   : > { %v2199_v5 = vcombine.high %v2191_v7, %v2191_v7  ;;  %v2890_v57 = vsel %vm2805_vm14, %v2191_v7, -inf  ;;  %v2826_v62 = vmax.f32 %v2824_v14, %v2825_v8  ;;  %v2832_v17 = vrot.slane %v2831_v48, 1 }
 0x191   : > { %v2819_v19 = vmax.f32 %v2817_v31, %v2818_v11  ;;  %v3703_v46 = vsel %vm3702_vm15, %v2812_v50, -inf  ;;  %v2200_v61 = vcombine.high %v2198_v47, %v2198_v47  ;;  %v2891_v45 = vrot.slane %v2890_v57, 4  ;;  %v6985_v11 = vpop.permute.xlu1 %6984 }
 0x192   : > { %v3705_v21 = vmax.f32 %v3703_v46, %v3704_v53  ;;  %v2897_v9 = vsel %vm2805_vm14, %v2199_v5, -inf  ;;  %v2833_v40 = vmax.f32 %v2831_v48, %v2832_v17  ;;  %v3709_v36 = vsel %vm3702_vm15, %v2826_v62, -inf }
 0x193   : > { %v3706_v41 = vsel %vm3702_vm15, %v2819_v19, -inf  ;;  %v2898_v13 = vrot.slane %v2897_v9, 4  ;;  %v3711_v23 = vmax.f32 %v3709_v36, %v3710_v51  ;;  %v2892_v30 = vmax.f32 %v2890_v57, %v2891_v45  ;;  %v6980_v57 = vpop.permute.xlu0 %6979 }
 0x194   : > { %v3708_v24 = vmax.f32 %v3706_v41, %v3707_v10  ;;  %v2904_v52 = vsel %vm2805_vm14, %v2198_v47, -inf  ;;  %v3712_v12 = vsel %vm3702_vm15, %v2833_v40, -inf  ;;  %v2911_v63 = vsel %vm2805_vm14, %v2200_v61, -inf }
 0x195   : > { %v2899_v4 = vmax.f32 %v2897_v9, %v2898_v13  ;;  %v2905_v44 = vrot.slane %v2904_v52, 4  ;;  %v2893_v34 = vrot.slane %v2892_v30, 2  ;;  %v2912_v25 = vrot.slane %v2911_v63, 4 }
 0x196   : > { %v3960_v55 = vsel %vm3959_vm3, %v3708_v24, %v3705_v21  ;;  %v6962_v26 = vunpack.i.h.bf16 %v6960_v16  ;;  %v3713_v15 = vsel %vm3702_vm15, %v2889_v22, -inf  ;;  %v1688_v28 = vsel %vm1657_vm8, %v8502_v59, %v6966_v49 }
 0x197   : > { %v2900_v35 = vrot.slane %v2899_v4, 2  ;;  %v2906_v60 = vmax.f32 %v2904_v52, %v2905_v44  ;;  %v3714_v29 = vmax.f32 %v3712_v12, %v3713_v15  ;;  %v3962_v33 = vsel %vm3961_vm5, %v3711_v23, %v3960_v55  ;;  %v6995_v23 = vpop.permute.xlu1 %6994 }
 0x198   : > { %v2894_v56 = vmax.f32 %v2892_v30, %v2893_v34  ;;  %v2913_v6 = vmax.f32 %v2911_v63, %v2912_v25  ;;  %v1689_v31 = vsel %vm1657_vm8, %v8507_v27, %v6967_v0  ;;  %v1946_v14 = vadd.f32 %v8478_v20, %v1945_v42  ;;  %v6990_v34 = vpop.permute.xlu0 %6989  ;;  %v6224_v25 = vpop.f32.mrf.mxu0 }
 0x199   : > { %v2901_v32 = vmax.f32 %v2899_v4, %v2900_v35  ;;  %v2907_v37 = vrot.slane %v2906_v60, 2  ;;  %v6961_v53 = vunpack.i.l.bf16 %v6960_v16  ;;  %v6977_v10 = vunpack.i.h.bf16 %v6975_v1 }
 0x19a   : > { %v2895_v18 = vrot.slane %v2894_v56, 1  ;;  %v2914_v22 = vrot.slane %v2913_v6, 2  ;;  %v1687_v7 = vsel %vm1657_vm8, %v8513_v43, %v6962_v26  ;;  %v2070_v50 = vmax.f32 %v1946_v14, 0.0 }
 0x19b   : > { %v2902_v59 = vrot.slane %v2901_v32, 1  ;;  %v2908_v49 = vmax.f32 %v2906_v60, %v2907_v37  ;;  %v8559_v58 = vsel %vm3963_vm6, %v3714_v29, %v3962_v33  ;;  %v6976_v27 = vunpack.i.l.bf16 %v6975_v1 }
 0x19c   : > { %v2896_v8 = vmax.f32 %v2894_v56, %v2895_v18  ;;  %v8556_v48 = vmax.f32 %v2913_v6, %v2914_v22  ;;  %v2150_v47 = vcombine.high %v2070_v50, %v2070_v50  ;;  %v2157_v5 = vrot.slane %v2070_v50, %v8482_v54  ;;  %v7005_v22 = vpop.permute.xlu1 %7004 }
 0x19d   : > { %v2903_v0 = vmax.f32 %v2901_v32, %v2902_v59  ;;  %v2909_v51 = vrot.slane %v2908_v49, 1  ;;  %v1686_v19 = vsel %vm1657_vm8, %v8510_v38, %v6961_v53  ;;  %v1722_v43 = vsel %vm1690_vm9, %v1689_v31, %v6977_v10  ;;  %v1958_v53 = vpop.f32.mrf.mxu0 }
 0x19e   : > { %v6972_v62 = vunpack.i.h.bf16 %v6970_v39  ;;  %v6971_v17 = vunpack.i.l.bf16 %v6970_v39  ;;  %v2916_v46 = vrot.slane %v8556_v48, 1  ;;  %v8567_v16 = vsel %vm3702_vm15, %v2896_v8, -inf }
 0x19f   : > { %v2164_v21 = vrot.slane %v2150_v47, %v8482_v54  ;;  %v2165_v61 = vcombine.high %v2157_v5, %v2157_v5  ;;  %v8570_v45 = vmax.f32 %v2908_v49, %v2909_v51  ;;  %v8573_v9 = vsel %vm3702_vm15, %v2903_v0, -inf  ;;  %v7000_v0 = vpop.permute.xlu0 %6999 }
 0x1a0   : > { %v2834_v40 = vsel %vm2805_vm14, %v2157_v5, -inf  ;;  %v1721_v38 = vsel %vm1690_vm9, %v1688_v28, %v6976_v27  ;;  %v1719_v24 = vsel %vm1690_vm9, %v1686_v19, %v6971_v17  ;;  %v1720_v12 = vsel %vm1690_vm9, %v1687_v7, %v6972_v62 }
 0x1a1   : > { %v2166_v41 = vcombine.high %v2164_v21, %v2164_v21  ;;  %v2835_v36 = vrot.slane %v2834_v40, 4  ;;  %v2841_v13 = vsel %vm2805_vm14, %v2165_v61, -inf  ;;  %v2848_v52 = vsel %vm2805_vm14, %v2164_v21, -inf  ;;  %v6225_v21 = vpop.f32.mrf.mxu0 }
 0x1a2   : > { %v2842_v30 = vrot.slane %v2841_v13, 4  ;;  %v6987_v4 = vunpack.i.h.bf16 %v6985_v11  ;;  %v2849_v63 = vrot.slane %v2848_v52, 4  ;;  %v6986_v55 = vunpack.i.l.bf16 %v6985_v11 }
 0x1a3   : > { %v2836_v44 = vmax.f32 %v2834_v40, %v2835_v36  ;;  %v2855_v1 = vsel %vm2805_vm14, %v2166_v41, -inf  ;;  %v6982_v35 = vunpack.i.h.bf16 %v6980_v57  ;;  %v6981_v29 = vunpack.i.l.bf16 %v6980_v57 }
 0x1a4   : > { %v2843_v26 = vmax.f32 %v2841_v13, %v2842_v30  ;;  %v2856_v42 = vrot.slane %v2855_v1, 4  ;;  %v1755_v15 = vsel %vm1723_vm10, %v1722_v43, %v6987_v4  ;;  %v2850_v28 = vmax.f32 %v2848_v52, %v2849_v63 }
 0x1a5   : > { %v2837_v60 = vrot.slane %v2836_v44, 2  ;;  %v1754_v39 = vsel %vm1723_vm10, %v1721_v38, %v6986_v55  ;;  %v1753_v6 = vsel %vm1723_vm10, %v1720_v12, %v6982_v35  ;;  %v6997_v32 = vunpack.i.h.bf16 %v6995_v23 }
 0x1a6   : > { %v2844_v33 = vrot.slane %v2843_v26, 2  ;;  %v2857_v56 = vmax.f32 %v2855_v1, %v2856_v42  ;;  %v2851_v31 = vrot.slane %v2850_v28, 2  ;;  %v1752_v14 = vsel %vm1723_vm10, %v1719_v24, %v6981_v29 }
 0x1a7   : > { %v2838_v37 = vmax.f32 %v2836_v44, %v2837_v60  ;;  %v6996_v18 = vunpack.i.l.bf16 %v6995_v23  ;;  %v1788_v49 = vsel %vm1756_vm11, %v1755_v15, %v6997_v32  ;;  %v6992_v7 = vunpack.i.h.bf16 %v6990_v34 }
 0x1a8   : > { %v2845_v10 = vmax.f32 %v2843_v26, %v2844_v33  ;;  %v2858_v59 = vrot.slane %v2857_v56, 2  ;;  %v2852_v11 = vmax.f32 %v2850_v28, %v2851_v31  ;;  %v6991_v27 = vunpack.i.l.bf16 %v6990_v34  ;;  %v1961_v34 = vpop.f32.mrf.mxu0 }
 0x1a9   : > { %v2839_v50 = vrot.slane %v2838_v37, 1  ;;  %v1787_v8 = vsel %vm1756_vm11, %v1754_v39, %v6996_v18  ;;  %v1786_v5 = vsel %vm1756_vm11, %v1753_v6, %v6992_v7  ;;  %v7007_v57 = vunpack.i.h.bf16 %v7005_v22 }
 0x1aa   : > { %v2846_v51 = vrot.slane %v2845_v10, 1  ;;  %v2859_v47 = vmax.f32 %v2857_v56, %v2858_v59  ;;  %v2853_v43 = vrot.slane %v2852_v11, 1  ;;  %v1785_v62 = vsel %vm1756_vm11, %v1752_v14, %v6991_v27 }
 0x1ab   : > { %v2840_v19 = vmax.f32 %v2838_v37, %v2839_v50  ;;  %v7006_v17 = vunpack.i.l.bf16 %v7005_v22  ;;  %v1821_v38 = vsel %vm1789_vm12, %v1788_v49, %v7007_v57  ;;  %v7002_v41 = vunpack.i.h.bf16 %v7000_v0 }
 0x1ac   : > { %v2847_v61 = vmax.f32 %v2845_v10, %v2846_v51  ;;  %v2860_v40 = vrot.slane %v2859_v47, 1  ;;  %v2854_v36 = vmax.f32 %v2852_v11, %v2853_v43  ;;  %v7001_v23 = vunpack.i.l.bf16 %v7000_v0 }
 0x1ad   : > { %v3715_v13 = vsel %vm3702_vm15, %v2840_v19, -inf  ;;  %v1820_v24 = vsel %vm1789_vm12, %v1787_v8, %v7006_v17  ;;  %v1819_v55 = vsel %vm1789_vm12, %v1786_v5, %v7002_v41  ;;  %v2917_v26 = vmax.f32 %v8556_v48, %v2916_v46 }
 0x1ae   : > { %v2861_v30 = vmax.f32 %v2859_v47, %v2860_v40  ;;  %v3717_v52 = vmax.f32 %v3715_v13, %v8567_v16  ;;  %v3718_v12 = vsel %vm3702_vm15, %v2847_v61, -inf  ;;  %v1837_v4 = vpack.c.bf16 %v1821_v38, %v1820_v24 }
 0x1af   : > { %v3720_v44 = vmax.f32 %v3718_v12, %v8573_v9  ;;  %v3721_v63 = vsel %vm3702_vm15, %v2854_v36, -inf  ;;  %v1818_v1 = vsel %vm1789_vm12, %v1785_v62, %v7001_v23  ;;  %vm3967_vm8 = vcmask 1045509  }
 0x1b0   : > { %v3966_v42 = vsel %vm3965_vm7, %v3717_v52, %v8559_v58  ;;  %v1836_v16 = vpack.c.bf16 %v1819_v55, %v1818_v1  ;;  %v3722_v15 = vsel %vm3702_vm15, %v8570_v45, -inf  ;;  %v1967_v9 = vadd.f32 %v6224_v25, %v8478_v20 }
 0x1b1   : > { %v1959_v35 = vadd.f32 %v8478_v20, %v1958_v53  ;;  %v3723_v60 = vmax.f32 %v3721_v63, %v3722_v15  ;;  %v1970_v28 = vadd.f32 %v6225_v21, %v8478_v20  ;;  %v1962_v39 = vadd.f32 %v8478_v20, %v1961_v34 }
 0x1b2   : > { %6246 = vmatprep.mubr.msk.bf16.mxu0 %vm1852_vm13, %v1836_v16  ;;  %vm3969_vm9 = vcmask 1046534   ;;  %v8612_v48 = vsel %vm3702_vm15, %v2861_v30, -inf  ;;  %v3968_v58 = vsel %vm3967_vm8, %v3720_v44, %v3966_v42  ;;  %v2075_v46 = vmax.f32 %v1967_v9, 0.0 }
 0x1b3   : > { %6247 = vmatmul.mubr.msk.bf16.gmra.mxu0 %vm1852_vm13, %v1837_v4  ;;  %v2073_v45 = vmax.f32 %v1959_v35, 0.0  ;;  %v8617_v25 = vsel %vm3702_vm15, %v2917_v26, -inf  ;;  %v8619_v29 = vmax.f32 %v1970_v28, 0.0  ;;  %v8625_v31 = vmax.f32 %v1962_v39, 0.0 }
 0x1b4   : > { %v2235_v33 = vcombine.high %v2075_v46, %v2075_v46  ;;  %v2242_v56 = vrot.slane %v2075_v46, %v8482_v54  ;;  %v3726_v37 = vmax.f32 %v8612_v48, %v8617_v25  ;;  %v8628_v14 = vsel %vm3969_vm9, %v3723_v60, %v3968_v58 }
 0x1b5   : > { %v2201_v6 = vcombine.high %v2073_v45, %v2073_v45  ;;  %v2208_v32 = vrot.slane %v2073_v45, %v8482_v54  ;;  %v2252_v50 = vcombine.high %v8619_v29, %v8619_v29  ;;  %vm3971_vm10 = vcmask 1047559  }
 0x1b6   : > { %v2249_v18 = vrot.slane %v2235_v33, %v8482_v54  ;;  %v2250_v22 = vcombine.high %v2242_v56, %v2242_v56  ;;  %v2974_v53 = vsel %vm2805_vm14, %v2242_v56, -inf  ;;  %v2259_v58 = vrot.slane %v8619_v29, %v8482_v54 }
 0x1b7   : > { %v2215_v10 = vrot.slane %v2201_v6, %v8482_v54  ;;  %v2975_v59 = vrot.slane %v2974_v53, 4  ;;  %v2216_v49 = vcombine.high %v2208_v32, %v2208_v32  ;;  %v2918_v7 = vsel %vm2805_vm14, %v2208_v32, -inf }
 0x1b8   : > { %v2251_v11 = vcombine.high %v2249_v18, %v2249_v18  ;;  %v2981_v8 = vsel %vm2805_vm14, %v2250_v22, -inf  ;;  %v2988_v27 = vsel %vm2805_vm14, %v2249_v18, -inf  ;;  %v2919_v57 = vrot.slane %v2918_v7, 4 }
 0x1b9   : > { %v2217_v0 = vcombine.high %v2215_v10, %v2215_v10  ;;  %v2976_v51 = vmax.f32 %v2974_v53, %v2975_v59  ;;  %v2982_v47 = vrot.slane %v2981_v8, 4  ;;  %v2989_v5 = vrot.slane %v2988_v27, 4 }
 0x1ba   : > { %v2995_v19 = vsel %vm2805_vm14, %v2251_v11, -inf  ;;  %v2925_v43 = vsel %vm2805_vm14, %v2216_v49, -inf  ;;  %v2932_v62 = vsel %vm2805_vm14, %v2215_v10, -inf  ;;  %v2920_v41 = vmax.f32 %v2918_v7, %v2919_v57 }
 0x1bb   : > { %v2939_v17 = vsel %vm2805_vm14, %v2217_v0, -inf  ;;  %v2977_v21 = vrot.slane %v2976_v51, 2  ;;  %v2983_v61 = vmax.f32 %v2981_v8, %v2982_v47  ;;  %v2990_v40 = vmax.f32 %v2988_v27, %v2989_v5 }
 0x1bc   : > { %v2996_v38 = vrot.slane %v2995_v19, 4  ;;  %v2926_v36 = vrot.slane %v2925_v43, 4  ;;  %v2933_v13 = vrot.slane %v2932_v62, 4  ;;  %v2940_v24 = vrot.slane %v2939_v17, 4 }
 0x1bd   : > { %v2978_v23 = vmax.f32 %v2976_v51, %v2977_v21  ;;  %v2984_v30 = vrot.slane %v2983_v61, 2  ;;  %v2991_v52 = vrot.slane %v2990_v40, 2  ;;  %v2921_v4 = vrot.slane %v2920_v41, 2 }
 0x1be   : > { %v2997_v12 = vmax.f32 %v2995_v19, %v2996_v38  ;;  %v2927_v44 = vmax.f32 %v2925_v43, %v2926_v36  ;;  %v2934_v63 = vmax.f32 %v2932_v62, %v2933_v13  ;;  %v2941_v1 = vmax.f32 %v2939_v17, %v2940_v24 }
 0x1bf   : > { %v2979_v55 = vrot.slane %v2978_v23, 1  ;;  %v2985_v34 = vmax.f32 %v2983_v61, %v2984_v30  ;;  %v2992_v26 = vmax.f32 %v2990_v40, %v2991_v52  ;;  %v2922_v16 = vmax.f32 %v2920_v41, %v2921_v4 }
 0x1c0   : > { %v2998_v42 = vrot.slane %v2997_v12, 2  ;;  %v2928_v15 = vrot.slane %v2927_v44, 2  ;;  %v2935_v9 = vrot.slane %v2934_v63, 2  ;;  %v2942_v35 = vrot.slane %v2941_v1, 2 }
 0x1c1   : > { %v2986_v60 = vrot.slane %v2985_v34, 1  ;;  %v2993_v28 = vrot.slane %v2992_v26, 1  ;;  %v2923_v46 = vrot.slane %v2922_v16, 1  ;;  %v2980_v6 = vmax.f32 %v2978_v23, %v2979_v55 }
 0x1c2   : > { %v2999_v39 = vmax.f32 %v2997_v12, %v2998_v42  ;;  %v2929_v45 = vmax.f32 %v2927_v44, %v2928_v15  ;;  %v2936_v33 = vmax.f32 %v2934_v63, %v2935_v9  ;;  %v2943_v56 = vmax.f32 %v2941_v1, %v2942_v35 }
 0x1c3   : > { %v2987_v32 = vmax.f32 %v2985_v34, %v2986_v60  ;;  %v2994_v18 = vmax.f32 %v2992_v26, %v2993_v28  ;;  %v2266_v22 = vrot.slane %v2252_v50, %v8482_v54  ;;  %v2924_v10 = vmax.f32 %v2922_v16, %v2923_v46 }
 0x1c4   : > { %v3000_v53 = vrot.slane %v2999_v39, 1  ;;  %v2930_v59 = vrot.slane %v2929_v45, 1  ;;  %v2937_v49 = vrot.slane %v2936_v33, 1  ;;  %v2944_v7 = vrot.slane %v2943_v56, 1 }
 0x1c5   : > { %v2267_v11 = vcombine.high %v2259_v58, %v2259_v58  ;;  %v8650_v29 = vsel %vm3971_vm10, %v3726_v37, %v8628_v14  ;;  %v10177_v8 = vrot.slane %v7414_v3, 1  ;;  %v10178_v27 = vrot.slane %v7410_v2, 1 }
 0x1c6   : > { %v2931_v50 = vmax.f32 %v2929_v45, %v2930_v59  ;;  %v3727_v51 = vsel %vm3702_vm15, %v2924_v10, -inf  ;;  %v2218_v47 = vcombine.high %v8625_v31, %v8625_v31  ;;  %v2225_v5 = vrot.slane %v8625_v31, %v8482_v54  ;;  %v6228_v59 = vpop.f32.mrf.mxu0 }
 0x1c7   : > { %v8657_v0 = vsel %vm616_vm2, %v10178_v27, %v10177_v8  ;;  %v3728_v48 = vsel %vm3702_vm15, %v2980_v6, -inf  ;;  %v2938_v25 = vmax.f32 %v2936_v33, %v2937_v49  ;;  %v2268_v37 = vcombine.high %v2266_v22, %v2266_v22 }
 0x1c8   : > { %v3002_v14 = vsel %vm2805_vm14, %v2259_v58, -inf  ;;  %v3001_v57 = vmax.f32 %v2999_v39, %v3000_v53  ;;  %v3731_v19 = vsel %vm3702_vm15, %v2987_v32, -inf  ;;  %v3734_v43 = vsel %vm3702_vm15, %v2994_v18, -inf }
 0x1c9   : > { %v3003_v62 = vrot.slane %v3002_v14, 4  ;;  %v2945_v17 = vmax.f32 %v2943_v56, %v2944_v7  ;;  %v3729_v21 = vmax.f32 %v3727_v51, %v3728_v48  ;;  %v3730_v61 = vsel %vm3702_vm15, %v2931_v50, -inf }
 0x1ca   : > { %v3009_v40 = vsel %vm2805_vm14, %v2267_v11, -inf  ;;  %v3016_v41 = vsel %vm2805_vm14, %v2266_v22, -inf  ;;  %v3023_v36 = vsel %vm2805_vm14, %v2268_v37, -inf  ;;  %v3733_v13 = vsel %vm3702_vm15, %v2938_v25, -inf }
 0x1cb   : > { %v3004_v38 = vmax.f32 %v3002_v14, %v3003_v62  ;;  %v3010_v31 = vrot.slane %v3009_v40, 4  ;;  %v3017_v24 = vrot.slane %v3016_v41, 4  ;;  %v3024_v23 = vrot.slane %v3023_v36, 4 }
 0x1cc   : > { %v2232_v30 = vrot.slane %v2218_v47, %v8482_v54  ;;  %v3732_v52 = vmax.f32 %v3730_v61, %v3731_v19  ;;  %v2233_v44 = vcombine.high %v2225_v5, %v2225_v5  ;;  %v2946_v34 = vsel %vm2805_vm14, %v2225_v5, -inf }
 0x1cd   : > { %v3005_v12 = vrot.slane %v3004_v38, 2  ;;  %v3011_v4 = vmax.f32 %v3009_v40, %v3010_v31  ;;  %v3018_v63 = vmax.f32 %v3016_v41, %v3017_v24  ;;  %v3025_v1 = vmax.f32 %v3023_v36, %v3024_v23 }
 0x1ce   : > { %v2234_v55 = vcombine.high %v2232_v30, %v2232_v30  ;;  %v2947_v16 = vrot.slane %v2946_v34, 4  ;;  %v2953_v15 = vsel %vm2805_vm14, %v2233_v44, -inf  ;;  %v2960_v28 = vsel %vm2805_vm14, %v2232_v30, -inf }
 0x1cf   : > { %v3006_v26 = vmax.f32 %v3004_v38, %v3005_v12  ;;  %v3012_v42 = vrot.slane %v3011_v4, 2  ;;  %v3019_v9 = vrot.slane %v3018_v63, 2  ;;  %v3026_v35 = vrot.slane %v3025_v1, 2 }
 0x1d0   : > { %v2954_v60 = vrot.slane %v2953_v15, 4  ;;  %v3736_v39 = vsel %vm3702_vm15, %v2945_v17, -inf  ;;  %v2948_v46 = vmax.f32 %v2946_v34, %v2947_v16  ;;  %v2961_v45 = vrot.slane %v2960_v28, 4  ;;  %v1974_v17 = vpop.f32.mrf.mxu0 }
 0x1d1   : > { %v3013_v58 = vmax.f32 %v3011_v4, %v3012_v42  ;;  %v3735_v33 = vmax.f32 %v3733_v13, %v3734_v43  ;;  %v3973_v56 = vsel %vm3959_vm3, %v3732_v52, %v3729_v21  ;;  %v2967_v32 = vsel %vm2805_vm14, %v2234_v55, -inf }
 0x1d2   : > { %v2955_v6 = vmax.f32 %v2953_v15, %v2954_v60  ;;  %v3007_v18 = vrot.slane %v3006_v26, 1  ;;  %v3020_v22 = vmax.f32 %v3018_v63, %v3019_v9  ;;  %v2949_v53 = vrot.slane %v2948_v46, 2  ;;  %v6229_v44 = vpop.f32.mrf.mxu0 }
 0x1d3   : > { %v2962_v10 = vmax.f32 %v2960_v28, %v2961_v45  ;;  %v3014_v49 = vrot.slane %v3013_v58, 1  ;;  %v3027_v7 = vmax.f32 %v3025_v1, %v3026_v35  ;;  %v2968_v8 = vrot.slane %v2967_v32, 4 }
 0x1d4   : > { %v2956_v11 = vrot.slane %v2955_v6, 2  ;;  %v3737_v27 = vsel %vm3702_vm15, %v3001_v57, -inf  ;;  %v2950_v50 = vmax.f32 %v2948_v46, %v2949_v53  ;;  %v4022_v47 = vrot.slane %v8650_v29, 7 }
 0x1d5   : > { %v2963_v51 = vrot.slane %v2962_v10, 2  ;;  %v3738_v5 = vmax.f32 %v3736_v39, %v3737_v27  ;;  %v3974_v48 = vsel %vm3961_vm5, %v3735_v33, %v3973_v56  ;;  %v2969_v37 = vmax.f32 %v2967_v32, %v2968_v8  ;;  %v1977_v56 = vpop.f32.mrf.mxu0 }
 0x1d6   : > { %v2957_v25 = vmax.f32 %v2955_v6, %v2956_v11  ;;  %v3008_v14 = vmax.f32 %v3006_v26, %v3007_v18  ;;  %v3021_v19 = vrot.slane %v3020_v22, 1  ;;  %v2951_v43 = vrot.slane %v2950_v50, 1 }
 0x1d7   : > { %v2964_v62 = vmax.f32 %v2962_v10, %v2963_v51  ;;  %v3015_v21 = vmax.f32 %v3013_v58, %v3014_v49  ;;  %v3028_v61 = vrot.slane %v3027_v7, 1  ;;  %v2970_v38 = vrot.slane %v2969_v37, 2 }
 0x1d8   : > { %v2958_v40 = vrot.slane %v2957_v25, 1  ;;  %v2952_v31 = vmax.f32 %v2950_v50, %v2951_v43  ;;  %v8684_v41 = vsel %vm450_vm0, 0.0, %v4022_v47  ;;  %v4046_v29 = vsel %vm450_vm0, %v4022_v47, 0.0 }
 0x1d9   : > { %v2965_v57 = vrot.slane %v2964_v62, 1  ;;  %v2971_v13 = vmax.f32 %v2969_v37, %v2970_v38  ;;  %v4069_v24 = vrot.slane %v8684_v41, 1  ;;  %v4070_v23 = vrot.slane %v4046_v29, 1 }
 0x1da   : > { %v2959_v36 = vmax.f32 %v2957_v25, %v2958_v40  ;;  %v3739_v52 = vsel %vm3702_vm15, %v2952_v31, -inf  ;;  %v4091_v12 = vrot.slane %v8684_v41, 2  ;;  %v4092_v4 = vrot.slane %v4046_v29, 2 }
 0x1db   : > { %v2966_v30 = vmax.f32 %v2964_v62, %v2965_v57  ;;  %v3022_v63 = vmax.f32 %v3020_v22, %v3021_v19  ;;  %v3740_v1 = vsel %vm3702_vm15, %v3008_v14, -inf  ;;  %v2972_v55 = vrot.slane %v2971_v13, 1 }
 0x1dc   : > { %v8692_v34 = vsel %vm616_vm2, %v4069_v24, %v4070_v23  ;;  %v3741_v26 = vmax.f32 %v3739_v52, %v3740_v1  ;;  %v3742_v42 = vsel %vm3702_vm15, %v2959_v36, -inf  ;;  %v10179_v15 = vrot.slane %v7414_v3, 2 }
 0x1dd   : > { %v7008_v16 = vpack.i.bf16 %v8692_v34, %v8657_v0  ;;  %v10180_v9 = vrot.slane %v7410_v2, 2  ;;  %v3029_v60 = vmax.f32 %v3027_v7, %v3028_v61  ;;  %v3743_v28 = vsel %vm3702_vm15, %v3015_v21, -inf  ;;  %v6232_v7 = vpop.f32.mrf.mxu0 }
 0x1de   : > { %v3975_v39 = vsel %vm3963_vm6, %v3738_v5, %v3974_v48  ;;  %v8707_v58 = vsel %vm697_vm1, %v4091_v12, %v4092_v4  ;;  %v8710_v46 = vsel %vm3702_vm15, %v2966_v30, -inf  ;;  %v1983_v3 = vadd.f32 %v6228_v59, %v8478_v20 }
 0x1df   : > { %v8702_v35 = vsel %vm697_vm1, %v10180_v9, %v10179_v15  ;;  %7009 = vrot.lane.b32.xlu1 %v7008_v16, %s7291_s16  ;;  %v1975_v45 = vadd.f32 %v8478_v20, %v1974_v17  ;;  %v1986_v33 = vadd.f32 %v6229_v44, %v8478_v20  ;;  %v8717_v6 = vsel %vm3702_vm15, %v3022_v63, -inf }
 0x1e0   : > { %v2973_v32 = vmax.f32 %v2971_v13, %v2972_v55  ;;  %v3744_v18 = vmax.f32 %v3742_v42, %v3743_v28  ;;  %v3976_v22 = vsel %vm3965_vm7, %v3741_v26, %v3975_v39  ;;  %v7013_v53 = vpack.i.bf16 %v8707_v58, %v8702_v35 }
 0x1e1   : > { %v2079_v10 = vmax.f32 %v1983_v3, 0.0  ;;  %v2077_v49 = vmax.f32 %v1975_v45, 0.0  ;;  %v8723_v59 = vsel %vm3702_vm15, %v3029_v60, -inf  ;;  %v3747_v11 = vmax.f32 %v8710_v46, %v8717_v6  ;;  %v8770_v46 = vld [vmem:[%s10148_s2] ss:$0 sm:$0xff] }
 0x1e2   : > { %v8727_v8 = vmax.f32 %v1986_v33, 0.0  ;;  %v8733_v5 = vsel %vm3702_vm15, %v2973_v32, -inf  ;;  %v3977_v48 = vsel %vm3967_vm8, %v3744_v18, %v3976_v22  ;;  %v1978_v25 = vadd.f32 %v8478_v20, %v1977_v56 }
 0x1e3   : > { %7014 = vrot.lane.b32.xlu1 %v7013_v53, %s10166_s22  ;;  %v2303_v27 = vcombine.high %v2079_v10, %v2079_v10  ;;  %v2310_v50 = vrot.slane %v2079_v10, %v8482_v54  ;;  %v2269_v51 = vcombine.high %v2077_v49, %v2077_v49  ;;  %v2276_v47 = vrot.slane %v2077_v49, %v8482_v54 }
 0x1e4   : > { %v8738_v37 = vadd.f32 %v6232_v7, %v8478_v20  ;;  %v2320_v40 = vcombine.high %v8727_v8, %v8727_v8  ;;  %vm4288_vm11 = vcmask 523264   ;;  %vm4297_vm12 = vcmask 785408  }
 0x1e5   : > { %v2317_v14 = vrot.slane %v2303_v27, %v8482_v54  ;;  %v2318_v19 = vcombine.high %v2310_v50, %v2310_v50  ;;  %v3086_v43 = vsel %vm2805_vm14, %v2310_v50, -inf  ;;  %v2283_v62 = vrot.slane %v2269_v51, %v8482_v54 }
 0x1e6   : > { %v3087_v17 = vrot.slane %v3086_v43, 4  ;;  %v2284_v21 = vcombine.high %v2276_v47, %v2276_v47  ;;  %v3030_v61 = vsel %vm2805_vm14, %v2276_v47, -inf  ;;  %v2327_v47 = vrot.slane %v8727_v8, %v8482_v54 }
 0x1e7   : > { %v2319_v38 = vcombine.high %v2317_v14, %v2317_v14  ;;  %v3093_v31 = vsel %vm2805_vm14, %v2318_v19, -inf  ;;  %v3100_v20 = vsel %vm2805_vm14, %v2317_v14, -inf  ;;  %v2285_v57 = vcombine.high %v2283_v62, %v2283_v62 }
 0x1e8   : > { %v3088_v29 = vmax.f32 %v3086_v43, %v3087_v17  ;;  %v3094_v36 = vrot.slane %v3093_v31, 4  ;;  %v3101_v13 = vrot.slane %v3100_v20, 4  ;;  %v3031_v24 = vrot.slane %v3030_v61, 4 }
 0x1e9   : > { %v3107_v23 = vsel %vm2805_vm14, %v2319_v38, -inf  ;;  %v3037_v30 = vsel %vm2805_vm14, %v2284_v21, -inf  ;;  %v3044_v52 = vsel %vm2805_vm14, %v2283_v62, -inf  ;;  %v3051_v12 = vsel %vm2805_vm14, %v2285_v57, -inf }
 0x1ea   : > { %v3089_v4 = vrot.slane %v3088_v29, 2  ;;  %v3095_v44 = vmax.f32 %v3093_v31, %v3094_v36  ;;  %v3102_v63 = vmax.f32 %v3100_v20, %v3101_v13  ;;  %v3108_v1 = vrot.slane %v3107_v23, 4  ;;  %v1990_v31 = vpop.f32.mrf.mxu0 }
 0x1eb   : > { %v3032_v55 = vmax.f32 %v3030_v61, %v3031_v24  ;;  %v3038_v26 = vrot.slane %v3037_v30, 4  ;;  %v3045_v42 = vrot.slane %v3044_v52, 4  ;;  %v3052_v16 = vrot.slane %v3051_v12, 4 }
 0x1ec   : > { %v3090_v15 = vmax.f32 %v3088_v29, %v3089_v4  ;;  %v3096_v9 = vrot.slane %v3095_v44, 2  ;;  %v3103_v60 = vrot.slane %v3102_v63, 2  ;;  %v3109_v28 = vmax.f32 %v3107_v23, %v3108_v1 }
 0x1ed   : > { %v3033_v39 = vrot.slane %v3032_v55, 2  ;;  %v3039_v3 = vmax.f32 %v3037_v30, %v3038_v26  ;;  %v3046_v45 = vmax.f32 %v3044_v52, %v3045_v42  ;;  %v3053_v33 = vmax.f32 %v3051_v12, %v3052_v16 }
 0x1ee   : > { %v3091_v56 = vrot.slane %v3090_v15, 1  ;;  %v3097_v32 = vmax.f32 %v3095_v44, %v3096_v9  ;;  %v3104_v18 = vmax.f32 %v3102_v63, %v3103_v60  ;;  %v3110_v22 = vrot.slane %v3109_v28, 2 }
 0x1ef   : > { %v3034_v53 = vmax.f32 %v3032_v55, %v3033_v39  ;;  %v3040_v10 = vrot.slane %v3039_v3, 2  ;;  %v3047_v49 = vrot.slane %v3046_v45, 2  ;;  %v3054_v7 = vrot.slane %v3053_v33, 2 }
 0x1f0   : > { %v3098_v27 = vrot.slane %v3097_v32, 1  ;;  %v3105_v50 = vrot.slane %v3104_v18, 1  ;;  %v3111_v51 = vmax.f32 %v3109_v28, %v3110_v22  ;;  %v2078_v62 = vmax.f32 %v1978_v25, 0.0 }
 0x1f1   : > { %v3041_v14 = vmax.f32 %v3039_v3, %v3040_v10  ;;  %v3048_v19 = vmax.f32 %v3046_v45, %v3047_v49  ;;  %v3055_v43 = vmax.f32 %v3053_v33, %v3054_v7  ;;  %v3092_v17 = vmax.f32 %v3090_v15, %v3091_v56 }
 0x1f2   : > { %v3035_v21 = vrot.slane %v3034_v53, 1  ;;  %v2334_v61 = vrot.slane %v2320_v40, %v8482_v54  ;;  %v8759_v38 = vsel %vm3969_vm9, %v3747_v11, %v3977_v48  ;;  %v3750_v20 = vmax.f32 %v8733_v5, %v8723_v59 }
 0x1f3   : > { %v3099_v57 = vmax.f32 %v3097_v32, %v3098_v27  ;;  %v3112_v8 = vrot.slane %v3111_v51, 1  ;;  %v3042_v29 = vrot.slane %v3041_v14, 1  ;;  %v3106_v36 = vmax.f32 %v3104_v18, %v3105_v50 }
 0x1f4   : > { %v3049_v13 = vrot.slane %v3048_v19, 1  ;;  %v3056_v25 = vrot.slane %v3055_v43, 1  ;;  %v2335_v24 = vcombine.high %v2327_v47, %v2327_v47  ;;  %v2286_v23 = vcombine.high %v2078_v62, %v2078_v62 }
 0x1f5   : > { %v2293_v40 = vrot.slane %v2078_v62, %v8482_v54  ;;  %v8765_v30 = vmax.f32 %v8738_v37, 0.0  ;;  %v8773_v6 = vadd.f32 %v8770_v46, %v1990_v31  ;;  %v8776_v11 = vsel %vm3702_vm15, %v3092_v17, -inf }
 0x1f6   : > { %v3036_v48 = vmax.f32 %v3034_v53, %v3035_v21  ;;  %v2336_v52 = vcombine.high %v2334_v61, %v2334_v61  ;;  %v3114_v12 = vsel %vm2805_vm14, %v2327_v47, -inf  ;;  %v3113_v4 = vmax.f32 %v3111_v51, %v3112_v8 }
 0x1f7   : > { %v3755_v44 = vsel %vm3702_vm15, %v3099_v57, -inf  ;;  %v3043_v37 = vmax.f32 %v3041_v14, %v3042_v29  ;;  %v3115_v63 = vrot.slane %v3114_v12, 4  ;;  %v8781_v1 = vsel %vm3702_vm15, %v3106_v36, -inf }
 0x1f8   : > { %v3050_v55 = vmax.f32 %v3048_v19, %v3049_v13  ;;  %v3057_v26 = vmax.f32 %v3055_v43, %v3056_v25  ;;  %v3121_v42 = vsel %vm2805_vm14, %v2335_v24, -inf  ;;  %v3128_v9 = vsel %vm2805_vm14, %v2334_v61, -inf }
 0x1f9   : > { %v3116_v16 = vmax.f32 %v3114_v12, %v3115_v63  ;;  %v3122_v15 = vrot.slane %v3121_v42, 4  ;;  %v3135_v60 = vsel %vm2805_vm14, %v2336_v52, -inf  ;;  %v3751_v28 = vsel %vm3702_vm15, %v3036_v48, -inf }
 0x1fa   : > { %v3129_v39 = vrot.slane %v3128_v9, 4  ;;  %v3136_v3 = vrot.slane %v3135_v60, 4  ;;  %v2300_v45 = vrot.slane %v2286_v23, %v8482_v54  ;;  %v3754_v33 = vsel %vm3702_vm15, %v3043_v37, -inf }
 0x1fb   : > { %v3117_v56 = vrot.slane %v3116_v16, 2  ;;  %v3123_v32 = vmax.f32 %v3121_v42, %v3122_v15  ;;  %v2301_v18 = vcombine.high %v2293_v40, %v2293_v40  ;;  %v3058_v49 = vsel %vm2805_vm14, %v2293_v40, -inf  ;;  %v6233_v42 = vpop.f32.mrf.mxu0 }
 0x1fc   : > { %v3130_v22 = vmax.f32 %v3128_v9, %v3129_v39  ;;  %v3137_v53 = vmax.f32 %v3135_v60, %v3136_v3  ;;  %v2302_v10 = vcombine.high %v2300_v45, %v2300_v45  ;;  %v3059_v50 = vrot.slane %v3058_v49, 4 }
 0x1fd   : > { %v3118_v7 = vmax.f32 %v3116_v16, %v3117_v56  ;;  %v3124_v27 = vrot.slane %v3123_v32, 2  ;;  %v3065_v51 = vsel %vm2805_vm14, %v2301_v18, -inf  ;;  %v3072_v43 = vsel %vm2805_vm14, %v2300_v45, -inf }
 0x1fe   : > { %v3131_v47 = vrot.slane %v3130_v22, 2  ;;  %v3138_v14 = vrot.slane %v3137_v53, 2  ;;  %v3066_v19 = vrot.slane %v3065_v51, 4  ;;  %v3761_v62 = vsel %vm3702_vm15, %v3113_v4, -inf }
 0x1ff   : > { %v3125_v17 = vmax.f32 %v3123_v32, %v3124_v27  ;;  %v3060_v21 = vmax.f32 %v3058_v49, %v3059_v50  ;;  %v3073_v61 = vrot.slane %v3072_v43, 4  ;;  %v3757_v31 = vsel %vm3702_vm15, %v3050_v55, -inf }
 0x200   : > { %v3132_v57 = vmax.f32 %v3130_v22, %v3131_v47  ;;  %v3067_v8 = vmax.f32 %v3065_v51, %v3066_v19  ;;  %v3079_v29 = vsel %vm2805_vm14, %v2302_v10, -inf  ;;  %v3756_v36 = vmax.f32 %v3754_v33, %v3755_v44 }
 0x201   : > { %v3119_v13 = vrot.slane %v3118_v7, 1  ;;  %v3061_v25 = vrot.slane %v3060_v21, 2  ;;  %v3074_v24 = vmax.f32 %v3072_v43, %v3073_v61  ;;  %v3753_v23 = vmax.f32 %v3751_v28, %v8776_v11 }
 0x202   : > { %v3139_v40 = vmax.f32 %v3137_v53, %v3138_v14  ;;  %v3068_v48 = vrot.slane %v3067_v8, 2  ;;  %v3080_v52 = vrot.slane %v3079_v29, 4  ;;  %v3760_v12 = vsel %vm3702_vm15, %v3057_v26, -inf }
 0x203   : > { %v3126_v4 = vrot.slane %v3125_v17, 1  ;;  %v3062_v37 = vmax.f32 %v3060_v21, %v3061_v25  ;;  %v3075_v63 = vrot.slane %v3074_v24, 2  ;;  %v3759_v55 = vmax.f32 %v3757_v31, %v8781_v1 }
 0x204   : > { %v3133_v16 = vrot.slane %v3132_v57, 1  ;;  %v3069_v15 = vmax.f32 %v3067_v8, %v3068_v48  ;;  %v3081_v9 = vmax.f32 %v3079_v29, %v3080_v52  ;;  %v3980_v44 = vsel %vm3959_vm3, %v3756_v36, %v3753_v23 }
 0x205   : > { %v3120_v60 = vmax.f32 %v3118_v7, %v3119_v13  ;;  %v3063_v39 = vrot.slane %v3062_v37, 1  ;;  %v3076_v3 = vmax.f32 %v3074_v24, %v3075_v63  ;;  %v3762_v11 = vmax.f32 %v3760_v12, %v3761_v62 }
 0x206   : > { %v3140_v28 = vrot.slane %v3139_v40, 1  ;;  %v3082_v45 = vrot.slane %v3081_v9, 2  ;;  %v8800_v33 = vadd.f32 %v8770_v46, %v6233_v42  ;;  %v3127_v26 = vmax.f32 %v3125_v17, %v3126_v4 }
 0x207   : > { %v3070_v56 = vrot.slane %v3069_v15, 1  ;;  %v3979_v1 = vsel %vm3971_vm10, %v3750_v20, %v8759_v38  ;;  %v2371_v32 = vcombine.high %v8765_v30, %v8765_v30  ;;  %v3981_v18 = vsel %vm3961_vm5, %v3759_v55, %v3980_v44 }
 0x208   : > { %v3134_v22 = vmax.f32 %v3132_v57, %v3133_v16  ;;  %v3077_v53 = vrot.slane %v3076_v3, 1  ;;  %v4023_v10 = vrot.slane %v3979_v1, 7  ;;  %v3764_v49 = vsel %vm3702_vm15, %v3120_v60, -inf }
 0x209   : > { %v3064_v7 = vmax.f32 %v3062_v37, %v3063_v39  ;;  %v2378_v27 = vrot.slane %v8765_v30, %v8482_v54  ;;  %v2385_v50 = vrot.slane %v2371_v32, %v8482_v54  ;;  %v3141_v51 = vmax.f32 %v3139_v40, %v3140_v28 }
 0x20a   : > { %v3083_v59 = vmax.f32 %v3081_v9, %v3082_v45  ;;  %v8815_v5 = vsel %vm450_vm0, 0.0, %v4023_v10  ;;  %v2081_v38 = vmax.f32 %v8773_v6, 0.0  ;;  %v8819_v20 = vsel %vm3702_vm15, %v3127_v26, -inf }
 0x20b   : > { %v3071_v47 = vmax.f32 %v3069_v15, %v3070_v56  ;;  %v7018_v14 = vpack.i.bf16 %v8815_v5, %v8684_v41  ;;  %v8824_v19 = vsel %vm450_vm0, %v4023_v10, 0.0  ;;  %v8827_v30 = vsel %vm3702_vm15, %v3134_v22, -inf }
 0x20c   : > { %v3078_v43 = vmax.f32 %v3076_v3, %v3077_v53  ;;  %v3982_v62 = vsel %vm3963_vm6, %v3762_v11, %v3981_v18  ;;  %v4094_v17 = vrot.slane %v8815_v5, 2  ;;  %v3763_v6 = vsel %vm3702_vm15, %v3064_v7, -inf }
 0x20d   : > { %7019 = vrot.lane.b32.xlu1 %v7018_v14, %s7293_s30  ;;  %v4095_v21 = vrot.slane %v8824_v19, 2  ;;  %v2386_v61 = vcombine.high %v2378_v27, %v2378_v27  ;;  %v2387_v31 = vcombine.high %v2385_v50, %v2385_v50  ;;  %v3084_v57 = vrot.slane %v3083_v59, 1 }
 0x20e   : > { %v3198_v8 = vsel %vm2805_vm14, %v2378_v27, -inf  ;;  %v3212_v29 = vsel %vm2805_vm14, %v2385_v50, -inf  ;;  %v2337_v36 = vcombine.high %v2081_v38, %v2081_v38  ;;  %v3766_v13 = vsel %vm3702_vm15, %v3071_v47, -inf }
 0x20f   : > { %v8838_v25 = vsel %vm697_vm1, %v4094_v17, %v4095_v21  ;;  %v3199_v24 = vrot.slane %v3198_v8, 4  ;;  %v3205_v23 = vsel %vm2805_vm14, %v2386_v61, -inf  ;;  %v3213_v52 = vrot.slane %v3212_v29, 4  ;;  %v1993_v17 = vpop.f32.mrf.mxu0 }
 0x210   : > { %v7023_v40 = vpack.i.bf16 %v8838_v25, %v8707_v58  ;;  %v3206_v48 = vrot.slane %v3205_v23, 4  ;;  %v3219_v12 = vsel %vm2805_vm14, %v2387_v31, -inf  ;;  %v2344_v63 = vrot.slane %v2081_v38, %v8482_v54 }
 0x211   : > { %v3200_v4 = vmax.f32 %v3198_v8, %v3199_v24  ;;  %v3220_v37 = vrot.slane %v3219_v12, 4  ;;  %v2351_v42 = vrot.slane %v2337_v36, %v8482_v54  ;;  %v8847_v55 = vsel %vm3702_vm15, %v3141_v51, -inf }
 0x212   : > { %v3765_v16 = vmax.f32 %v3763_v6, %v3764_v49  ;;  %7024 = vrot.lane.b32.xlu0 %v7023_v40, %s7291_s16  ;;  %v3207_v15 = vmax.f32 %v3205_v23, %v3206_v48  ;;  %v3214_v9 = vmax.f32 %v3212_v29, %v3213_v52  ;;  %v2352_v60 = vcombine.high %v2344_v63, %v2344_v63 }
 0x213   : > { %v3201_v44 = vrot.slane %v3200_v4, 2  ;;  %v3221_v58 = vmax.f32 %v3219_v12, %v3220_v37  ;;  %v2353_v39 = vcombine.high %v2351_v42, %v2351_v42  ;;  %v3085_v3 = vmax.f32 %v3083_v59, %v3084_v57 }
 0x214   : > { %v3768_v11 = vmax.f32 %v3766_v13, %v8819_v20  ;;  %v3142_v28 = vsel %vm2805_vm14, %v2344_v63, -inf  ;;  %v3156_v45 = vsel %vm2805_vm14, %v2351_v42, -inf  ;;  %v8854_v26 = vsel %vm3702_vm15, %v3078_v43, -inf }
 0x215   : > { %v3208_v56 = vrot.slane %v3207_v15, 2  ;;  %v3143_v1 = vrot.slane %v3142_v28, 4  ;;  %v3149_v32 = vsel %vm2805_vm14, %v2352_v60, -inf  ;;  %v3983_v18 = vsel %vm3965_vm7, %v3765_v16, %v3982_v62 }
 0x216   : > { %v3215_v22 = vrot.slane %v3214_v9, 2  ;;  %v3150_v53 = vrot.slane %v3149_v32, 4  ;;  %v3157_v10 = vrot.slane %v3156_v45, 4  ;;  %v3202_v49 = vmax.f32 %v3200_v4, %v3201_v44 }
 0x217   : > { %v3222_v7 = vrot.slane %v3221_v58, 2  ;;  %v3144_v27 = vmax.f32 %v3142_v28, %v3143_v1  ;;  %v3163_v50 = vsel %vm2805_vm14, %v2353_v39, -inf  ;;  %v3771_v51 = vmax.f32 %v8854_v26, %v8827_v30 }
 0x218   : > { %v8862_v59 = vsel %vm3702_vm15, %v3085_v3, -inf  ;;  %v3151_v38 = vmax.f32 %v3149_v32, %v3150_v53  ;;  %v3158_v20 = vmax.f32 %v3156_v45, %v3157_v10  ;;  %v3209_v47 = vmax.f32 %v3207_v15, %v3208_v56 }
 0x219   : > { %v3145_v14 = vrot.slane %v3144_v27, 2  ;;  %v3164_v43 = vrot.slane %v3163_v50, 4  ;;  %v2084_v62 = vmax.f32 %v8800_v33, 0.0  ;;  %v3984_v6 = vsel %vm3967_vm8, %v3768_v11, %v3983_v18 }
 0x21a   : > { %v3216_v21 = vmax.f32 %v3214_v9, %v3215_v22  ;;  %v3152_v61 = vrot.slane %v3151_v38, 2  ;;  %v3159_v31 = vrot.slane %v3158_v20, 2  ;;  %v3203_v57 = vrot.slane %v3202_v49, 1 }
 0x21b   : > { %v3223_v8 = vmax.f32 %v3221_v58, %v3222_v7  ;;  %v3146_v29 = vmax.f32 %v3144_v27, %v3145_v14  ;;  %v3165_v36 = vmax.f32 %v3163_v50, %v3164_v43  ;;  %v3774_v13 = vmax.f32 %v8862_v59, %v8847_v55 }
 0x21c   : > { %v3153_v24 = vmax.f32 %v3151_v38, %v3152_v61  ;;  %v3160_v23 = vmax.f32 %v3158_v20, %v3159_v31  ;;  %v1994_v40 = vadd.f32 %v8770_v46, %v1993_v17  ;;  %v3210_v48 = vrot.slane %v3209_v47, 1 }
 0x21d   : > { %v3147_v52 = vrot.slane %v3146_v29, 1  ;;  %v3166_v33 = vrot.slane %v3165_v36, 2  ;;  %v2388_v12 = vcombine.high %v2084_v62, %v2084_v62  ;;  %v3217_v4 = vrot.slane %v3216_v21, 1 }
 0x21e   : > { %v3154_v37 = vrot.slane %v3153_v24, 1  ;;  %v3161_v63 = vrot.slane %v3160_v23, 1  ;;  %v2395_v42 = vrot.slane %v2084_v62, %v8482_v54  ;;  %v3204_v16 = vmax.f32 %v3202_v49, %v3203_v57 }
 0x21f   : > { %v3224_v15 = vrot.slane %v3223_v8, 1  ;;  %v3167_v9 = vmax.f32 %v3165_v36, %v3166_v33  ;;  %v2402_v44 = vrot.slane %v2388_v12, %v8482_v54  ;;  %v2082_v3 = vmax.f32 %v1994_v40, 0.0 }
 0x220   : > { %v3155_v58 = vmax.f32 %v3153_v24, %v3154_v37  ;;  %v2403_v60 = vcombine.high %v2395_v42, %v2395_v42  ;;  %v3226_v39 = vsel %vm2805_vm14, %v2395_v42, -inf  ;;  %v3211_v11 = vmax.f32 %v3209_v47, %v3210_v48 }
 0x221   : > { %v3148_v28 = vmax.f32 %v3146_v29, %v3147_v52  ;;  %v2404_v45 = vcombine.high %v2402_v44, %v2402_v44  ;;  %v3227_v56 = vrot.slane %v3226_v39, 4  ;;  %v3218_v1 = vmax.f32 %v3216_v21, %v3217_v4 }
 0x222   : > { %v3162_v32 = vmax.f32 %v3160_v23, %v3161_v63  ;;  %v3168_v18 = vrot.slane %v3167_v9, 1  ;;  %v3233_v22 = vsel %vm2805_vm14, %v2403_v60, -inf  ;;  %v3225_v53 = vmax.f32 %v3223_v8, %v3224_v15 }
 0x223   : > { %v3776_v10 = vsel %vm3702_vm15, %v3204_v16, -inf  ;;  %v3778_v49 = vsel %vm3702_vm15, %v3155_v58, -inf  ;;  %v3228_v7 = vmax.f32 %v3226_v39, %v3227_v56  ;;  %v3234_v27 = vrot.slane %v3233_v22, 4 }
 0x224   : > { %v3240_v50 = vsel %vm2805_vm14, %v2402_v44, -inf  ;;  %v3247_v38 = vsel %vm2805_vm14, %v2404_v45, -inf  ;;  %v2354_v20 = vcombine.high %v2082_v3, %v2082_v3  ;;  %v3779_v47 = vsel %vm3702_vm15, %v3211_v11, -inf }
 0x225   : > { %v3775_v14 = vsel %vm3702_vm15, %v3148_v28, -inf  ;;  %v3229_v43 = vrot.slane %v3228_v7, 2  ;;  %v3241_v62 = vrot.slane %v3240_v50, 4  ;;  %v3169_v17 = vmax.f32 %v3167_v9, %v3168_v18 }
 0x226   : > { %v3781_v21 = vsel %vm3702_vm15, %v3162_v32, -inf  ;;  %v3235_v61 = vmax.f32 %v3233_v22, %v3234_v27  ;;  %v3248_v31 = vrot.slane %v3247_v38, 4  ;;  %v3782_v57 = vsel %vm3702_vm15, %v3218_v1, -inf }
 0x227   : > { %v3780_v8 = vmax.f32 %v3778_v49, %v3779_v47  ;;  %v2361_v29 = vrot.slane %v2082_v3, %v8482_v54  ;;  %v2368_v36 = vrot.slane %v2354_v20, %v8482_v54  ;;  %v3777_v24 = vmax.f32 %v3775_v14, %v3776_v10 }
 0x228   : > { %v3230_v23 = vmax.f32 %v3228_v7, %v3229_v43  ;;  %v3242_v40 = vmax.f32 %v3240_v50, %v3241_v62  ;;  %v3985_v48 = vsel %vm3969_vm9, %v3771_v51, %v3984_v6  ;;  %v3783_v52 = vmax.f32 %v3781_v21, %v3782_v57  ;;  %v6236_v7 = vpop.f32.mrf.mxu0 }
 0x229   : > { %v3236_v33 = vrot.slane %v3235_v61, 2  ;;  %v2369_v12 = vcombine.high %v2361_v29, %v2361_v29  ;;  %v2370_v4 = vcombine.high %v2368_v36, %v2368_v36  ;;  %v3784_v37 = vsel %vm3702_vm15, %v3169_v17, -inf }
 0x22a   : > { %v3249_v63 = vmax.f32 %v3247_v38, %v3248_v31  ;;  %v3170_v42 = vsel %vm2805_vm14, %v2361_v29, -inf  ;;  %v3184_v16 = vsel %vm2805_vm14, %v2368_v36, -inf  ;;  %v3987_v15 = vsel %vm3959_vm3, %v3780_v8, %v3777_v24  ;;  %v2006_v36 = vpop.f32.mrf.mxu0 }
 0x22b   : > { %v3171_v9 = vrot.slane %v3170_v42, 4  ;;  %v3177_v44 = vsel %vm2805_vm14, %v2369_v12, -inf  ;;  %v3986_v30 = vsel %vm3971_vm10, %v3774_v13, %v3985_v48  ;;  %v3231_v26 = vrot.slane %v3230_v23, 1 }
 0x22c   : > { %v3243_v51 = vrot.slane %v3242_v40, 2  ;;  %v3178_v6 = vrot.slane %v3177_v44, 4  ;;  %v3185_v58 = vrot.slane %v3184_v16, 4  ;;  %v3785_v60 = vsel %vm3702_vm15, %v3225_v53, -inf }
 0x22d   : > { %v3237_v39 = vmax.f32 %v3235_v61, %v3236_v33  ;;  %v3172_v3 = vmax.f32 %v3170_v42, %v3171_v9  ;;  %v3191_v11 = vsel %vm2805_vm14, %v2370_v4, -inf  ;;  %v3786_v28 = vmax.f32 %v3784_v37, %v3785_v60 }
 0x22e   : > { %v3250_v45 = vrot.slane %v3249_v63, 2  ;;  %v3179_v56 = vmax.f32 %v3177_v44, %v3178_v6  ;;  %v3186_v1 = vmax.f32 %v3184_v16, %v3185_v58  ;;  %v3988_v32 = vsel %vm3961_vm5, %v3783_v52, %v3987_v15  ;;  %v6237_v44 = vpop.f32.mrf.mxu0 }
 0x22f   : > { %v3173_v18 = vrot.slane %v3172_v3, 2  ;;  %v3192_v55 = vrot.slane %v3191_v11, 4  ;;  %v4024_v59 = vrot.slane %v3986_v30, 7  ;;  %v3232_v13 = vmax.f32 %v3230_v23, %v3231_v26 }
 0x230   : > { %v3244_v22 = vmax.f32 %v3242_v40, %v3243_v51  ;;  %v3180_v10 = vrot.slane %v3179_v56, 2  ;;  %v3187_v49 = vrot.slane %v3186_v1, 2  ;;  %v3238_v27 = vrot.slane %v3237_v39, 1 }
 0x231   : > { %v3174_v53 = vmax.f32 %v3172_v3, %v3173_v18  ;;  %v3193_v50 = vmax.f32 %v3191_v11, %v3192_v55  ;;  %v8900_v38 = vsel %vm450_vm0, 0.0, %v4024_v59  ;;  %v3251_v20 = vmax.f32 %v3249_v63, %v3250_v45 }
 0x232   : > { %v3181_v47 = vmax.f32 %v3179_v56, %v3180_v10  ;;  %v3188_v14 = vmax.f32 %v3186_v1, %v3187_v49  ;;  %v7028_v43 = vpack.i.bf16 %v8900_v38, %v8815_v5  ;;  %v4048_v21 = vsel %vm450_vm0, %v4024_v59, 0.0 }
 0x233   : > { %v3175_v62 = vrot.slane %v3174_v53, 1  ;;  %v3194_v17 = vrot.slane %v3193_v50, 2  ;;  %v4072_v61 = vrot.slane %v8815_v5, 1  ;;  %v3245_v31 = vrot.slane %v3244_v22, 1 }
 0x234   : > { %v3182_v57 = vrot.slane %v3181_v47, 1  ;;  %7029 = vrot.lane.b32.xlu0 %v7028_v43, %s10166_s22  ;;  %v4073_v8 = vrot.slane %v8824_v19, 1  ;;  %v4075_v29 = vrot.slane %v8900_v38, 1  ;;  %v3239_v24 = vmax.f32 %v3237_v39, %v3238_v27 }
 0x235   : > { %v3189_v23 = vrot.slane %v3188_v14, 1  ;;  %v3195_v40 = vmax.f32 %v3193_v50, %v3194_v17  ;;  %v4076_v48 = vrot.slane %v4048_v21, 1  ;;  %v3252_v52 = vrot.slane %v3251_v20, 1 }
 0x236   : > { %v3176_v33 = vmax.f32 %v3174_v53, %v3175_v62  ;;  %v4097_v12 = vrot.slane %v8900_v38, 2  ;;  %v4098_v4 = vrot.slane %v4048_v21, 2  ;;  %v3183_v37 = vmax.f32 %v3181_v47, %v3182_v57 }
 0x237   : > { %v8911_v63 = vsel %vm616_vm2, %v4072_v61, %v4073_v8  ;;  %v8914_v42 = vsel %vm616_vm2, %v4075_v29, %v4076_v48  ;;  %v2015_v19 = vadd.f32 %v8770_v46, %v6236_v7  ;;  %v8918_v16 = vsel %vm3702_vm15, %v3232_v13, -inf  ;;  %v7144_v8 = vld [vmem:[%s10149_s3 + $0x78] sm:$0xff]  }
 0x238   : > { %v8921_v15 = vsel %vm3963_vm6, %v3786_v28, %v3988_v32  ;;  %v7038_v9 = vpack.i.bf16 %v8914_v42, %v8911_v63  ;;  %v3246_v30 = vmax.f32 %v3244_v22, %v3245_v31  ;;  %v3190_v26 = vmax.f32 %v3188_v14, %v3189_v23  ;;  %v7145_v29 = vld [vmem:[%s10149_s3 + $0x38] sm:$0xff]   ;;  %6103 = vmatprep.subr.bf16.mxu1 %v7144_v8 }
 0x239   : > { %v3196_v51 = vrot.slane %v3195_v40, 1  ;;  %v3787_v6 = vsel %vm3702_vm15, %v3176_v33, -inf  ;;  %v8928_v58 = vsel %vm697_vm1, %v4097_v12, %v4098_v4  ;;  %v2087_v60 = vmax.f32 %v2015_v19, 0.0  ;;  %6104 = vmatpush3.bf16.msra.mxu1 %v7145_v29  ;;  %v7149_v29 = vld [vmem:[%s10149_s3 + $0x28] sm:$0xff]  }
 0x23a   : > { %7039 = vrot.lane.b32.xlu1 %v7038_v9, %s7291_s16  ;;  %v2007_v39 = vadd.f32 %v8770_v46, %v2006_v36  ;;  %v8931_v3 = vmax.f32 %v3251_v20, %v3252_v52  ;;  %v8934_v11 = vsel %vm3702_vm15, %v3239_v24, -inf  ;;  %v8937_v28 = vsel %vm3702_vm15, %v3183_v37, -inf  ;;  %7034 = vrot.lane.b32.xlu0 %v7038_v9, %s7293_s30 }
 0x23b   : > { %v2018_v45 = vadd.f32 %v8770_v46, %v6237_v44  ;;  %v7043_v56 = vpack.i.bf16 %v8928_v58, %v8838_v25  ;;  %v2439_v1 = vcombine.high %v2087_v60, %v2087_v60  ;;  %v2446_v32 = vrot.slane %v2087_v60, %v8482_v54 }
 0x23c   : > { %v2085_v18 = vmax.f32 %v2007_v39, 0.0  ;;  %v8945_v55 = vsel %vm3702_vm15, %v3246_v30, -inf  ;;  %v3197_v59 = vmax.f32 %v3195_v40, %v3196_v51  ;;  %v3789_v13 = vmax.f32 %v3787_v6, %v8918_v16 }
 0x23d   : > { %v8949_v22 = vsel %vm3702_vm15, %v3190_v26, -inf  ;;  %v2453_v10 = vrot.slane %v2439_v1, %v8482_v54  ;;  %v2454_v49 = vcombine.high %v2446_v32, %v2446_v32  ;;  %v3310_v7 = vsel %vm2805_vm14, %v2446_v32, -inf }
 0x23e   : > { %7044 = vrot.lane.b32.xlu1 %v7043_v56, %s10166_s22  ;;  %v2405_v27 = vcombine.high %v2085_v18, %v2085_v18  ;;  %v3792_v53 = vmax.f32 %v8937_v28, %v8934_v11  ;;  %v3311_v50 = vrot.slane %v3310_v7, 4  ;;  %v2412_v20 = vrot.slane %v2085_v18, %v8482_v54 }
 0x23f   : > { %v8957_v47 = vmax.f32 %v2018_v45, 0.0  ;;  %v2455_v14 = vcombine.high %v2453_v10, %v2453_v10  ;;  %v3317_v43 = vsel %vm2805_vm14, %v2454_v49, -inf  ;;  %v3324_v62 = vsel %vm2805_vm14, %v2453_v10, -inf }
 0x240   : > { %v2419_v17 = vrot.slane %v2405_v27, %v8482_v54  ;;  %v3312_v21 = vmax.f32 %v3310_v7, %v3311_v50  ;;  %v3318_v61 = vrot.slane %v3317_v43, 4  ;;  %v3325_v31 = vrot.slane %v3324_v62, 4 }
 0x241   : > { %v2420_v57 = vcombine.high %v2412_v20, %v2412_v20  ;;  %v3331_v36 = vsel %vm2805_vm14, %v2455_v14, -inf  ;;  %v3254_v23 = vsel %vm2805_vm14, %v2412_v20, -inf  ;;  %v3990_v11 = vsel %vm3965_vm7, %v3789_v13, %v8921_v15  ;;  %v7146_v20 = vld [vmem:[%s10149_s3 + $0x70] sm:$0xff]  }
 0x242   : > { %v2421_v24 = vcombine.high %v2419_v17, %v2419_v17  ;;  %v3268_v40 = vsel %vm2805_vm14, %v2419_v17, -inf  ;;  %v3313_v48 = vrot.slane %v3312_v21, 2  ;;  %v3319_v52 = vmax.f32 %v3317_v43, %v3318_v61  ;;  %v7147_v15 = vld [vmem:[%s10149_s3 + $0x30] sm:$0xff]   ;;  %v2009_v61 = vpop.f32.mrf.mxu0  ;;  %6105 = vmatprep.subr.bf16.mxu1 %v7146_v20  ;;  %v7153_v20 = vld [vmem:[%s10149_s3 + $0x18] sm:$0xff]  }
 0x243   : > { %v3326_v33 = vmax.f32 %v3324_v62, %v3325_v31  ;;  %v3332_v12 = vrot.slane %v3331_v36, 4  ;;  %v3255_v4 = vrot.slane %v3254_v23, 4  ;;  %v3261_v37 = vsel %vm2805_vm14, %v2420_v57, -inf  ;;  %6106 = vmatpush3.bf16.msra.mxu1 %v7147_v15 }
 0x244   : > { %v3269_v19 = vrot.slane %v3268_v40, 4  ;;  %v3275_v16 = vsel %vm2805_vm14, %v2421_v24, -inf  ;;  %v3314_v9 = vmax.f32 %v3312_v21, %v3313_v48  ;;  %v3320_v44 = vrot.slane %v3319_v52, 2 }
 0x245   : > { %v3327_v30 = vrot.slane %v3326_v33, 2  ;;  %v3333_v26 = vmax.f32 %v3331_v36, %v3332_v12  ;;  %v3256_v51 = vmax.f32 %v3254_v23, %v3255_v4  ;;  %v3262_v6 = vrot.slane %v3261_v37, 4  ;;  %v6240_v23 = vpop.f32.mrf.mxu0 }
 0x246   : > { %v3270_v60 = vmax.f32 %v3268_v40, %v3269_v19  ;;  %v3276_v39 = vrot.slane %v3275_v16, 4  ;;  %v3315_v28 = vrot.slane %v3314_v9, 1  ;;  %v3321_v45 = vmax.f32 %v3319_v52, %v3320_v44 }
 0x247   : > { %v3334_v56 = vrot.slane %v3333_v26, 2  ;;  %v3328_v1 = vmax.f32 %v3326_v33, %v3327_v30  ;;  %v3257_v32 = vrot.slane %v3256_v51, 2  ;;  %v3263_v18 = vmax.f32 %v3261_v37, %v3262_v6 }
 0x248   : > { %v3277_v10 = vmax.f32 %v3275_v16, %v3276_v39  ;;  %v3795_v49 = vmax.f32 %v8949_v22, %v8945_v55  ;;  %v3271_v27 = vrot.slane %v3270_v60, 2  ;;  %v2456_v50 = vcombine.high %v8957_v47, %v8957_v47  ;;  %v7148_v55 = vld [vmem:[%s10149_s3 + $0x68] sm:$0xff]  }
 0x249   : > { %v3335_v7 = vmax.f32 %v3333_v26, %v3334_v56  ;;  %v8986_v13 = vsel %vm3702_vm15, %v3197_v59, -inf  ;;  %v3258_v14 = vmax.f32 %v3256_v51, %v3257_v32  ;;  %v3264_v43 = vrot.slane %v3263_v18, 2  ;;  %6107 = vmatprep.subr.bf16.mxu1 %v7148_v55  ;;  %v7151_v26 = vld [vmem:[%s10149_s3 + $0x20] sm:$0xff]   ;;  %v7154_v55 = vld [vmem:[%s10149_s3 + $0x50] sm:$0xff]  }
 0x24a   : > { %v3278_v62 = vrot.slane %v3277_v10, 2  ;;  %v3991_v22 = vsel %vm3967_vm8, %v3792_v53, %v3990_v11  ;;  %v3322_v17 = vrot.slane %v3321_v45, 1  ;;  %v2463_v21 = vrot.slane %v8957_v47, %v8482_v54  ;;  %6108 = vmatpush3.bf16.msra.mxu1 %v7149_v29  ;;  %v7152_v11 = vld [vmem:[%s10149_s3 + $0x58] sm:$0xff]  }
 0x24b   : > { %v8996_v31 = vsel %vm3702_vm15, %v8931_v3, -inf  ;;  %v3316_v59 = vmax.f32 %v3314_v9, %v3315_v28  ;;  %v3329_v57 = vrot.slane %v3328_v1, 1  ;;  %v3265_v8 = vmax.f32 %v3263_v18, %v3264_v43  ;;  %v7150_v3 = vld [vmem:[%s10149_s3 + $0x60] sm:$0xff]  }
 0x24c   : > { %v3798_v53 = vmax.f32 %v8986_v13, %v8996_v31  ;;  %v3336_v36 = vrot.slane %v3335_v7, 1  ;;  %v3272_v24 = vmax.f32 %v3270_v60, %v3271_v27  ;;  %v2470_v47 = vrot.slane %v2456_v50, %v8482_v54  ;;  %6109 = vmatprep.subr.bf16.mxu1 %v7150_v3  ;;  %v7155_v3 = vld [vmem:[%s10149_s3 + $0x10] sm:$0xff]  }
 0x24d   : > { %v3259_v40 = vrot.slane %v3258_v14, 1  ;;  %v3279_v48 = vmax.f32 %v3277_v10, %v3278_v62  ;;  %v2010_v52 = vadd.f32 %v8770_v46, %v2009_v61  ;;  %v9009_v33 = vsel %vm3969_vm9, %v3795_v49, %v3991_v22 }
 0x24e   : > { %v3323_v12 = vmax.f32 %v3321_v45, %v3322_v17  ;;  %v3266_v4 = vrot.slane %v3265_v8, 1  ;;  %v2471_v37 = vcombine.high %v2463_v21, %v2463_v21  ;;  %v3338_v19 = vsel %vm2805_vm14, %v2463_v21, -inf  ;;  %6110 = vmatpush3.bf16.msra.mxu1 %v7151_v26 }
 0x24f   : > { %v3330_v16 = vmax.f32 %v3328_v1, %v3329_v57  ;;  %v9013_v9 = vsel %vm3702_vm15, %v3316_v59, -inf  ;;  %v2472_v44 = vcombine.high %v2470_v47, %v2470_v47  ;;  %v9016_v30 = vadd.f32 %v8770_v46, %v6240_v23  ;;  %6111 = vmatprep.subr.bf16.mxu1 %v7152_v11 }
 0x250   : > { %v3337_v51 = vmax.f32 %v3335_v7, %v3336_v36  ;;  %v3273_v6 = vrot.slane %v3272_v24, 1  ;;  %v3339_v60 = vrot.slane %v3338_v19, 4  ;;  %v3345_v39 = vsel %vm2805_vm14, %v2471_v37, -inf }
 0x251   : > { %v3260_v28 = vmax.f32 %v3258_v14, %v3259_v40  ;;  %v3280_v45 = vrot.slane %v3279_v48, 1  ;;  %v3346_v56 = vrot.slane %v3345_v39, 4  ;;  %v3352_v46 = vsel %vm2805_vm14, %v2470_v47, -inf }
 0x252   : > { %v3803_v1 = vsel %vm3702_vm15, %v3323_v12, -inf  ;;  %v3267_v32 = vmax.f32 %v3265_v8, %v3266_v4  ;;  %v3340_v18 = vmax.f32 %v3338_v19, %v3339_v60  ;;  %v3353_v10 = vrot.slane %v3352_v46, 4  ;;  %6112 = vmatpush3.bf16.msra.mxu1 %v7153_v20  ;;  %v7156_v4 = vld [vmem:[%s10149_s3 + $0x48] sm:$0xff]  }
 0x253   : > { %v9028_v49 = vsel %vm3702_vm15, %v3330_v16, -inf  ;;  %v3347_v7 = vmax.f32 %v3345_v39, %v3346_v56  ;;  %v3359_v27 = vsel %vm2805_vm14, %v2472_v44, -inf  ;;  %v2086_v50 = vmax.f32 %v2010_v52, 0.0  ;;  %6113 = vmatprep.subr.bf16.mxu1 %v7154_v55 }
 0x254   : > { %v9035_v15 = vsel %vm3702_vm15, %v3337_v51, -inf  ;;  %v3274_v14 = vmax.f32 %v3272_v24, %v3273_v6  ;;  %v3354_v43 = vmax.f32 %v3352_v46, %v3353_v10  ;;  %v3360_v62 = vrot.slane %v3359_v27, 4 }
 0x255   : > { %v3281_v22 = vmax.f32 %v3279_v48, %v3280_v45  ;;  %v3799_v17 = vsel %vm3702_vm15, %v3260_v28, -inf  ;;  %v2422_v21 = vcombine.high %v2086_v50, %v2086_v50  ;;  %v2429_v61 = vrot.slane %v2086_v50, %v8482_v54  ;;  %v7157_v45 = vld [vmem:[%s10149_s3 + $0x8] sm:$0xff]  }
 0x256   : > { %v3802_v59 = vsel %vm3702_vm15, %v3267_v32, -inf  ;;  %v3341_v57 = vrot.slane %v3340_v18, 2  ;;  %v3348_v8 = vrot.slane %v3347_v7, 2  ;;  %v3361_v29 = vmax.f32 %v3359_v27, %v3360_v62  ;;  %6114 = vmatpush3.bf16.msra.mxu1 %v7155_v3 }
 0x257   : > { %v3355_v36 = vrot.slane %v3354_v43, 2  ;;  %v2436_v24 = vrot.slane %v2422_v21, %v8482_v54  ;;  %v2437_v47 = vcombine.high %v2429_v61, %v2429_v61  ;;  %v3282_v23 = vsel %vm2805_vm14, %v2429_v61, -inf  ;;  %6115 = vmatprep.subr.bf16.mxu1 %v7156_v4 }
 0x258   : > { %v3801_v40 = vmax.f32 %v3799_v17, %v9013_v9  ;;  %v3805_v48 = vsel %vm3702_vm15, %v3274_v14, -inf  ;;  %v3362_v52 = vrot.slane %v3361_v29, 2  ;;  %v3283_v12 = vrot.slane %v3282_v23, 4 }
 0x259   : > { %v3804_v37 = vmax.f32 %v3802_v59, %v3803_v1  ;;  %v2438_v19 = vcombine.high %v2436_v24, %v2436_v24  ;;  %v3289_v16 = vsel %vm2805_vm14, %v2437_v47, -inf  ;;  %v3296_v44 = vsel %vm2805_vm14, %v2436_v24, -inf  ;;  %v9082_v47 = vpop.permute.xlu1 %7009 }
 0x25a   : > { %v3342_v26 = vmax.f32 %v3340_v18, %v3341_v57  ;;  %v3349_v51 = vmax.f32 %v3347_v7, %v3348_v8  ;;  %v3284_v6 = vmax.f32 %v3282_v23, %v3283_v12  ;;  %v3993_v9 = vsel %vm3971_vm10, %v3798_v53, %v9009_v33  ;;  %6116 = vmatpush3.bf16.msra.mxu1 %v7157_v45  ;;  %v7158_v57 = vld [vmem:[%s10149_s3 + $0x40] sm:$0xff]  }
 0x25b   : > { %v3356_v60 = vmax.f32 %v3354_v43, %v3355_v36  ;;  %v3290_v39 = vrot.slane %v3289_v16, 4  ;;  %v3297_v11 = vrot.slane %v3296_v44, 4  ;;  %v3303_v28 = vsel %vm2805_vm14, %v2438_v19, -inf  ;;  %6117 = vmatprep.subr.bf16.mxu1 %v7158_v57 }
 0x25c   : > { %v3807_v56 = vmax.f32 %v3805_v48, %v9028_v49  ;;  %v3808_v46 = vsel %vm3702_vm15, %v3281_v22, -inf  ;;  %v3363_v1 = vmax.f32 %v3361_v29, %v3362_v52  ;;  %v3285_v32 = vrot.slane %v3284_v6, 2 }
 0x25d   : > { %v3994_v13 = vsel %vm3959_vm3, %v3804_v37, %v3801_v40  ;;  %v3291_v31 = vmax.f32 %v3289_v16, %v3290_v39  ;;  %v3298_v53 = vmax.f32 %v3296_v44, %v3297_v11  ;;  %v3304_v33 = vrot.slane %v3303_v28, 4  ;;  %v2022_v39 = vpop.f32.mrf.mxu0 }
 0x25e   : > { %v3343_v18 = vrot.slane %v3342_v26, 1  ;;  %v3350_v10 = vrot.slane %v3349_v51, 1  ;;  %v3286_v7 = vmax.f32 %v3284_v6, %v3285_v32  ;;  %v4025_v27 = vrot.slane %v3993_v9, 7 }
 0x25f   : > { %v3357_v50 = vrot.slane %v3356_v60, 1  ;;  %v3292_v20 = vrot.slane %v3291_v31, 2  ;;  %v3299_v14 = vrot.slane %v3298_v53, 2  ;;  %v3305_v43 = vmax.f32 %v3303_v28, %v3304_v33 }
 0x260   : > { %v3364_v49 = vrot.slane %v3363_v1, 1  ;;  %v3287_v62 = vrot.slane %v3286_v7, 1  ;;  %v9068_v55 = vsel %vm450_vm0, 0.0, %v4025_v27  ;;  %v9071_v22 = vsel %vm450_vm0, %v4025_v27, 0.0  ;;  %v6241_v27 = vpop.f32.mrf.mxu0 }
 0x261   : > { %v3293_v17 = vmax.f32 %v3291_v31, %v3292_v20  ;;  %v3300_v21 = vmax.f32 %v3298_v53, %v3299_v14  ;;  %v3306_v61 = vrot.slane %v3305_v43, 2  ;;  %v7048_v59 = vpack.i.bf16 %v9068_v55, %v8900_v38  ;;  %v7159_v53 = vld [vmem:[%s10149_s3] sm:$0xff]  }
 0x262   : > { %v3810_v8 = vmax.f32 %v3808_v46, %v9035_v15  ;;  %v3995_v29 = vsel %vm3961_vm5, %v3807_v56, %v3994_v13  ;;  %v4100_v36 = vrot.slane %v9068_v55, 2  ;;  %v4101_v24 = vrot.slane %v9071_v22, 2  ;;  %6118 = vmatpush3.bf16.msra.mxu1 %v7159_v53 }
 0x263   : > { %v3344_v23 = vmax.f32 %v3342_v26, %v3343_v18  ;;  %v3288_v3 = vmax.f32 %v3286_v7, %v3287_v62  ;;  %v3294_v40 = vrot.slane %v3293_v17, 1  ;;  %v3307_v48 = vmax.f32 %v3305_v43, %v3306_v61  ;;  %7049 = vrot.lane.b32.xlu1 %v7048_v59, %s7293_s30  ;;  %v9122_v59 = vld [vmem:[%s10148_s2] ss:$0 sm:$0xff] }
 0x264   : > { %v3351_v52 = vmax.f32 %v3349_v51, %v3350_v10  ;;  %v3358_v12 = vmax.f32 %v3356_v60, %v3357_v50  ;;  %v9086_v4 = vsel %vm697_vm1, %v4100_v36, %v4101_v24  ;;  %v2091_v15 = vmax.f32 %v9016_v30, 0.0 }
 0x265   : > { %v3365_v37 = vmax.f32 %v3363_v1, %v3364_v49  ;;  %v3301_v19 = vrot.slane %v3300_v21, 1  ;;  %v7012_v16 = vunpack.i.h.bf16 %v9082_v47  ;;  %v3996_v44 = vsel %vm3963_vm6, %v3810_v8, %v3995_v29 }
 0x266   : > { %v7053_v26 = vpack.i.bf16 %v9086_v4, %v8928_v58  ;;  %v2507_v6 = vcombine.high %v2091_v15, %v2091_v15  ;;  %v2514_v9 = vrot.slane %v2091_v15, %v8482_v54  ;;  %v3812_v51 = vsel %vm3702_vm15, %v3344_v23, -inf }
 0x267   : > { %v3295_v60 = vmax.f32 %v3293_v17, %v3294_v40  ;;  %v3308_v11 = vrot.slane %v3307_v48, 1  ;;  %v3811_v28 = vsel %vm3702_vm15, %v3288_v3, -inf  ;;  %v3815_v30 = vsel %vm3702_vm15, %v3351_v52, -inf }
 0x268   : > { %v9098_v45 = vsel %vm3702_vm15, %v3358_v12, -inf  ;;  %7054 = vrot.lane.b32.xlu0 %v7053_v26, %s7291_s16  ;;  %v2521_v56 = vrot.slane %v2507_v6, %v8482_v54  ;;  %v2522_v46 = vcombine.high %v2514_v9, %v2514_v9  ;;  %v9103_v1 = vsel %vm3702_vm15, %v3365_v37, -inf  ;;  %v2025_v12 = vpop.f32.mrf.mxu0 }
 0x269   : > { %v3302_v32 = vmax.f32 %v3300_v21, %v3301_v19  ;;  %v9107_v13 = vsel %vm3702_vm15, %v8684_v41, %v7012_v16  ;;  %v3422_v31 = vsel %vm2805_vm14, %v2514_v9, -inf  ;;  %v3813_v33 = vmax.f32 %v3811_v28, %v3812_v51 }
 0x26a   : > { %v7011_v18 = vunpack.i.l.bf16 %v9082_v47  ;;  %v2523_v10 = vcombine.high %v2521_v56, %v2521_v56  ;;  %v3423_v7 = vrot.slane %v3422_v31, 4  ;;  %v3309_v50 = vmax.f32 %v3307_v48, %v3308_v11 }
 0x26b   : > { %v3814_v20 = vsel %vm3702_vm15, %v3295_v60, -inf  ;;  %v3429_v14 = vsel %vm2805_vm14, %v2522_v46, -inf  ;;  %v3436_v41 = vsel %vm2805_vm14, %v2521_v56, -inf  ;;  %v3817_v21 = vsel %vm3702_vm15, %v3302_v32, -inf }
 0x26c   : > { %v3424_v43 = vmax.f32 %v3422_v31, %v3423_v7  ;;  %v3430_v49 = vrot.slane %v3429_v14, 4  ;;  %v3437_v62 = vrot.slane %v3436_v41, 4  ;;  %v3443_v17 = vsel %vm2805_vm14, %v2523_v10, -inf }
 0x26d   : > { %v3444_v61 = vrot.slane %v3443_v17, 4  ;;  %v2023_v57 = vadd.f32 %v9122_v59, %v2022_v39  ;;  %v2034_v8 = vadd.f32 %v9122_v59, %v6241_v27  ;;  %v3816_v29 = vmax.f32 %v3814_v20, %v3815_v30 }
 0x26e   : > { %v3425_v36 = vrot.slane %v3424_v43, 2  ;;  %v3431_v24 = vmax.f32 %v3429_v14, %v3430_v49  ;;  %v3438_v23 = vmax.f32 %v3436_v41, %v3437_v62  ;;  %v9127_v3 = vsel %vm3702_vm15, %v3309_v50, -inf }
 0x26f   : > { %v3997_v40 = vsel %vm3965_vm7, %v3813_v33, %v3996_v44  ;;  %v3445_v48 = vmax.f32 %v3443_v17, %v3444_v61  ;;  %v2089_v52 = vmax.f32 %v2023_v57, 0.0  ;;  %v2092_v16 = vmax.f32 %v2034_v8, 0.0 }
 0x270   : > { %v3426_v15 = vmax.f32 %v3424_v43, %v3425_v36  ;;  %v3432_v37 = vrot.slane %v3431_v24, 2  ;;  %v3439_v19 = vrot.slane %v3438_v23, 2  ;;  %v3819_v26 = vmax.f32 %v3817_v21, %v9098_v45 }
 0x271   : > { %v3446_v6 = vrot.slane %v3445_v48, 2  ;;  %v2473_v9 = vcombine.high %v2089_v52, %v2089_v52  ;;  %v2480_v39 = vrot.slane %v2089_v52, %v8482_v54  ;;  %v3822_v51 = vmax.f32 %v9127_v3, %v9103_v1 }
 0x272   : > { %v3998_v60 = vsel %vm3967_vm8, %v3816_v29, %v3997_v40  ;;  %v3433_v11 = vmax.f32 %v3431_v24, %v3432_v37  ;;  %v2026_v44 = vadd.f32 %v9122_v59, %v2025_v12  ;;  %v3427_v28 = vrot.slane %v3426_v15, 1 }
 0x273   : > { %v2487_v30 = vrot.slane %v2473_v9, %v8482_v54  ;;  %v2488_v56 = vcombine.high %v2480_v39, %v2480_v39  ;;  %v3366_v46 = vsel %vm2805_vm14, %v2480_v39, -inf  ;;  %v3440_v32 = vmax.f32 %v3438_v23, %v3439_v19 }
 0x274   : > { %v3447_v45 = vmax.f32 %v3445_v48, %v3446_v6  ;;  %v3367_v31 = vrot.slane %v3366_v46, 4  ;;  %v2524_v53 = vcombine.high %v2092_v16, %v2092_v16  ;;  %v3434_v33 = vrot.slane %v3433_v11, 1 }
 0x275   : > { %v2489_v10 = vcombine.high %v2487_v30, %v2487_v30  ;;  %v3373_v7 = vsel %vm2805_vm14, %v2488_v56, -inf  ;;  %v3380_v27 = vsel %vm2805_vm14, %v2487_v30, -inf  ;;  %v2531_v20 = vrot.slane %v2092_v16, %v8482_v54 }
 0x276   : > { %v3368_v50 = vmax.f32 %v3366_v46, %v3367_v31  ;;  %v9141_v14 = vmax.f32 %v2026_v44, 0.0  ;;  %v3999_v41 = vsel %vm3969_vm9, %v3819_v26, %v3998_v60  ;;  %v3428_v43 = vmax.f32 %v3426_v15, %v3427_v28 }
 0x277   : > { %v3374_v49 = vrot.slane %v3373_v7, 4  ;;  %v3381_v62 = vrot.slane %v3380_v27, 4  ;;  %v3387_v17 = vsel %vm2805_vm14, %v2489_v10, -inf  ;;  %v3441_v21 = vrot.slane %v3440_v32, 1 }
 0x278   : > { %v3448_v61 = vrot.slane %v3447_v45, 1  ;;  %v3369_v57 = vrot.slane %v3368_v50, 2  ;;  %v3388_v8 = vrot.slane %v3387_v17, 4  ;;  %v3435_v29 = vmax.f32 %v3433_v11, %v3434_v33 }
 0x279   : > { %v3375_v36 = vmax.f32 %v3373_v7, %v3374_v49  ;;  %v3382_v24 = vmax.f32 %v3380_v27, %v3381_v62  ;;  %v2538_v23 = vrot.slane %v2524_v53, %v8482_v54  ;;  %v2539_v52 = vcombine.high %v2531_v20, %v2531_v20 }
 0x27a   : > { %v3370_v40 = vmax.f32 %v3368_v50, %v3369_v57  ;;  %v3389_v48 = vmax.f32 %v3387_v17, %v3388_v8  ;;  %v3450_v12 = vsel %vm2805_vm14, %v2531_v20, -inf  ;;  %v3442_v27 = vmax.f32 %v3440_v32, %v3441_v21  ;;  %v9151_v57 = vpop.permute.xlu1 %7014 }
 0x27b   : > { %v3376_v37 = vrot.slane %v3375_v36, 2  ;;  %v3383_v15 = vrot.slane %v3382_v24, 2  ;;  %v2540_v19 = vcombine.high %v2538_v23, %v2538_v23  ;;  %v3451_v16 = vrot.slane %v3450_v12, 4 }
 0x27c   : > { %v3371_v26 = vrot.slane %v3370_v40, 1  ;;  %v3390_v6 = vrot.slane %v3389_v48, 2  ;;  %v3457_v9 = vsel %vm2805_vm14, %v2539_v52, -inf  ;;  %v3464_v39 = vsel %vm2805_vm14, %v2538_v23, -inf }
 0x27d   : > { %v3377_v60 = vmax.f32 %v3375_v36, %v3376_v37  ;;  %v3384_v11 = vmax.f32 %v3382_v24, %v3383_v15  ;;  %v3452_v44 = vmax.f32 %v3450_v12, %v3451_v16  ;;  %v3458_v28 = vrot.slane %v3457_v9, 4 }
 0x27e   : > { %v3372_v30 = vmax.f32 %v3370_v40, %v3371_v26  ;;  %v3391_v56 = vmax.f32 %v3389_v48, %v3390_v6  ;;  %v3465_v46 = vrot.slane %v3464_v39, 4  ;;  %v3471_v31 = vsel %vm2805_vm14, %v2540_v19, -inf }
 0x27f   : > { %v3378_v53 = vrot.slane %v3377_v60, 1  ;;  %v3385_v33 = vrot.slane %v3384_v11, 1  ;;  %v3453_v10 = vrot.slane %v3452_v44, 2  ;;  %v3459_v7 = vmax.f32 %v3457_v9, %v3458_v28 }
 0x280   : > { %v3392_v50 = vrot.slane %v3391_v56, 1  ;;  %v3466_v20 = vmax.f32 %v3464_v39, %v3465_v46  ;;  %v3472_v49 = vrot.slane %v3471_v31, 4  ;;  %v3449_v62 = vmax.f32 %v3447_v45, %v3448_v61 }
 0x281   : > { %v3827_v17 = vsel %vm3702_vm15, %v3435_v29, -inf  ;;  %v3379_v8 = vmax.f32 %v3377_v60, %v3378_v53  ;;  %v3386_v36 = vmax.f32 %v3384_v11, %v3385_v33  ;;  %v3823_v23 = vsel %vm3702_vm15, %v3372_v30, -inf }
 0x282   : > { %v3393_v24 = vmax.f32 %v3391_v56, %v3392_v50  ;;  %v3454_v40 = vmax.f32 %v3452_v44, %v3453_v10  ;;  %v3473_v48 = vmax.f32 %v3471_v31, %v3472_v49  ;;  %v3460_v12 = vrot.slane %v3459_v7, 2 }
 0x283   : > { %v3826_v52 = vsel %vm3702_vm15, %v3379_v8, -inf  ;;  %v3467_v37 = vrot.slane %v3466_v20, 2  ;;  %v2490_v32 = vcombine.high %v9141_v14, %v9141_v14  ;;  %v3824_v45 = vsel %vm3702_vm15, %v3428_v43, -inf }
 0x284   : > { %v7016_v21 = vunpack.i.l.bf16 %v9151_v57  ;;  %v3828_v61 = vmax.f32 %v3826_v52, %v3827_v17  ;;  %v3829_v29 = vsel %vm3702_vm15, %v3386_v36, -inf  ;;  %v3830_v15 = vsel %vm3702_vm15, %v3442_v27, -inf  ;;  %v6244_v36 = vpop.f32.mrf.mxu0 }
 0x285   : > { %v3825_v19 = vmax.f32 %v3823_v23, %v3824_v45  ;;  %v3474_v16 = vrot.slane %v3473_v48, 2  ;;  %v4000_v26 = vsel %vm3971_vm10, %v3822_v51, %v3999_v41  ;;  %v9166_v6 = vsel %vm3702_vm15, %v3393_v24, -inf }
 0x286   : > { %v3455_v9 = vrot.slane %v3454_v40, 1  ;;  %v2497_v43 = vrot.slane %v9141_v14, %v8482_v54  ;;  %v2504_v39 = vrot.slane %v2490_v32, %v8482_v54  ;;  %v9172_v60 = vsel %vm3702_vm15, %v3449_v62, -inf }
 0x287   : > { %v3831_v11 = vmax.f32 %v3829_v29, %v3830_v15  ;;  %v3461_v44 = vmax.f32 %v3459_v7, %v3460_v12  ;;  %v9174_v28 = vmax.f32 %v3466_v20, %v3467_v37  ;;  %v4001_v1 = vsel %vm3959_vm3, %v3828_v61, %v3825_v19 }
 0x288   : > { %v2505_v3 = vcombine.high %v2497_v43, %v2497_v43  ;;  %v2506_v51 = vcombine.high %v2504_v39, %v2504_v39  ;;  %v3394_v41 = vsel %vm2805_vm14, %v2497_v43, -inf  ;;  %v3834_v30 = vmax.f32 %v9166_v6, %v9172_v60  ;;  %v2038_v43 = vpop.f32.mrf.mxu0 }
 0x289   : > { %v3475_v56 = vmax.f32 %v3473_v48, %v3474_v16  ;;  %v3395_v14 = vrot.slane %v3394_v41, 4  ;;  %v3408_v46 = vsel %vm2805_vm14, %v2504_v39, -inf  ;;  %v3456_v31 = vmax.f32 %v3454_v40, %v3455_v9 }
 0x28a   : > { %v3401_v53 = vsel %vm2805_vm14, %v2505_v3, -inf  ;;  %v3409_v33 = vrot.slane %v3408_v46, 4  ;;  %v3415_v10 = vsel %vm2805_vm14, %v2506_v51, -inf  ;;  %v4002_v7 = vsel %vm3961_vm5, %v3831_v11, %v4001_v1 }
 0x28b   : > { %v3462_v27 = vrot.slane %v3461_v44, 1  ;;  %v3396_v50 = vmax.f32 %v3394_v41, %v3395_v14  ;;  %v3402_v20 = vrot.slane %v3401_v53, 4  ;;  %v3469_v49 = vrot.slane %v9174_v28, 1 }
 0x28c   : > { %v3410_v62 = vmax.f32 %v3408_v46, %v3409_v33  ;;  %v3416_v17 = vrot.slane %v3415_v10, 4  ;;  %v4026_v8 = vrot.slane %v4000_v26, 7  ;;  %v3476_v24 = vrot.slane %v3475_v56, 1 }
 0x28d   : > { %v3397_v23 = vrot.slane %v3396_v50, 2  ;;  %v3403_v48 = vmax.f32 %v3401_v53, %v3402_v20  ;;  %v4078_v40 = vrot.slane %v9068_v55, 1  ;;  %v4079_v15 = vrot.slane %v9071_v22, 1 }
 0x28e   : > { %v3411_v52 = vrot.slane %v3410_v62, 2  ;;  %v3417_v12 = vmax.f32 %v3415_v10, %v3416_v17  ;;  %v9187_v37 = vsel %vm450_vm0, 0.0, %v4026_v8  ;;  %v4050_v32 = vsel %vm450_vm0, %v4026_v8, 0.0  ;;  %v6245_v17 = vpop.f32.mrf.mxu0 }
 0x28f   : > { %v3398_v45 = vmax.f32 %v3396_v50, %v3397_v23  ;;  %v3404_v61 = vrot.slane %v3403_v48, 2  ;;  %v7058_v29 = vpack.i.bf16 %v9187_v37, %v9068_v55  ;;  %v4081_v26 = vrot.slane %v9187_v37, 1 }
 0x290   : > { %v3412_v19 = vmax.f32 %v3410_v62, %v3411_v52  ;;  %v3418_v16 = vrot.slane %v3417_v12, 2  ;;  %v4082_v9 = vrot.slane %v4050_v32, 1  ;;  %v9196_v1 = vsel %vm616_vm2, %v4078_v40, %v4079_v15 }
 0x291   : > { %v3399_v39 = vrot.slane %v3398_v45, 1  ;;  %v3405_v11 = vmax.f32 %v3403_v48, %v3404_v61  ;;  %7059 = vrot.lane.b32.xlu0 %v7058_v29, %s10166_s22  ;;  %v4103_v3 = vrot.slane %v9187_v37, 2  ;;  %v4104_v22 = vrot.slane %v4050_v32, 2 }
 0x292   : > { %v3413_v51 = vrot.slane %v3412_v19, 1  ;;  %v3419_v41 = vmax.f32 %v3417_v12, %v3418_v16  ;;  %v9200_v14 = vsel %vm616_vm2, %v4081_v26, %v4082_v9  ;;  %v3463_v10 = vmax.f32 %v3461_v44, %v3462_v27 }
 0x293   : > { %v3400_v46 = vmax.f32 %v3398_v45, %v3399_v39  ;;  %v3406_v53 = vrot.slane %v3405_v11, 1  ;;  %v7068_v33 = vpack.i.bf16 %v9200_v14, %v9196_v1  ;;  %v9205_v62 = vsel %vm697_vm1, %v4103_v3, %v4104_v22 }
 0x294   : > { %v3414_v50 = vmax.f32 %v3412_v19, %v3413_v51  ;;  %v3420_v20 = vrot.slane %v3419_v41, 1  ;;  %v3836_v8 = vsel %vm3702_vm15, %v3456_v31, -inf  ;;  %v7017_v44 = vunpack.i.h.bf16 %v9151_v57 }
 0x295   : > { %v3407_v23 = vmax.f32 %v3405_v11, %v3406_v53  ;;  %v3835_v48 = vsel %vm3702_vm15, %v3400_v46, -inf  ;;  %7069 = vrot.lane.b32.xlu1 %v7068_v33, %s7291_s16  ;;  %7064 = vrot.lane.b32.xlu0 %v7068_v33, %s7293_s30  ;;  %v3470_v27 = vmax.f32 %v9174_v28, %v3469_v49  ;;  %v3477_v32 = vmax.f32 %v3475_v56, %v3476_v24  ;;  %v2041_v24 = vpop.f32.mrf.mxu0 }
 0x296   : > { %v3421_v52 = vmax.f32 %v3419_v41, %v3420_v20  ;;  %v3837_v12 = vmax.f32 %v3835_v48, %v3836_v8  ;;  %v4003_v31 = vsel %vm3963_vm6, %v3834_v30, %v4002_v7  ;;  %v7073_v61 = vpack.i.bf16 %v9205_v62, %v9086_v4 }
 0x297   : > { %v3838_v45 = vsel %vm3702_vm15, %v3407_v23, -inf  ;;  %v4280_v29 = vsel %vm3702_vm15, %v7410_v2, %v7011_v18  ;;  %v3839_v28 = vsel %vm3702_vm15, %v3463_v10, -inf  ;;  %v9228_v49 = vsel %vm3702_vm15, %v3414_v50, -inf  ;;  %v6248_v57 = vpop.f32.mrf.mxu0 }
 0x298   : > { %v2047_v56 = vadd.f32 %v9122_v59, %v6244_v36  ;;  %v9234_v6 = vsel %vm4288_vm11, %v4280_v29, %v7016_v21  ;;  %v3840_v60 = vmax.f32 %v3838_v45, %v3839_v28  ;;  %v9237_v30 = vsel %vm3702_vm15, %v3421_v52, -inf }
 0x299   : > { %7074 = vrot.lane.b32.xlu1 %v7073_v61, %s10166_s22  ;;  %v2039_v47 = vadd.f32 %v9122_v59, %v2038_v43  ;;  %v9242_v18 = vsel %vm3702_vm15, %v3470_v27, -inf  ;;  %v4004_v7 = vsel %vm3965_vm7, %v3837_v12, %v4003_v31  ;;  %v2050_v15 = vadd.f32 %v9122_v59, %v6245_v17 }
 0x29a   : > { %v2095_v36 = vmax.f32 %v2047_v56, 0.0  ;;  %v9248_v21 = vsel %vm4288_vm11, %v9107_v13, %v7017_v44  ;;  %v9251_v19 = vsel %vm3702_vm15, %v3477_v32, -inf  ;;  %v3843_v16 = vmax.f32 %v9228_v49, %v9242_v18 }
 0x29b   : > { %v2093_v26 = vmax.f32 %v2039_v47, 0.0  ;;  %v3846_v9 = vmax.f32 %v9237_v30, %v9251_v19  ;;  %v2042_v11 = vadd.f32 %v9122_v59, %v2041_v24  ;;  %v4005_v3 = vsel %vm3967_vm8, %v3840_v60, %v4004_v7 }
 0x29c   : > { %v2575_v43 = vcombine.high %v2095_v36, %v2095_v36  ;;  %v2582_v39 = vrot.slane %v2095_v36, %v8482_v54  ;;  %v9262_v41 = vadd.f32 %v9122_v59, %v6248_v57  ;;  %v9266_v33 = vmax.f32 %v2050_v15, 0.0 }
 0x29d   : > { %v2541_v51 = vcombine.high %v2093_v26, %v2093_v26  ;;  %v2548_v13 = vrot.slane %v2093_v26, %v8482_v54  ;;  %vm5165_vm13 = vcmask 1045508  }
 0x29e   : > { %v2589_v22 = vrot.slane %v2575_v43, %v8482_v54  ;;  %v2590_v46 = vcombine.high %v2582_v39, %v2582_v39  ;;  %v3534_v53 = vsel %vm2805_vm14, %v2582_v39, -inf  ;;  %v9298_v18 = vmax.f32 %v9262_v41, 0.0 }
 0x29f   : > { %v3535_v10 = vrot.slane %v3534_v53, 4  ;;  %v2555_v50 = vrot.slane %v2541_v51, %v8482_v54  ;;  %v2556_v20 = vcombine.high %v2548_v13, %v2548_v13  ;;  %v3478_v17 = vsel %vm2805_vm14, %v2548_v13, -inf }
 0x2a0   : > { %v2591_v8 = vcombine.high %v2589_v22, %v2589_v22  ;;  %v3541_v23 = vsel %vm2805_vm14, %v2590_v46, -inf  ;;  %v3548_v48 = vsel %vm2805_vm14, %v2589_v22, -inf  ;;  %v3479_v44 = vrot.slane %v3478_v17, 4 }
 0x2a1   : > { %v3536_v27 = vmax.f32 %v3534_v53, %v3535_v10  ;;  %v3542_v52 = vrot.slane %v3541_v23, 4  ;;  %v3549_v12 = vrot.slane %v3548_v48, 4  ;;  %v2557_v32 = vcombine.high %v2555_v50, %v2555_v50 }
 0x2a2   : > { %v3555_v45 = vsel %vm2805_vm14, %v2591_v8, -inf  ;;  %v3480_v31 = vmax.f32 %v3478_v17, %v3479_v44  ;;  %v3485_v61 = vsel %vm2805_vm14, %v2556_v20, -inf  ;;  %v3492_v29 = vsel %vm2805_vm14, %v2555_v50, -inf  ;;  %v9276_v17 = vpop.permute.xlu1 %7019 }
 0x2a3   : > { %v3537_v28 = vrot.slane %v3536_v27, 2  ;;  %v3543_v56 = vmax.f32 %v3541_v23, %v3542_v52  ;;  %v3550_v24 = vmax.f32 %v3548_v48, %v3549_v12  ;;  %v3556_v60 = vrot.slane %v3555_v45, 4 }
 0x2a4   : > { %v3481_v47 = vrot.slane %v3480_v31, 2  ;;  %v3486_v7 = vrot.slane %v3485_v61, 4  ;;  %v3493_v36 = vrot.slane %v3492_v29, 4  ;;  %v3499_v15 = vsel %vm2805_vm14, %v2557_v32, -inf }
 0x2a5   : > { %v3538_v57 = vmax.f32 %v3536_v27, %v3537_v28  ;;  %v3544_v26 = vrot.slane %v3543_v56, 2  ;;  %v3551_v43 = vrot.slane %v3550_v24, 2  ;;  %v3557_v39 = vmax.f32 %v3555_v45, %v3556_v60  ;;  %v9278_v28 = vpop.permute.xlu0 %7024 }
 0x2a6   : > { %v3482_v51 = vmax.f32 %v3480_v31, %v3481_v47  ;;  %v3487_v13 = vmax.f32 %v3485_v61, %v3486_v7  ;;  %v3494_v22 = vmax.f32 %v3492_v29, %v3493_v36  ;;  %v3500_v46 = vrot.slane %v3499_v15, 4 }
 0x2a7   : > { %v3539_v53 = vrot.slane %v3538_v57, 1  ;;  %v3545_v10 = vmax.f32 %v3543_v56, %v3544_v26  ;;  %v3552_v50 = vmax.f32 %v3550_v24, %v3551_v43  ;;  %v3558_v20 = vrot.slane %v3557_v39, 2 }
 0x2a8   : > { %v3483_v8 = vrot.slane %v3482_v51, 1  ;;  %v3488_v23 = vrot.slane %v3487_v13, 2  ;;  %v3495_v48 = vrot.slane %v3494_v22, 2  ;;  %v3501_v44 = vmax.f32 %v3499_v15, %v3500_v46 }
 0x2a9   : > { %v3546_v52 = vrot.slane %v3545_v10, 1  ;;  %v3553_v12 = vrot.slane %v3552_v50, 1  ;;  %v3559_v27 = vmax.f32 %v3557_v39, %v3558_v20  ;;  %v2094_v32 = vmax.f32 %v2042_v11, 0.0 }
 0x2aa   : > { %v3540_v45 = vmax.f32 %v3538_v57, %v3539_v53  ;;  %v3489_v31 = vmax.f32 %v3487_v13, %v3488_v23  ;;  %v2592_v61 = vcombine.high %v9266_v33, %v9266_v33  ;;  %v4006_v29 = vsel %vm3969_vm9, %v3843_v16, %v4005_v3 }
 0x2ab   : > { %v3484_v24 = vmax.f32 %v3482_v51, %v3483_v8  ;;  %v3502_v60 = vrot.slane %v3501_v44, 2  ;;  %v2599_v47 = vrot.slane %v9266_v33, %v8482_v54  ;;  %v3547_v7 = vmax.f32 %v3545_v10, %v3546_v52 }
 0x2ac   : > { %v3560_v36 = vrot.slane %v3559_v27, 1  ;;  %v3496_v15 = vmax.f32 %v3494_v22, %v3495_v48  ;;  %v3554_v26 = vmax.f32 %v3552_v50, %v3553_v12  ;;  %v9295_v49 = vsel %vm3971_vm10, %v3846_v9, %v4006_v29 }
 0x2ad   : > { %v9301_v16 = vsel %vm3702_vm15, %v3540_v45, -inf  ;;  %v3490_v3 = vrot.slane %v3489_v31, 1  ;;  %v2606_v33 = vrot.slane %v2592_v61, %v8482_v54  ;;  %v2558_v43 = vcombine.high %v2094_v32, %v2094_v32 }
 0x2ae   : > { %v3503_v39 = vmax.f32 %v3501_v44, %v3502_v60  ;;  %v9305_v51 = vsel %vm3702_vm15, %v3484_v24, -inf  ;;  %v2607_v13 = vcombine.high %v2599_v47, %v2599_v47  ;;  %v3562_v30 = vsel %vm2805_vm14, %v2599_v47, -inf }
 0x2af   : > { %v3561_v19 = vmax.f32 %v3559_v27, %v3560_v36  ;;  %v3851_v9 = vsel %vm3702_vm15, %v3547_v7, -inf  ;;  %v3497_v22 = vrot.slane %v3496_v15, 1  ;;  %v2608_v41 = vcombine.high %v2606_v33, %v2606_v33 }
 0x2b0   : > { %v9310_v46 = vsel %vm3702_vm15, %v3554_v26, -inf  ;;  %v3563_v53 = vrot.slane %v3562_v30, 4  ;;  %v3569_v10 = vsel %vm2805_vm14, %v2607_v13, -inf  ;;  %v2565_v50 = vrot.slane %v2094_v32, %v8482_v54 }
 0x2b1   : > { %v3849_v20 = vmax.f32 %v9305_v51, %v9301_v16  ;;  %v3570_v8 = vrot.slane %v3569_v10, 4  ;;  %v3576_v23 = vsel %vm2805_vm14, %v2606_v33, -inf  ;;  %v3583_v48 = vsel %vm2805_vm14, %v2608_v41, -inf }
 0x2b2   : > { %v3491_v44 = vmax.f32 %v3489_v31, %v3490_v3  ;;  %v3504_v52 = vrot.slane %v3503_v39, 1  ;;  %v3564_v12 = vmax.f32 %v3562_v30, %v3563_v53  ;;  %v3577_v27 = vrot.slane %v3576_v23, 4 }
 0x2b3   : > { %v3498_v45 = vmax.f32 %v3496_v15, %v3497_v22  ;;  %v3571_v61 = vmax.f32 %v3569_v10, %v3570_v8  ;;  %v3584_v29 = vrot.slane %v3583_v48, 4  ;;  %v2572_v24 = vrot.slane %v2558_v43, %v8482_v54 }
 0x2b4   : > { %v3565_v60 = vrot.slane %v3564_v12, 2  ;;  %v3578_v47 = vmax.f32 %v3576_v23, %v3577_v27  ;;  %v2573_v32 = vcombine.high %v2565_v50, %v2565_v50  ;;  %v3506_v7 = vsel %vm2805_vm14, %v2565_v50, -inf }
 0x2b5   : > { %v3572_v36 = vrot.slane %v3571_v61, 2  ;;  %v3585_v26 = vmax.f32 %v3583_v48, %v3584_v29  ;;  %v2574_v16 = vcombine.high %v2572_v24, %v2572_v24  ;;  %v3507_v33 = vrot.slane %v3506_v7, 4 }
 0x2b6   : > { %v3505_v51 = vmax.f32 %v3503_v39, %v3504_v52  ;;  %v3579_v13 = vrot.slane %v3578_v47, 2  ;;  %v3513_v31 = vsel %vm2805_vm14, %v2573_v32, -inf  ;;  %v3520_v3 = vsel %vm2805_vm14, %v2572_v24, -inf }
 0x2b7   : > { %v3850_v15 = vsel %vm3702_vm15, %v3491_v44, -inf  ;;  %v3586_v30 = vrot.slane %v3585_v26, 2  ;;  %v3508_v22 = vmax.f32 %v3506_v7, %v3507_v33  ;;  %v3514_v43 = vrot.slane %v3513_v31, 4 }
 0x2b8   : > { %v3566_v41 = vmax.f32 %v3564_v12, %v3565_v60  ;;  %v3573_v53 = vmax.f32 %v3571_v61, %v3572_v36  ;;  %v3521_v10 = vrot.slane %v3520_v3, 4  ;;  %v3527_v50 = vsel %vm2805_vm14, %v2574_v16, -inf }
 0x2b9   : > { %v3857_v8 = vsel %vm3702_vm15, %v3561_v19, -inf  ;;  %v3580_v23 = vmax.f32 %v3578_v47, %v3579_v13  ;;  %v3509_v48 = vrot.slane %v3508_v22, 2  ;;  %v3515_v39 = vmax.f32 %v3513_v31, %v3514_v43 }
 0x2ba   : > { %v3852_v52 = vmax.f32 %v3850_v15, %v3851_v9  ;;  %v3853_v27 = vsel %vm3702_vm15, %v3498_v45, -inf  ;;  %v3522_v29 = vmax.f32 %v3520_v3, %v3521_v10  ;;  %v3528_v24 = vrot.slane %v3527_v50, 4 }
 0x2bb   : > { %v3856_v44 = vsel %vm3702_vm15, %v3505_v51, -inf  ;;  %v3587_v32 = vmax.f32 %v3585_v26, %v3586_v30  ;;  %v3510_v7 = vmax.f32 %v3508_v22, %v3509_v48  ;;  %v3516_v33 = vrot.slane %v3515_v39, 2 }
 0x2bc   : > { %v3567_v12 = vrot.slane %v3566_v41, 1  ;;  %v3574_v61 = vrot.slane %v3573_v53, 1  ;;  %v3523_v60 = vrot.slane %v3522_v29, 2  ;;  %v3529_v36 = vmax.f32 %v3527_v50, %v3528_v24 }
 0x2bd   : > { %v3855_v16 = vmax.f32 %v3853_v27, %v9310_v46  ;;  %v3581_v19 = vrot.slane %v3580_v23, 1  ;;  %v3511_v47 = vrot.slane %v3510_v7, 1  ;;  %v3517_v13 = vmax.f32 %v3515_v39, %v3516_v33 }
 0x2be   : > { %v3858_v31 = vmax.f32 %v3856_v44, %v3857_v8  ;;  %v4008_v9 = vsel %vm3959_vm3, %v3852_v52, %v3849_v20  ;;  %v3524_v45 = vmax.f32 %v3522_v29, %v3523_v60  ;;  %v3530_v3 = vrot.slane %v3529_v36, 2  ;;  %v2054_v20 = vpop.f32.mrf.mxu0 }
 0x2bf   : > { %v3588_v15 = vrot.slane %v3587_v32, 1  ;;  %v3512_v43 = vmax.f32 %v3510_v7, %v3511_v47  ;;  %v3518_v51 = vrot.slane %v3517_v13, 1  ;;  %v4027_v26 = vrot.slane %v9295_v49, 7 }
 0x2c0   : > { %v3568_v30 = vmax.f32 %v3566_v41, %v3567_v12  ;;  %v3575_v22 = vmax.f32 %v3573_v53, %v3574_v61  ;;  %v3525_v10 = vrot.slane %v3524_v45, 1  ;;  %v3531_v48 = vmax.f32 %v3529_v36, %v3530_v3  ;;  %v9348_v12 = vpop.permute.xlu0 %7029  ;;  %v6249_v11 = vpop.f32.mrf.mxu0 }
 0x2c1   : > { %v3582_v50 = vmax.f32 %v3580_v23, %v3581_v19  ;;  %v3519_v24 = vmax.f32 %v3517_v13, %v3518_v51  ;;  %v9331_v46 = vsel %vm450_vm0, 0.0, %v4027_v26  ;;  %v9334_v8 = vsel %vm450_vm0, %v4027_v26, 0.0 }
 0x2c2   : > { %v4009_v39 = vsel %vm3961_vm5, %v3855_v16, %v4008_v9  ;;  %v3526_v52 = vmax.f32 %v3524_v45, %v3525_v10  ;;  %v3859_v27 = vsel %vm3702_vm15, %v3512_v43, -inf  ;;  %v7078_v49 = vpack.i.bf16 %v9331_v46, %v9187_v37 }
 0x2c3   : > { %v3589_v41 = vmax.f32 %v3587_v32, %v3588_v15  ;;  %v3532_v53 = vrot.slane %v3531_v48, 1  ;;  %v4106_v23 = vrot.slane %v9331_v46, 2  ;;  %v4107_v29 = vrot.slane %v9334_v8, 2 }
 0x2c4   : > { %v3860_v7 = vsel %vm3702_vm15, %v3568_v30, -inf  ;;  %v9345_v33 = vsel %vm3702_vm15, %v3575_v22, -inf  ;;  %7079 = vrot.lane.b32.xlu1 %v7078_v49, %s7293_s30  ;;  %v2055_v61 = vadd.f32 %v9122_v59, %v2054_v20  ;;  %v9352_v32 = vsel %vm3702_vm15, %v3582_v50, -inf }
 0x2c5   : > { %v3861_v60 = vmax.f32 %v3859_v27, %v3860_v7  ;;  %v3862_v36 = vsel %vm3702_vm15, %v3519_v24, -inf  ;;  %v9356_v16 = vsel %vm697_vm1, %v4106_v23, %v4107_v29  ;;  %v9359_v19 = vsel %vm3702_vm15, %v3526_v52, -inf }
 0x2c6   : > { %v4010_v47 = vsel %vm3963_vm6, %v3858_v31, %v4009_v39  ;;  %v7083_v13 = vpack.i.bf16 %v9356_v16, %v9205_v62  ;;  %v2643_v9 = vcombine.high %v9298_v18, %v9298_v18  ;;  %v9367_v45 = vsel %vm3702_vm15, %v3589_v41, -inf }
 0x2c7   : > { %v3533_v3 = vmax.f32 %v3531_v48, %v3532_v53  ;;  %v2650_v43 = vrot.slane %v9298_v18, %v8482_v54  ;;  %v3864_v51 = vmax.f32 %v3862_v36, %v9345_v33  ;;  %v2097_v30 = vmax.f32 %v2055_v61, 0.0 }
 0x2c8   : > { %7084 = vrot.lane.b32.xlu0 %v7083_v13, %s7291_s16  ;;  %v2657_v26 = vrot.slane %v2643_v9, %v8482_v54  ;;  %v4011_v10 = vsel %vm3965_vm7, %v3861_v60, %v4010_v47 }
 0x2c9   : > { %v2658_v48 = vcombine.high %v2650_v43, %v2650_v43  ;;  %v3646_v50 = vsel %vm2805_vm14, %v2650_v43, -inf  ;;  %v2609_v39 = vcombine.high %v2097_v30, %v2097_v30  ;;  %v9382_v52 = vsel %vm3702_vm15, %v3533_v3, -inf }
 0x2ca   : > { %v2659_v24 = vcombine.high %v2657_v26, %v2657_v26  ;;  %v3647_v20 = vrot.slane %v3646_v50, 4  ;;  %v3660_v18 = vsel %vm2805_vm14, %v2657_v26, -inf  ;;  %v2616_v41 = vrot.slane %v2097_v30, %v8482_v54 }
 0x2cb   : > { %v3653_v27 = vsel %vm2805_vm14, %v2658_v48, -inf  ;;  %v3661_v49 = vrot.slane %v3660_v18, 4  ;;  %v2623_v7 = vrot.slane %v2609_v39, %v8482_v54 }
 0x2cc   : > { %v3648_v53 = vmax.f32 %v3646_v50, %v3647_v20  ;;  %v3654_v23 = vrot.slane %v3653_v27, 4  ;;  %v3667_v29 = vsel %vm2805_vm14, %v2659_v24, -inf  ;;  %v2624_v60 = vcombine.high %v2616_v41, %v2616_v41 }
 0x2cd   : > { %v3662_v33 = vmax.f32 %v3660_v18, %v3661_v49  ;;  %v3668_v61 = vrot.slane %v3667_v29, 4  ;;  %v3590_v36 = vsel %vm2805_vm14, %v2616_v41, -inf  ;;  %v2625_v9 = vcombine.high %v2623_v7, %v2623_v7 }
 0x2ce   : > { %v3649_v47 = vrot.slane %v3648_v53, 2  ;;  %v3655_v13 = vmax.f32 %v3653_v27, %v3654_v23  ;;  %v3591_v3 = vrot.slane %v3590_v36, 4  ;;  %v3597_v48 = vsel %vm2805_vm14, %v2624_v60, -inf }
 0x2cf   : > { %v3663_v43 = vrot.slane %v3662_v33, 2  ;;  %v3669_v26 = vmax.f32 %v3667_v29, %v3668_v61  ;;  %v3604_v30 = vsel %vm2805_vm14, %v2623_v7, -inf  ;;  %v3598_v40 = vrot.slane %v3597_v48, 4 }
 0x2d0   : > { %v3650_v50 = vmax.f32 %v3648_v53, %v3649_v47  ;;  %v3656_v20 = vrot.slane %v3655_v13, 2  ;;  %v3592_v24 = vmax.f32 %v3590_v36, %v3591_v3  ;;  %v3605_v49 = vrot.slane %v3604_v30, 4  ;;  %v9395_v36 = vpop.permute.xlu0 %7034 }
 0x2d1   : > { %v3664_v39 = vmax.f32 %v3662_v33, %v3663_v43  ;;  %v3670_v18 = vrot.slane %v3669_v26, 2  ;;  %v3611_v22 = vsel %vm2805_vm14, %v2625_v9, -inf  ;;  %v3599_v23 = vmax.f32 %v3597_v48, %v3598_v40 }
 0x2d2   : > { %v3651_v41 = vrot.slane %v3650_v50, 1  ;;  %v3657_v56 = vmax.f32 %v3655_v13, %v3656_v20  ;;  %v3593_v27 = vrot.slane %v3592_v24, 2  ;;  %v3606_v61 = vmax.f32 %v3604_v30, %v3605_v49 }
 0x2d3   : > { %v3665_v15 = vrot.slane %v3664_v39, 1  ;;  %v3671_v29 = vmax.f32 %v3669_v26, %v3670_v18  ;;  %v3612_v60 = vrot.slane %v3611_v22, 4  ;;  %v9393_v7 = vsel %vm3967_vm8, %v3864_v51, %v4011_v10  ;;  %v2057_v18 = vpop.f32.mrf.mxu0 }
 0x2d4   : > { %v3658_v53 = vrot.slane %v3657_v56, 1  ;;  %v3594_v33 = vmax.f32 %v3592_v24, %v3593_v27  ;;  %v3600_v47 = vrot.slane %v3599_v23, 2  ;;  %v3652_v3 = vmax.f32 %v3650_v50, %v3651_v41 }
 0x2d5   : > { %v3607_v43 = vrot.slane %v3606_v61, 2  ;;  %v3613_v9 = vmax.f32 %v3611_v22, %v3612_v60  ;;  %v2066_v13 = vadd.f32 %v9122_v59, %v6249_v11  ;;  %v3666_v20 = vmax.f32 %v3664_v39, %v3665_v15 }
 0x2d6   : > { %v3672_v40 = vrot.slane %v3671_v29, 1  ;;  %v3595_v48 = vrot.slane %v3594_v33, 1  ;;  %v3601_v31 = vmax.f32 %v3599_v23, %v3600_v47  ;;  %v3659_v49 = vmax.f32 %v3657_v56, %v3658_v53 }
 0x2d7   : > { %v3608_v10 = vmax.f32 %v3606_v61, %v3607_v43  ;;  %v3614_v30 = vrot.slane %v3613_v9, 2  ;;  %v3872_v22 = vsel %vm3702_vm15, %v3652_v3, -inf  ;;  %v2100_v39 = vmax.f32 %v2066_v13, 0.0 }
 0x2d8   : > { %v3596_v50 = vmax.f32 %v3594_v33, %v3595_v48  ;;  %v3602_v41 = vrot.slane %v3601_v31, 1  ;;  %v3673_v27 = vmax.f32 %v3671_v29, %v3672_v40  ;;  %v3878_v23 = vsel %vm3702_vm15, %v3666_v20, -inf }
 0x2d9   : > { %v3609_v11 = vrot.slane %v3608_v10, 1  ;;  %v3615_v15 = vmax.f32 %v3613_v9, %v3614_v30  ;;  %v2058_v47 = vadd.f32 %v9122_v59, %v2057_v18  ;;  %v2660_v56 = vcombine.high %v2100_v39, %v2100_v39 }
 0x2da   : > { %v3603_v60 = vmax.f32 %v3601_v31, %v3602_v41  ;;  %v3871_v43 = vsel %vm3702_vm15, %v3596_v50, -inf  ;;  %v3875_v53 = vsel %vm3702_vm15, %v3659_v49, -inf  ;;  %v2667_v3 = vrot.slane %v2100_v39, %v8482_v54 }
 0x2db   : > { %v3610_v26 = vmax.f32 %v3608_v10, %v3609_v11  ;;  %v3616_v61 = vrot.slane %v3615_v15, 1  ;;  %v2098_v48 = vmax.f32 %v2058_v47, 0.0  ;;  %v2674_v31 = vrot.slane %v2660_v56, %v8482_v54 }
 0x2dc   : > { %v3874_v33 = vsel %vm3702_vm15, %v3603_v60, -inf  ;;  %v3873_v20 = vmax.f32 %v3871_v43, %v3872_v22  ;;  %v2675_v59 = vcombine.high %v2667_v3, %v2667_v3  ;;  %v3674_v40 = vsel %vm2805_vm14, %v2667_v3, -inf }
 0x2dd   : > { %v3617_v9 = vmax.f32 %v3615_v15, %v3616_v61  ;;  %v3876_v13 = vmax.f32 %v3874_v33, %v3875_v53  ;;  %v3877_v29 = vsel %vm3702_vm15, %v3610_v26, -inf  ;;  %v2626_v10 = vcombine.high %v2098_v48, %v2098_v48 }
 0x2de   : > { %v3879_v30 = vmax.f32 %v3877_v29, %v3878_v23  ;;  %v2676_v49 = vcombine.high %v2674_v31, %v2674_v31  ;;  %v3675_v50 = vrot.slane %v3674_v40, 4  ;;  %v3881_v41 = vsel %vm3702_vm15, %v3673_v27, -inf }
 0x2df   : > { %v3880_v18 = vsel %vm3702_vm15, %v3617_v9, -inf  ;;  %v4015_v11 = vsel %vm3959_vm3, %v3876_v13, %v3873_v20  ;;  %v3681_v15 = vsel %vm2805_vm14, %v2675_v59, -inf  ;;  %v3688_v26 = vsel %vm2805_vm14, %v2674_v31, -inf }
 0x2e0   : > { %v3676_v39 = vmax.f32 %v3674_v40, %v3675_v50  ;;  %v3682_v60 = vrot.slane %v3681_v15, 4  ;;  %v3689_v22 = vrot.slane %v3688_v26, 4  ;;  %v3695_v47 = vsel %vm2805_vm14, %v2676_v49, -inf }
 0x2e1   : > { %v3882_v61 = vmax.f32 %v3880_v18, %v3881_v41  ;;  %v3696_v43 = vrot.slane %v3695_v47, 4  ;;  %v2633_v23 = vrot.slane %v2098_v48, %v8482_v54  ;;  %v2640_v56 = vrot.slane %v2626_v10, %v8482_v54 }
 0x2e2   : > { %v4016_v53 = vsel %vm3961_vm5, %v3879_v30, %v4015_v11  ;;  %v3677_v27 = vrot.slane %v3676_v39, 2  ;;  %v3683_v33 = vmax.f32 %v3681_v15, %v3682_v60  ;;  %v3690_v3 = vmax.f32 %v3688_v26, %v3689_v22 }
 0x2e3   : > { %v3697_v9 = vmax.f32 %v3695_v47, %v3696_v43  ;;  %v2641_v13 = vcombine.high %v2633_v23, %v2633_v23  ;;  %v2642_v29 = vcombine.high %v2640_v56, %v2640_v56  ;;  %v3618_v31 = vsel %vm2805_vm14, %v2633_v23, -inf }
 0x2e4   : > { %v3678_v20 = vmax.f32 %v3676_v39, %v3677_v27  ;;  %v3684_v59 = vrot.slane %v3683_v33, 2  ;;  %v3691_v40 = vrot.slane %v3690_v3, 2  ;;  %v3619_v18 = vrot.slane %v3618_v31, 4 }
 0x2e5   : > { %v3698_v49 = vrot.slane %v3697_v9, 2  ;;  %v3625_v48 = vsel %vm2805_vm14, %v2641_v13, -inf  ;;  %v3632_v10 = vsel %vm2805_vm14, %v2640_v56, -inf  ;;  %v3639_v30 = vsel %vm2805_vm14, %v2642_v29, -inf }
 0x2e6   : > { %v3679_v50 = vrot.slane %v3678_v20, 1  ;;  %v3685_v41 = vmax.f32 %v3683_v33, %v3684_v59  ;;  %v3692_v11 = vmax.f32 %v3690_v3, %v3691_v40  ;;  %v3620_v15 = vmax.f32 %v3618_v31, %v3619_v18 }
 0x2e7   : > { %v3699_v26 = vmax.f32 %v3697_v9, %v3698_v49  ;;  %v3626_v60 = vrot.slane %v3625_v48, 4  ;;  %v3633_v22 = vrot.slane %v3632_v10, 4  ;;  %v3640_v47 = vrot.slane %v3639_v30, 4 }
 0x2e8   : > { %v3680_v43 = vmax.f32 %v3678_v20, %v3679_v50  ;;  %v3686_v39 = vrot.slane %v3685_v41, 1  ;;  %v3693_v23 = vrot.slane %v3692_v11, 1  ;;  %v3621_v27 = vrot.slane %v3620_v15, 2 }
 0x2e9   : > { %v3700_v51 = vrot.slane %v3699_v26, 1  ;;  %v3627_v24 = vmax.f32 %v3625_v48, %v3626_v60  ;;  %v3634_v57 = vmax.f32 %v3632_v10, %v3633_v22  ;;  %v3641_v13 = vmax.f32 %v3639_v30, %v3640_v47 }
 0x2ea   : > { %v3622_v44 = vmax.f32 %v3620_v15, %v3621_v27  ;;  %v4017_v56 = vsel %vm3963_vm6, %v3882_v61, %v4016_v53  ;;  %v10181_v29 = vunpack.i.l.bf16 %v9278_v28  ;;  %v10182_v3 = vunpack.i.h.bf16 %v9278_v28 }
 0x2eb   : > { %v3687_v31 = vmax.f32 %v3685_v41, %v3686_v39  ;;  %v3628_v20 = vrot.slane %v3627_v24, 2  ;;  %v3635_v59 = vrot.slane %v3634_v57, 2  ;;  %v3642_v40 = vrot.slane %v3641_v13, 2 }
 0x2ec   : > { %v4306_v33 = vsel %vm3702_vm15, %v8692_v34, %v10181_v29  ;;  %v4307_v9 = vsel %vm3702_vm15, %v8911_v63, %v10182_v3  ;;  %v3694_v18 = vmax.f32 %v3692_v11, %v3693_v23  ;;  %v3701_v49 = vmax.f32 %v3699_v26, %v3700_v51 }
 0x2ed   : > { %v3884_v48 = vsel %vm3702_vm15, %v3680_v43, -inf  ;;  %v3623_v10 = vrot.slane %v3622_v44, 1  ;;  %v3629_v61 = vmax.f32 %v3627_v24, %v3628_v20  ;;  %v3636_v53 = vmax.f32 %v3634_v57, %v3635_v59 }
 0x2ee   : > { %v3643_v30 = vmax.f32 %v3641_v13, %v3642_v40  ;;  %v10183_v50 = vunpack.i.l.bf16 %v9348_v12  ;;  %v10184_v15 = vunpack.i.h.bf16 %v9348_v12  ;;  %v10185_v41 = vunpack.i.l.bf16 %v9395_v36 }
 0x2ef   : > { %v3624_v28 = vmax.f32 %v3622_v44, %v3623_v10  ;;  %v10186_v51 = vunpack.i.l.bf16 %v9276_v17  ;;  %v3630_v57 = vrot.slane %v3629_v61, 1  ;;  %v3637_v26 = vrot.slane %v3636_v53, 1 }
 0x2f0   : > { %v4314_v34 = vsel %vm4288_vm11, %v4306_v33, %v10183_v50  ;;  %v4315_v63 = vsel %vm4288_vm11, %v4307_v9, %v10184_v15  ;;  %v3644_v60 = vrot.slane %v3643_v30, 1  ;;  %v10187_v22 = vunpack.i.h.bf16 %v9395_v36 }
 0x2f1   : > { %v4322_v11 = vsel %vm4297_vm12, %v4314_v34, %v10185_v41  ;;  %v4298_v24 = vsel %vm4297_vm12, %v9234_v6, %v10186_v51  ;;  %v3883_v12 = vsel %vm3702_vm15, %v3624_v28, -inf  ;;  %v10188_v43 = vunpack.i.h.bf16 %v9276_v17 }
 0x2f2   : > { %v4323_v44 = vsel %vm4297_vm12, %v4315_v63, %v10187_v22  ;;  %v10189_v23 = vmax.f32 %v9359_v19, %v9352_v32  ;;  %v3631_v27 = vmax.f32 %v3629_v61, %v3630_v57  ;;  %v3638_v13 = vmax.f32 %v3636_v53, %v3637_v26  ;;  %v7161_v26 = vld [vmem:[%s10149_s3 + $0x80] sm:$0xff]  }
 0x2f3   : > { %v4331_v47 = vpack.c.bf16 %v4323_v44, %v4322_v11  ;;  %v4299_v39 = vsel %vm4297_vm12, %v9248_v21, %v10188_v43  ;;  %v3645_v29 = vmax.f32 %v3643_v30, %v3644_v60  ;;  %v3885_v36 = vmax.f32 %v3883_v12, %v3884_v48  ;;  %v7040_v48 = vpop.permute.xlu1 %7039 }
 0x2f4   : > { %v4013_v6 = vsel %vm3969_vm9, %v10189_v23, %v9393_v7  ;;  %v3887_v33 = vsel %vm3702_vm15, %v3687_v31, -inf  ;;  %v3890_v3 = vsel %vm3702_vm15, %v3694_v18, -inf  ;;  %v4330_v9 = vpack.c.bf16 %v4299_v39, %v4298_v24 }
 0x2f5   : > { %4537 = vmatprep.mubr.bf16.mxu1 %v4331_v47  ;;  %v10190_v17 = vmax.f32 %v9382_v52, %v9367_v45  ;;  %v3886_v20 = vsel %vm3702_vm15, %v3631_v27, -inf  ;;  %v3889_v32 = vsel %vm3702_vm15, %v3638_v13, -inf  ;;  %v3892_v19 = vsel %vm3702_vm15, %v3645_v29, -inf  ;;  %v7055_v47 = vpop.permute.xlu0 %7054 }
 0x2f6   : > { %v4018_v7 = vsel %vm3965_vm7, %v3885_v36, %v4017_v56  ;;  %v3893_v59 = vsel %vm3702_vm15, %v3701_v49, -inf  ;;  %v3888_v31 = vmax.f32 %v3886_v20, %v3887_v33  ;;  %v3891_v40 = vmax.f32 %v3889_v32, %v3890_v3  ;;  %4538 = vmatmul.mubr.bf16.vlgmr.msra.gmra.mxu1 %v4330_v9  ;;  %v7160_v56 = vld [vmem:[%s10149_s3 + $0x88] sm:$0xff]  }
 0x2f7   : > { %v4014_v21 = vsel %vm3971_vm10, %v10190_v17, %v4013_v6  ;;  %v3894_v10 = vmax.f32 %v3892_v19, %v3893_v59  ;;  %v4084_v45 = vrot.slane %v9331_v46, 1  ;;  %v4085_v52 = vrot.slane %v9334_v8, 1  ;;  %6250 = vmatprep.subr.bf16.mxu1 %v7160_v56  ;;  %v7045_v60 = vpop.permute.xlu1 %7044 }
 0x2f8   : > { %v4028_v18 = vrot.slane %v4014_v21, 7  ;;  %v4019_v30 = vsel %vm3967_vm8, %v3888_v31, %v4018_v7  ;;  %6251 = vmatpush3.bf16.msra.mxu1 %v7160_v56  ;;  %v7042_v27 = vunpack.i.h.bf16 %v7040_v48  ;;  %v7041_v36 = vunpack.i.l.bf16 %v7040_v48 }
 0x2f9   : > { %v4020_v15 = vsel %vm3969_vm9, %v3891_v40, %v4019_v30  ;;  %v9489_v63 = vsel %vm616_vm2, %v4084_v45, %v4085_v52  ;;  %6252 = vmatprep.subr.bf16.mxu1 %v7161_v26  ;;  %v7047_v17 = vunpack.i.h.bf16 %v7045_v60  ;;  %v7046_v21 = vunpack.i.l.bf16 %v7045_v60 }
 0x2fa   : > { %v9475_v61 = vsel %vm450_vm0, 0.0, %v4028_v18  ;;  %v4052_v53 = vsel %vm450_vm0, %v4028_v18, 0.0  ;;  %v4021_v11 = vsel %vm3971_vm10, %v3894_v10, %v4020_v15  ;;  %v7057_v20 = vunpack.i.h.bf16 %v7055_v47 }
 0x2fb   : > { %v7088_v49 = vpack.i.bf16 %v9475_v61, %v9331_v46  ;;  %v4087_v50 = vrot.slane %v9475_v61, 1  ;;  %v4088_v34 = vrot.slane %v4052_v53, 1  ;;  %v4109_v28 = vrot.slane %v9475_v61, 2  ;;  %v7050_v13 = vpop.permute.xlu1 %7049 }
 0x2fc   : > { %v4110_v8 = vrot.slane %v4052_v53, 2  ;;  %v4029_v57 = vrot.slane %v4021_v11, 7  ;;  %6253 = vmatpush3.bf16.msra.mxu1 %v7161_v26  ;;  %v7051_v7 = vunpack.i.l.bf16 %v7050_v13  ;;  %v7056_v59 = vunpack.i.l.bf16 %v7055_v47 }
 0x2fd   : > { %7089 = vrot.lane.b32.xlu0 %v7088_v49, %s10166_s22  ;;  %v9492_v41 = vsel %vm616_vm2, %v4087_v50, %v4088_v34  ;;  %v7052_v31 = vunpack.i.h.bf16 %v7050_v13  ;;  %v4283_v48 = vsel %vm3702_vm15, %v8900_v38, %v7042_v27  ;;  %v4282_v10 = vsel %vm3702_vm15, %v8815_v5, %v7041_v36 }
 0x2fe   : > { %v7098_v51 = vpack.i.bf16 %v9492_v41, %v9489_v63  ;;  %v9498_v24 = vsel %vm697_vm1, %v4109_v28, %v4110_v8  ;;  %v4045_v44 = vsel %vm450_vm0, 0.0, %v4029_v57  ;;  %v4053_v12 = vsel %vm450_vm0, %v4029_v57, 0.0 }
 0x2ff   : > { %v4338_v22 = vpack.c.bf16 %v9498_v24, %v9356_v16  ;;  %v7108_v43 = vpack.i.bf16 %v7410_v2, %v4045_v44  ;;  %v4125_v39 = vrot.slane %v4045_v44, 2  ;;  %v4126_v23 = vrot.slane %v4053_v12, 2 }
 0x300   : > { %7099 = vrot.lane.b32.xlu1 %v7098_v51, %s7291_s16  ;;  %v7103_v6 = vpack.i.bf16 %v9498_v24, %v9356_v16  ;;  %v7123_v33 = vpack.i.bf16 %v4045_v44, %v9475_v61  ;;  %v4114_v3 = vrot.slane %v4045_v44, 1  ;;  %v4115_v9 = vrot.slane %v4053_v12, 1 }
 0x301   : > { %7094 = vrot.lane.b32.xlu0 %v7098_v51, %s7293_s30  ;;  %v9513_v29 = vsel %vm697_vm1, %v4125_v39, %v4126_v23  ;;  %v4291_v52 = vsel %vm4288_vm11, %v4282_v10, %v7046_v21  ;;  %v4292_v53 = vsel %vm4288_vm11, %v4283_v48, %v7047_v17  ;;  %v4309_v30 = vsel %vm3702_vm15, %v9196_v1, %v7057_v20 }
 0x302   : > { %v7113_v32 = vpack.i.bf16 %v9513_v29, %v9498_v24  ;;  %v9526_v45 = vsel %vm616_vm2, %v4114_v3, %v4115_v9  ;;  %v4308_v38 = vsel %vm3702_vm15, %v8914_v42, %v7056_v59  ;;  %v4300_v50 = vsel %vm4297_vm12, %v4291_v52, %v7051_v7  ;;  %v7163_v24 = vld [vmem:[%s10151_s5 + $0x38] sm:$0xff]  }
 0x303   : > { %v7060_v19 = vpop.permute.xlu0 %7059  ;;  %v7118_v34 = vpack.i.bf16 %v8657_v0, %v9526_v45  ;;  %v4301_v15 = vsel %vm4297_vm12, %v4292_v53, %v7052_v31  ;;  %vm4819_vm1 = vcmask 517120   ;;  %vm5164_vm2 = vcmask 1041408  }
 0x304   : > { %7104 = vrot.lane.b32.xlu1 %v7103_v6, %s10166_s22  ;;  %v7062_v40 = vunpack.i.h.bf16 %v7060_v19  ;;  %v7061_v18 = vunpack.i.l.bf16 %v7060_v19  ;;  %v4333_v51 = vpack.c.bf16 %v4301_v15, %v4300_v50  ;;  %vm5145_vm14 = vcmask 1042432   ;;  %vm9901_vm7 = vmor %vm5164_vm2, %vm5165_vm13 }
 0x305   : > { %7109 = vrot.lane.b32.xlu0 %v7108_v43, %s10166_s22 }
 0x306   : > { %v4316_v28 = vsel %vm4288_vm11, %v4308_v38, %v7061_v18  ;;  %v4317_v8 = vsel %vm4288_vm11, %v4309_v30, %v7062_v40 }
 0x307   : > { %v7065_v56 = vpop.permute.xlu0 %7064  ;;  %v7070_v57 = vpop.permute.xlu1 %7069 }
 0x308   : > { %7124 = vrot.lane.b32.xlu1 %v7123_v33, %s7293_s30  ;;  %v7067_v49 = vunpack.i.h.bf16 %v7065_v56  ;;  %v7066_v5 = vunpack.i.l.bf16 %v7065_v56  ;;  %v7072_v0 = vunpack.i.h.bf16 %v7070_v57  ;;  %v7071_v44 = vunpack.i.l.bf16 %v7070_v57 }
 0x309   : > { %7114 = vrot.lane.b32.xlu0 %v7113_v32, %s7291_s16  ;;  %s5904_s16 = scalar_lea.sflag [#allocation3], %s377_s15 }
 0x30a   : > { %v4324_v1 = vsel %vm4297_vm12, %v4316_v28, %v7066_v5  ;;  %v4325_v11 = vsel %vm4297_vm12, %v4317_v8, %v7067_v49  ;;  %v4285_v3 = vsel %vm3702_vm15, %v9187_v37, %v7072_v0  ;;  %v4284_v9 = vsel %vm3702_vm15, %v9068_v55, %v7071_v44 }
 0x30b   : > { %v4334_v42 = vpack.c.bf16 %v4325_v11, %v4324_v1  ;;  %v7075_v26 = vpop.permute.xlu1 %7074 }
 0x30c   : > { %v7077_v47 = vunpack.i.h.bf16 %v7075_v26  ;;  %v7076_v43 = vunpack.i.l.bf16 %v7075_v26 }
 0x30d   : > { %7119 = vrot.lane.b32.xlu0 %v7118_v34, %s7293_s30  ;;  %4545 = vmatprep.mubr.bf16.mxu1 %v4334_v42 }
 0x30e   : > { %4546 = vmatmul.mubr.bf16.gmra.mxu1 %v4333_v51  ;;  %v4293_v21 = vsel %vm4288_vm11, %v4284_v9, %v7076_v43  ;;  %v4294_v20 = vsel %vm4288_vm11, %v4285_v3, %v7077_v47 }
 0x336   : > { %v7080_v12 = vpop.permute.xlu1 %7079 }
 0x337   : > { %v7082_v27 = vunpack.i.h.bf16 %v7080_v12  ;;  %v7081_v13 = vunpack.i.l.bf16 %v7080_v12 }
 0x339   : > { %v4302_v55 = vsel %vm4297_vm12, %v4293_v21, %v7081_v13  ;;  %v4303_v18 = vsel %vm4297_vm12, %v4294_v20, %v7082_v27  ;;  %v4332_v27 = vpack.c.bf16 %v8928_v58, %v8838_v25  ;;  %v10191_v13 = vpack.c.bf16 %v9205_v62, %v9086_v4 }
 0x33a   : > { %v7085_v60 = vpop.permute.xlu0 %7084  ;;  %v4336_v30 = vpack.c.bf16 %v4303_v18, %v4302_v55  ;;  %v7176_v18 = vld [vmem:[%s10151_s5 + $0xb0] sm:$0xff]  }
 0x33b   : > { %v7087_v23 = vunpack.i.h.bf16 %v7085_v60  ;;  %v7086_v6 = vunpack.i.l.bf16 %v7085_v60 }
 0x33d   : > { %v4311_v19 = vsel %vm3702_vm15, %v9489_v63, %v7087_v23  ;;  %v4310_v7 = vsel %vm3702_vm15, %v9200_v14, %v7086_v6 }
 0x36f   : > { %v7090_v39 = vpop.permute.xlu0 %7089 }
 0x370   : > { %v7092_v36 = vunpack.i.h.bf16 %v7090_v39  ;;  %v7091_v33 = vunpack.i.l.bf16 %v7090_v39 }
 0x372   : > { %v7100_v17 = vpop.permute.xlu1 %7099  ;;  %v4318_v40 = vsel %vm4288_vm11, %v4310_v7, %v7091_v33  ;;  %v4319_v37 = vsel %vm4288_vm11, %v4311_v19, %v7092_v36  ;;  %v4341_v36 = vpack.c.bf16 %v8702_v35, %v9513_v29  ;;  %v7162_v35 = vld [vmem:[%s10151_s5 + $0x78] sm:$0xff]   ;;  %v7165_v19 = vld [vmem:[%s10151_s5 + $0x30] sm:$0xff]  }
 0x373   : > { %v7095_v32 = vpop.permute.xlu0 %7094  ;;  %v7102_v56 = vunpack.i.h.bf16 %v7100_v17  ;;  %v7101_v38 = vunpack.i.l.bf16 %v7100_v17  ;;  %6149 = vmatprep.subr.bf16.mxu0 %v7162_v35  ;;  %v7172_v7 = vld [vmem:[%s10151_s5 + $0xf8] sm:$0xff]  }
 0x374   : > { %v7097_v59 = vunpack.i.h.bf16 %v7095_v32  ;;  %v7096_v31 = vunpack.i.l.bf16 %v7095_v32  ;;  %6150 = vmatpush3.bf16.msra.mxu0 %v7163_v24  ;;  %6171 = vmatprep.subr.bf16.mxu1 %v7172_v7 }
 0x375   : > { %v4287_v42 = vsel %vm3702_vm15, %v9475_v61, %v7102_v56  ;;  %v4286_v51 = vsel %vm3702_vm15, %v9331_v46, %v7101_v38  ;;  %v7179_v38 = vld [vmem:[%s10151_s5 + $0xa8] sm:$0xff]  }
 0x376   : > { %v7105_v48 = vpop.permute.xlu1 %7104  ;;  %v4326_v10 = vsel %vm4297_vm12, %v4318_v40, %v7096_v31  ;;  %v4327_v52 = vsel %vm4297_vm12, %v4319_v37, %v7097_v59  ;;  %v7173_v59 = vld [vmem:[%s10151_s5 + $0xb8] sm:$0xff]   ;;  %v7166_v31 = vld [vmem:[%s10151_s5 + $0x68] sm:$0xff]   ;;  %v7174_v40 = vld [vmem:[%s10151_s5 + $0xf0] sm:$0xff]  }
 0x377   : > { %v4337_v53 = vpack.c.bf16 %v4327_v52, %v4326_v10  ;;  %v7110_v63 = vpop.permute.xlu0 %7109  ;;  %v7107_v5 = vunpack.i.h.bf16 %v7105_v48  ;;  %v7106_v50 = vunpack.i.l.bf16 %v7105_v48  ;;  %v7167_v10 = vld [vmem:[%s10151_s5 + $0x28] sm:$0xff]  }
 0x378   : > { %v7112_v57 = vunpack.i.h.bf16 %v7110_v63  ;;  %v7111_v26 = vunpack.i.l.bf16 %v7110_v63  ;;  %v7178_v52 = vld [vmem:[%s10151_s5 + $0xe8] sm:$0xff]   ;;  %v7168_v63 = vld [vmem:[%s10151_s5 + $0x60] sm:$0xff]  }
 0x379   : > { %4553 = vmatprep.mubr.bf16.mxu1 %v4337_v53  ;;  %v4295_v0 = vsel %vm4288_vm11, %v4286_v51, %v7106_v50  ;;  %v4296_v44 = vsel %vm4288_vm11, %v4287_v42, %v7107_v5  ;;  %v7169_v50 = vld [vmem:[%s10151_s5 + $0x20] sm:$0xff]   ;;  %v9653_v42 = vsel %vm1902_vm4, %v7410_v2, 0.0  ;;  %v7184_v2 = vld [vmem:[%s10151_s5 + $0xd8] sm:$0xff]  }
 0x37a   : > { %4554 = vmatmul.mubr.bf16.gmra.mxu1 %v4336_v30  ;;  %v7125_v14 = vpop.permute.xlu1 %7124 }
 0x37b   : > { %v7115_v49 = vpop.permute.xlu0 %7114  ;;  %v7127_v8 = vunpack.i.h.bf16 %v7125_v14  ;;  %v7126_v15 = vunpack.i.l.bf16 %v7125_v14  ;;  %v9635_v14 = vld [vmem:[%s10150_s4] ss:$0 sm:$0xff] }
 0x37c   : > { %v7117_v34 = vunpack.i.h.bf16 %v7115_v49  ;;  %v7116_v28 = vunpack.i.l.bf16 %v7115_v49 }
 0x37d   : > { %v4305_v61 = vsel %vm4297_vm12, %v4296_v44, %v7127_v8 }
 0x37e   : > { %v4313_v1 = vsel %vm3702_vm15, %v9526_v45, %v7117_v34  ;;  %v4312_v11 = vsel %vm3702_vm15, %v9492_v41, %v7116_v28  ;;  %v4304_v41 = vsel %vm4297_vm12, %v4295_v0, %v7126_v15  ;;  %v7180_v34 = vld [vmem:[%s10151_s5 + $0xe0] sm:$0xff]   ;;  %v7171_v0 = vld [vmem:[%s10151_s5 + $0x18] sm:$0xff]  }
 0x37f   : > { %v7120_v60 = vpop.permute.xlu0 %7119  ;;  %v4320_v45 = vsel %vm4288_vm11, %v4312_v11, %v7111_v26  ;;  %v4321_v43 = vsel %vm4288_vm11, %v4313_v1, %v7112_v57  ;;  %v4339_v6 = vpack.c.bf16 %v4305_v61, %v4304_v41  ;;  %v7170_v1 = vld [vmem:[%s10151_s5 + $0x58] sm:$0xff]   ;;  %v7182_v26 = vld [vmem:[%s10151_s5 + $0xa0] sm:$0xff]   ;;  %v7175_v41 = vld [vmem:[%s10151_s5 + $0x50] sm:$0xff]  }
 0x380   : > { %v7122_v12 = vunpack.i.h.bf16 %v7120_v60  ;;  %v7121_v47 = vunpack.i.l.bf16 %v7120_v60 }
 0x382   : > { %v4328_v39 = vsel %vm4297_vm12, %v4320_v45, %v7121_v47  ;;  %v4329_v46 = vsel %vm4297_vm12, %v4321_v43, %v7122_v12 }
 0x383   : > { %v4340_v23 = vpack.c.bf16 %v4329_v46, %v4328_v39 }
 0x385   : > { %4561 = vmatprep.mubr.bf16.mxu1 %v4340_v23  ;;  %v9683_v23 = vcombine.high %v9653_v42, %v9653_v42 }
 0x386   : > { %4562 = vmatmul.mubr.bf16.gmra.mxu1 %v4339_v6 }
 0x387   : > { %6254 = vmatprep.mubr.msk.bf16.mxu1 %vm3702_vm15, %v4332_v27 }
 0x38e   : > { %6255 = vmatmul.mubr.msk.bf16.vlgmr.msra.gmra.mxu1 %vm3702_vm15, %v10191_v13 }
 0x38f   : > { %6258 = vmatprep.mubr.msk.bf16.mxu1 %vm3702_vm15, %v4338_v22  ;;  %v7164_v22 = vld [vmem:[%s10151_s5 + $0x70] sm:$0xff]   ;;  %6172 = vmatpush3.bf16.msra.mxu1 %v7173_v59 }
 0x390   : > { %6151 = vmatprep.subr.bf16.mxu0 %v7164_v22  ;;  %6173 = vmatprep.subr.bf16.mxu1 %v7174_v40 }
 0x391   : > { %6152 = vmatpush3.bf16.msra.mxu0 %v7165_v19 }
 0x392   : > { %6153 = vmatprep.subr.bf16.mxu0 %v7166_v31 }
 0x393   : > { %6174 = vmatpush3.bf16.msra.mxu1 %v7176_v18  ;;  %v7183_v18 = vld [vmem:[%s10151_s5 + $0x8] sm:$0xff]  }
 0x394   : > { %6175 = vmatprep.subr.bf16.mxu1 %v7178_v52 }
 0x395   : > { %6154 = vmatpush3.bf16.msra.mxu0 %v7167_v10 }
 0x396   : > { %6259 = vmatmul.mubr.msk.bf16.gmra.mxu1 %vm3702_vm15, %v4341_v36  ;;  %6155 = vmatprep.subr.bf16.mxu0 %v7168_v63  ;;  %vm5146_vm15 = vcmask 1046532  }
 0x397   : > { %6176 = vmatpush3.bf16.msra.mxu1 %v7179_v38  ;;  %vm9909_vm8 = vmor %vm5145_vm14, %vm5146_vm15 }
 0x398   : > { %6177 = vmatprep.subr.bf16.mxu1 %v7180_v34 }
 0x399   : > { %6156 = vmatpush3.bf16.msra.mxu0 %v7169_v50 }
 0x39a   : > { %6157 = vmatprep.subr.bf16.mxu0 %v7170_v1 }
 0x39b   : > { %6178 = vmatpush3.bf16.msra.mxu1 %v7182_v26 }
 0x39c   : > { %6179 = vmatprep.subr.bf16.mxu1 %v7184_v2 }
 0x39d   : > { %6158 = vmatpush3.bf16.msra.mxu0 %v7171_v0 }
 0x39e   : > { %6159 = vmatprep.subr.bf16.mxu0 %v7175_v41 }
 0x3b6   : > { %v6119_v33 = vpop.f32.mrf.mxu1 }
 0x3b8   : > { %v6120_v25 = vpop.f32.mrf.mxu1 }
 0x3b9   : > { %v6121_v53 = vadd.f32 %v6120_v25, %v6119_v33  ;;  %v7185_v33 = vld [vmem:[%s10151_s5 + $0x98] sm:$0xff]  }
 0x3ba   : > { %v6122_v58 = vpop.f32.mrf.mxu1  ;;  %6180 = vmatpush3.bf16.msra.mxu1 %v7185_v33  ;;  %v6022_v33 = vrot.slane %v9653_v42, 10 }
 0x3bb   : > { %v4540_v15 = vadd.f32 %v6121_v53, %v9635_v14 }
 0x3bc   : > { %v6123_v3 = vpop.f32.mrf.mxu1 }
 0x3bd   : > { %v6124_v49 = vadd.f32 %v6123_v3, %v6122_v58 }
 0x3bf   : > { %v9659_v60 = vadd.f32 %v6124_v49, %v9635_v14 }
 0x3ce   : > { %v6125_v9 = vpop.f32.mrf.mxu1 }
 0x3d0   : > { %v6126_v17 = vpop.f32.mrf.mxu1 }
 0x3d1   : > { %v6127_v55 = vadd.f32 %v6126_v17, %v6125_v9  ;;  %v7177_v17 = vld [vmem:[%s10151_s5 + $0x10] sm:$0xff]  }
 0x3d2   : > { %v6128_v21 = vpop.f32.mrf.mxu1  ;;  %6160 = vmatpush3.bf16.msra.mxu0 %v7177_v17 }
 0x3d3   : > { %v4548_v56 = vadd.f32 %v6127_v55, %v9635_v14 }
 0x3d4   : > { %v6129_v4 = vpop.f32.mrf.mxu1 }
 0x3d5   : > { %v6130_v28 = vadd.f32 %v6129_v4, %v6128_v21 }
 0x3d7   : > { %v4551_v45 = vadd.f32 %v6130_v28, %v9635_v14 }
 0x43a   : > { %v9590_v62 = vpop.f32.mrf.mxu1 }
 0x43c   : > { %v9592_v20 = vpop.f32.mrf.mxu1 }
 0x43d   : > { %v9674_v61 = vadd.f32 %v9592_v20, %v9590_v62 }
 0x43e   : > { %v9594_v16 = vpop.f32.mrf.mxu1 }
 0x440   : > { %v6135_v29 = vpop.f32.mrf.mxu1 }
 0x441   : > { %v9677_v39 = vadd.f32 %v6135_v29, %v9594_v16  ;;  %v7181_v16 = vld [vmem:[%s10151_s5 + $0x48] sm:$0xff]  }
 0x442   : > { %6161 = vmatprep.subr.bf16.mxu0 %v7181_v16 }
 0x443   : > { %6162 = vmatpush3.bf16.msra.mxu0 %v7183_v18 }
 0x446   : > { %v6137_v32 = vpop.f32.mrf.mxu1 }
 0x448   : > { %v6138_v37 = vpop.f32.mrf.mxu1 }
 0x449   : > { %v9679_v46 = vadd.f32 %v6138_v37, %v6137_v32 }
 0x44a   : > { %v6140_v48 = vpop.f32.mrf.mxu1 }
 0x44c   : > { %v6141_v30 = vpop.f32.mrf.mxu1 }
 0x44d   : > { %v9690_v25 = vadd.f32 %v6141_v30, %v6140_v48 }
 0x44e   : > { %v6256_v5 = vpop.f32.mrf.mxu1 }
 0x44f   : > { %v4613_v8 = vadd.f32 %v6256_v5, %v4548_v56 }
 0x450   : > { %v4604_v11 = vpop.f32.mrf.mxu1 }
 0x451   : > { %v4637_v51 = vmax.f32 %v4613_v8, 0.0  ;;  %v4605_v57 = vadd.f32 %v4604_v11, %v4540_v15 }
 0x452   : > { %v6257_v43 = vpop.f32.mrf.mxu1 }
 0x453   : > { %v4685_v44 = vcombine.high %v4637_v51, %v4637_v51  ;;  %v4692_v12 = vrot.slane %v4637_v51, %v8482_v54  ;;  %v4635_v47 = vmax.f32 %v4605_v57, 0.0  ;;  %v4616_v9 = vadd.f32 %v6257_v43, %v4551_v45 }
 0x454   : > { %v4607_v0 = vpop.f32.mrf.mxu1 }
 0x455   : > { %v4699_v6 = vrot.slane %v4685_v44, %v8482_v54  ;;  %v4700_v27 = vcombine.high %v4692_v12, %v4692_v12  ;;  %v4876_v13 = vsel %vm4819_vm1, %v4692_v12, -inf  ;;  %v4651_v36 = vcombine.high %v4635_v47, %v4635_v47 }
 0x456   : > { %v4877_v58 = vrot.slane %v4876_v13, 4  ;;  %v4658_v3 = vrot.slane %v4635_v47, %v8482_v54  ;;  %v4638_v47 = vmax.f32 %v4616_v9, 0.0  ;;  %v9718_v9 = vadd.f32 %v9679_v46, %v9635_v14 }
 0x457   : > { %v4701_v21 = vcombine.high %v4699_v6, %v4699_v6  ;;  %v4883_v4 = vsel %vm4819_vm1, %v4700_v27, -inf  ;;  %v4890_v62 = vsel %vm4819_vm1, %v4699_v6, -inf  ;;  %v4665_v20 = vrot.slane %v4651_v36, %v8482_v54 }
 0x458   : > { %v4878_v35 = vmax.f32 %v4876_v13, %v4877_v58  ;;  %v4884_v24 = vrot.slane %v4883_v4, 4  ;;  %v4891_v22 = vrot.slane %v4890_v62, 4  ;;  %v4666_v29 = vcombine.high %v4658_v3, %v4658_v3 }
 0x459   : > { %v4897_v32 = vsel %vm4819_vm1, %v4701_v21, -inf  ;;  %v4667_v19 = vcombine.high %v4665_v20, %v4665_v20  ;;  %v4820_v7 = vsel %vm4819_vm1, %v4658_v3, -inf  ;;  %v4834_v59 = vsel %vm4819_vm1, %v4665_v20, -inf }
 0x45a   : > { %v4879_v31 = vrot.slane %v4878_v35, 2  ;;  %v4885_v40 = vmax.f32 %v4883_v4, %v4884_v24  ;;  %v4892_v37 = vmax.f32 %v4890_v62, %v4891_v22  ;;  %v4898_v55 = vrot.slane %v4897_v32, 4 }
 0x45b   : > { %v4821_v48 = vrot.slane %v4820_v7, 4  ;;  %v4827_v10 = vsel %vm4819_vm1, %v4666_v29, -inf  ;;  %v4835_v52 = vrot.slane %v4834_v59, 4  ;;  %v4841_v53 = vsel %vm4819_vm1, %v4667_v19, -inf }
 0x45c   : > { %v4880_v63 = vmax.f32 %v4878_v35, %v4879_v31  ;;  %v4886_v30 = vrot.slane %v4885_v40, 2  ;;  %v4893_v56 = vrot.slane %v4892_v37, 2  ;;  %v4899_v38 = vmax.f32 %v4897_v32, %v4898_v55 }
 0x45d   : > { %v4822_v49 = vmax.f32 %v4820_v7, %v4821_v48  ;;  %v4828_v5 = vrot.slane %v4827_v10, 4  ;;  %v4836_v50 = vmax.f32 %v4834_v59, %v4835_v52  ;;  %v4842_v34 = vrot.slane %v4841_v53, 4 }
 0x45e   : > { %v4881_v28 = vrot.slane %v4880_v63, 1  ;;  %v4887_v8 = vmax.f32 %v4885_v40, %v4886_v30  ;;  %v4894_v15 = vmax.f32 %v4892_v37, %v4893_v56  ;;  %v4900_v1 = vrot.slane %v4899_v38, 2 }
 0x45f   : > { %v4823_v11 = vrot.slane %v4822_v49, 2  ;;  %v4829_v51 = vmax.f32 %v4827_v10, %v4828_v5  ;;  %v4837_v57 = vrot.slane %v4836_v50, 2  ;;  %v4843_v26 = vmax.f32 %v4841_v53, %v4842_v34 }
 0x460   : > { %v4888_v2 = vrot.slane %v4887_v8, 1  ;;  %v4895_v44 = vrot.slane %v4894_v15, 1  ;;  %v4901_v12 = vmax.f32 %v4899_v38, %v4900_v1  ;;  %v4882_v45 = vmax.f32 %v4880_v63, %v4881_v28 }
 0x461   : > { %v4824_v43 = vmax.f32 %v4822_v49, %v4823_v11  ;;  %v4830_v41 = vrot.slane %v4829_v51, 2  ;;  %v4838_v6 = vmax.f32 %v4836_v50, %v4837_v57  ;;  %v4844_v27 = vrot.slane %v4843_v26, 2 }
 0x462   : > { %v4608_v13 = vadd.f32 %v4607_v0, %v9659_v60  ;;  %v9713_v36 = vadd.f32 %v9674_v61, %v9635_v14  ;;  %v4889_v58 = vmax.f32 %v4887_v8, %v4888_v2  ;;  %v4896_v3 = vmax.f32 %v4894_v15, %v4895_v44 }
 0x463   : > { %v4902_v17 = vrot.slane %v4901_v12, 1  ;;  %v4825_v21 = vrot.slane %v4824_v43, 1  ;;  %v4702_v4 = vcombine.high %v4638_v47, %v4638_v47  ;;  %v9722_v62 = vadd.f32 %v9677_v39, %v9635_v14 }
 0x464   : > { %v5169_v60 = vrot.slane %v9683_v23, 6  ;;  %v9726_v61 = vsel %vm4288_vm11, %v4882_v45, -inf  ;;  %v9728_v20 = vmax.f32 %v4829_v51, %v4830_v41  ;;  %v4839_v16 = vrot.slane %v4838_v6, 1 }
 0x465   : > { %v9732_v35 = vadd.f32 %v9690_v25, %v9635_v14  ;;  %v4845_v24 = vmax.f32 %v4843_v26, %v4844_v27  ;;  %v4709_v46 = vrot.slane %v4638_v47, %v8482_v54  ;;  %v4716_v22 = vrot.slane %v4702_v4, %v8482_v54 }
 0x466   : > { %v4636_v29 = vmax.f32 %v4608_v13, 0.0  ;;  %v4903_v39 = vmax.f32 %v4901_v12, %v4902_v17  ;;  %v9737_v32 = vsel %vm4288_vm11, %v4889_v58, -inf  ;;  %v9740_v19 = vsel %vm4288_vm11, %v4896_v3, -inf }
 0x467   : > { %v4826_v7 = vmax.f32 %v4824_v43, %v4825_v21  ;;  %v4717_v59 = vcombine.high %v4709_v46, %v4709_v46  ;;  %v4718_v31 = vcombine.high %v4716_v22, %v4716_v22  ;;  %v4904_v40 = vsel %vm4819_vm1, %v4709_v46, -inf }
 0x468   : > { %v4918_v14 = vsel %vm4819_vm1, %v4716_v22, -inf  ;;  %v4832_v25 = vrot.slane %v9728_v20, 1  ;;  %v9745_v37 = vmax.f32 %v4838_v6, %v4839_v16  ;;  %v4905_v55 = vrot.slane %v4904_v40, 4  ;;  %v6260_v16 = vpop.f32.mrf.mxu1 }
 0x469   : > { %v4919_v18 = vrot.slane %v4918_v14, 4  ;;  %v4911_v48 = vsel %vm4819_vm1, %v4717_v59, -inf  ;;  %v4925_v10 = vsel %vm4819_vm1, %v4718_v31, -inf  ;;  %v4668_v52 = vcombine.high %v4636_v29, %v4636_v29 }
 0x46a   : > { %v4675_v53 = vrot.slane %v4636_v29, %v8482_v54  ;;  %v4906_v63 = vmax.f32 %v4904_v40, %v4905_v55  ;;  %v4912_v30 = vrot.slane %v4911_v48, 4  ;;  %v4926_v38 = vrot.slane %v4925_v10, 4 }
 0x46b   : > { %v4920_v56 = vmax.f32 %v4918_v14, %v4919_v18  ;;  %v4846_v49 = vrot.slane %v4845_v24, 1  ;;  %v4682_v5 = vrot.slane %v4668_v52, %v8482_v54  ;;  %v9756_v46 = vsel %vm4288_vm11, %v4903_v39, -inf }
 0x46c   : > { %v4683_v50 = vcombine.high %v4675_v53, %v4675_v53  ;;  %v4848_v34 = vsel %vm4819_vm1, %v4675_v53, -inf  ;;  %v4907_v28 = vrot.slane %v4906_v63, 2  ;;  %v4913_v8 = vmax.f32 %v4911_v48, %v4912_v30 }
 0x46d   : > { %v4921_v15 = vrot.slane %v4920_v56, 2  ;;  %v4927_v1 = vmax.f32 %v4925_v10, %v4926_v38  ;;  %v4684_v11 = vcombine.high %v4682_v5, %v4682_v5  ;;  %v4849_v51 = vrot.slane %v4848_v34, 4 }
 0x46e   : > { %v4855_v57 = vsel %vm4819_vm1, %v4683_v50, -inf  ;;  %v4862_v26 = vsel %vm4819_vm1, %v4682_v5, -inf  ;;  %v4908_v0 = vmax.f32 %v4906_v63, %v4907_v28  ;;  %v4914_v2 = vrot.slane %v4913_v8, 2 }
 0x46f   : > { %v4922_v44 = vmax.f32 %v4920_v56, %v4921_v15  ;;  %v4928_v12 = vrot.slane %v4927_v1, 2  ;;  %v4850_v47 = vmax.f32 %v4848_v34, %v4849_v51  ;;  %v4856_v45 = vrot.slane %v4855_v57, 4  ;;  %v4620_v56 = vpop.f32.mrf.mxu1 }
 0x470   : > { %v4863_v43 = vrot.slane %v4862_v26, 4  ;;  %v4869_v41 = vsel %vm4819_vm1, %v4684_v11, -inf  ;;  %v4909_v6 = vrot.slane %v4908_v0, 1  ;;  %v4915_v27 = vmax.f32 %v4913_v8, %v4914_v2 }
 0x471   : > { %v4923_v13 = vrot.slane %v4922_v44, 1  ;;  %v4929_v58 = vmax.f32 %v4927_v1, %v4928_v12  ;;  %v4851_v3 = vrot.slane %v4850_v47, 2  ;;  %v4857_v17 = vmax.f32 %v4855_v57, %v4856_v45 }
 0x472   : > { %v4864_v21 = vmax.f32 %v4862_v26, %v4863_v43  ;;  %v4870_v4 = vrot.slane %v4869_v41, 4  ;;  %v4910_v22 = vmax.f32 %v4908_v0, %v4909_v6  ;;  %v4916_v29 = vrot.slane %v4915_v27, 1 }
 0x473   : > { %v4930_v59 = vrot.slane %v4929_v58, 1  ;;  %v4852_v31 = vmax.f32 %v4850_v47, %v4851_v3  ;;  %v4858_v40 = vrot.slane %v4857_v17, 2  ;;  %v4833_v18 = vmax.f32 %v9728_v20, %v4832_v25 }
 0x474   : > { %v4865_v14 = vrot.slane %v4864_v21, 2  ;;  %v4871_v55 = vmax.f32 %v4869_v41, %v4870_v4  ;;  %v4847_v48 = vmax.f32 %v4845_v24, %v4846_v49  ;;  %v4917_v10 = vmax.f32 %v4915_v27, %v4916_v29 }
 0x475   : > { %v4629_v52 = vadd.f32 %v6260_v16, %v9718_v9  ;;  %v9761_v53 = vsel %vm4288_vm11, %v4826_v7, -inf  ;;  %v4924_v63 = vmax.f32 %v4922_v44, %v4923_v13  ;;  %v4853_v30 = vrot.slane %v4852_v31, 1 }
 0x476   : > { %v4859_v39 = vmax.f32 %v4857_v17, %v4858_v40  ;;  %v4931_v38 = vmax.f32 %v4929_v58, %v4930_v59  ;;  %v5060_v5 = vsel %vm4288_vm11, %v4917_v10, -inf  ;;  %v4866_v50 = vmax.f32 %v4864_v21, %v4865_v14 }
 0x477   : > { %v4872_v34 = vrot.slane %v4871_v55, 2  ;;  %v5057_v28 = vsel %vm4288_vm11, %v4910_v22, -inf  ;;  %v5061_v20 = vmax.f32 %v9737_v32, %v5060_v5  ;;  %v4854_v24 = vmax.f32 %v4852_v31, %v4853_v30 }
 0x478   : > { %v4860_v25 = vrot.slane %v4859_v39, 1  ;;  %v4867_v49 = vrot.slane %v4866_v50, 1  ;;  %v4641_v8 = vmax.f32 %v4629_v52, 0.0  ;;  %v4621_v7 = vadd.f32 %v4620_v56, %v9713_v36  ;;  %v6261_v36 = vpop.f32.mrf.mxu1 }
 0x479   : > { %v4873_v9 = vmax.f32 %v4871_v55, %v4872_v34  ;;  %v9768_v15 = vsel %vm4288_vm11, %v4833_v18, -inf  ;;  %v9772_v1 = vsel %vm4288_vm11, %v9745_v37, -inf  ;;  %v9775_v11 = vsel %vm4288_vm11, %v4924_v63, -inf }
 0x47a   : > { %v4861_v51 = vmax.f32 %v4859_v39, %v4860_v25  ;;  %v9778_v32 = vsel %vm4288_vm11, %v4847_v48, -inf  ;;  %v5058_v57 = vmax.f32 %v9726_v61, %v5057_v28  ;;  %v9782_v0 = vsel %vm4288_vm11, %v4854_v24, -inf }
 0x47b   : > { %v4874_v26 = vrot.slane %v4873_v9, 1  ;;  %v4868_v2 = vmax.f32 %v4866_v50, %v4867_v49  ;;  %v4753_v44 = vcombine.high %v4641_v8, %v4641_v8  ;;  %v4760_v12 = vrot.slane %v4641_v8, %v8482_v54 }
 0x47c   : > { %v4639_v37 = vmax.f32 %v4621_v7, 0.0  ;;  %v5064_v47 = vmax.f32 %v9740_v19, %v9775_v11  ;;  %v9788_v45 = vsel %vm4288_vm11, %v4931_v38, -inf  ;;  %v9791_v43 = vsel %vm3959_vm3, %v5061_v20, %v5058_v57 }
 0x47d   : > { %v5048_v61 = vsel %vm4288_vm11, %v4861_v51, -inf  ;;  %v4767_v41 = vrot.slane %v4753_v44, %v8482_v54  ;;  %v4768_v6 = vcombine.high %v4760_v12, %v4760_v12  ;;  %v4988_v27 = vsel %vm4819_vm1, %v4760_v12, -inf }
 0x47e   : > { %v4632_v13 = vadd.f32 %v6261_v36, %v9732_v35  ;;  %v4875_v58 = vmax.f32 %v4873_v9, %v4874_v26  ;;  %v5046_v3 = vmax.f32 %v9761_v53, %v9782_v0  ;;  %v4989_v17 = vrot.slane %v4988_v27, 4 }
 0x47f   : > { %v4719_v21 = vcombine.high %v4639_v37, %v4639_v37  ;;  %v5049_v4 = vmax.f32 %v9768_v15, %v5048_v61  ;;  %v5051_v16 = vsel %vm4288_vm11, %v4868_v2, -inf  ;;  %v4769_v22 = vcombine.high %v4767_v41, %v4767_v41 }
 0x480   : > { %v4995_v29 = vsel %vm4819_vm1, %v4768_v6, -inf  ;;  %v4990_v59 = vmax.f32 %v4988_v27, %v4989_v17  ;;  %v5002_v40 = vsel %vm4819_vm1, %v4767_v41, -inf  ;;  %v4726_v14 = vrot.slane %v4639_v37, %v8482_v54 }
 0x481   : > { %v4996_v31 = vrot.slane %v4995_v29, 4  ;;  %v5003_v35 = vrot.slane %v5002_v40, 4  ;;  %v5009_v55 = vsel %vm4819_vm1, %v4769_v22, -inf  ;;  %v4733_v18 = vrot.slane %v4719_v21, %v8482_v54 }
 0x482   : > { %v4642_v48 = vmax.f32 %v4632_v13, 0.0  ;;  %v4991_v10 = vrot.slane %v4990_v59, 2  ;;  %v5010_v53 = vrot.slane %v5009_v55, 4  ;;  %v4734_v63 = vcombine.high %v4726_v14, %v4726_v14 }
 0x483   : > { %v4997_v52 = vmax.f32 %v4995_v29, %v4996_v31  ;;  %v5004_v30 = vmax.f32 %v5002_v40, %v5003_v35  ;;  %v4735_v39 = vcombine.high %v4733_v18, %v4733_v18  ;;  %v4932_v56 = vsel %vm4819_vm1, %v4726_v14, -inf }
 0x484   : > { %v4946_v38 = vsel %vm4819_vm1, %v4733_v18, -inf  ;;  %v4992_v5 = vmax.f32 %v4990_v59, %v4991_v10  ;;  %v5011_v34 = vmax.f32 %v5009_v55, %v5010_v53  ;;  %v4933_v28 = vrot.slane %v4932_v56, 4 }
 0x485   : > { %v4998_v50 = vrot.slane %v4997_v52, 2  ;;  %v5005_v20 = vrot.slane %v5004_v30, 2  ;;  %v4939_v24 = vsel %vm4819_vm1, %v4734_v63, -inf  ;;  %v4947_v25 = vrot.slane %v4946_v38, 4 }
 0x486   : > { %v4953_v49 = vsel %vm4819_vm1, %v4735_v39, -inf  ;;  %v4993_v9 = vrot.slane %v4992_v5, 1  ;;  %v5012_v7 = vrot.slane %v5011_v34, 2  ;;  %v4934_v15 = vmax.f32 %v4932_v56, %v4933_v28 }
 0x487   : > { %v4999_v8 = vmax.f32 %v4997_v52, %v4998_v50  ;;  %v5006_v51 = vmax.f32 %v5004_v30, %v5005_v20  ;;  %v4940_v57 = vrot.slane %v4939_v24, 4  ;;  %v4948_v26 = vmax.f32 %v4946_v38, %v4947_v25 }
 0x488   : > { %v4954_v0 = vrot.slane %v4953_v49, 4  ;;  %v5052_v36 = vmax.f32 %v9772_v1, %v5051_v16  ;;  %v5013_v44 = vmax.f32 %v5011_v34, %v5012_v7  ;;  %v4935_v12 = vrot.slane %v4934_v15, 2 }
 0x489   : > { %v5000_v2 = vrot.slane %v4999_v8, 1  ;;  %v5007_v37 = vrot.slane %v5006_v51, 1  ;;  %v4941_v61 = vmax.f32 %v4939_v24, %v4940_v57  ;;  %v4949_v41 = vrot.slane %v4948_v26, 2 }
 0x48a   : > { %v4955_v6 = vmax.f32 %v4953_v49, %v4954_v0  ;;  %v5054_v27 = vsel %vm4288_vm11, %v4875_v58, -inf  ;;  %v4994_v13 = vmax.f32 %v4992_v5, %v4993_v9  ;;  %v5014_v17 = vrot.slane %v5013_v44, 1 }
 0x48b   : > { %v4770_v21 = vcombine.high %v4642_v48, %v4642_v48  ;;  %v5108_v22 = vsel %vm3959_vm3, %v5049_v4, %v5046_v3  ;;  %v5001_v29 = vmax.f32 %v4999_v8, %v5000_v2  ;;  %v4936_v59 = vmax.f32 %v4934_v15, %v4935_v12 }
 0x48c   : > { %v4942_v31 = vrot.slane %v4941_v61, 2  ;;  %v5067_v1 = vmax.f32 %v9756_v46, %v9788_v45  ;;  %v5112_v16 = vsel %vm3961_vm5, %v5064_v47, %v9791_v43  ;;  %v5008_v40 = vmax.f32 %v5006_v51, %v5007_v37 }
 0x48d   : > { %v4777_v58 = vrot.slane %v4642_v48, %v8482_v54  ;;  %v5055_v14 = vmax.f32 %v9778_v32, %v5054_v27  ;;  %v5015_v35 = vmax.f32 %v5013_v44, %v5014_v17  ;;  %v4950_v55 = vmax.f32 %v4948_v26, %v4949_v41  ;;  %v4623_v32 = vpop.f32.mrf.mxu1 }
 0x48e   : > { %v4956_v3 = vrot.slane %v4955_v6, 2  ;;  %v5109_v4 = vsel %vm3961_vm5, %v5052_v36, %v5108_v22  ;;  %v9824_v18 = vsel %vm4288_vm11, %v4994_v13, -inf  ;;  %v4784_v46 = vrot.slane %v4770_v21, %v8482_v54 }
 0x48f   : > { %v4785_v45 = vcombine.high %v4777_v58, %v4777_v58  ;;  %v9828_v19 = vsel %vm4288_vm11, %v5001_v29, -inf  ;;  %v4937_v11 = vrot.slane %v4936_v59, 1  ;;  %v9830_v47 = vmax.f32 %v4941_v61, %v4942_v31 }
 0x490   : > { %v5016_v43 = vsel %vm4819_vm1, %v4777_v58, -inf  ;;  %v9834_v48 = vsel %vm4288_vm11, %v5008_v40, -inf  ;;  %v4786_v10 = vcombine.high %v4784_v46, %v4784_v46  ;;  %v9838_v63 = vsel %vm4288_vm11, %v5015_v35, -inf }
 0x491   : > { %v5017_v52 = vrot.slane %v5016_v43, 4  ;;  %v5023_v53 = vsel %vm4819_vm1, %v4785_v45, -inf  ;;  %v4951_v30 = vrot.slane %v4950_v55, 1  ;;  %v9840_v39 = vmax.f32 %v4955_v6, %v4956_v3 }
 0x492   : > { %v5024_v56 = vrot.slane %v5023_v53, 4  ;;  %v5030_v5 = vsel %vm4819_vm1, %v4784_v46, -inf  ;;  %v5037_v50 = vsel %vm4819_vm1, %v4786_v10, -inf  ;;  %v4624_v34 = vadd.f32 %v4623_v32, %v9722_v62 }
 0x493   : > { %v5018_v38 = vmax.f32 %v5016_v43, %v5017_v52  ;;  %v9845_v28 = vmax.f32 %v4936_v59, %v4937_v11  ;;  %v4944_v20 = vrot.slane %v9830_v47, 1  ;;  %v5031_v25 = vrot.slane %v5030_v5, 4 }
 0x494   : > { %v5025_v24 = vmax.f32 %v5023_v53, %v5024_v56  ;;  %v5038_v9 = vrot.slane %v5037_v50, 4  ;;  %v4640_v8 = vmax.f32 %v4624_v34, 0.0  ;;  %v5110_v7 = vsel %vm3963_vm6, %v5055_v14, %v5109_v4 }
 0x495   : > { %v5019_v49 = vrot.slane %v5018_v38, 2  ;;  %v5032_v51 = vmax.f32 %v5030_v5, %v5031_v25  ;;  %v5113_v57 = vsel %vm3963_vm6, %v5067_v1, %v5112_v16  ;;  %v5120_v26 = vrot.slane %v5110_v7, 7 }
 0x496   : > { %v5026_v15 = vrot.slane %v5025_v24, 2  ;;  %v5039_v36 = vmax.f32 %v5037_v50, %v5038_v9  ;;  %v4736_v2 = vcombine.high %v4640_v8, %v4640_v8  ;;  %v4743_v62 = vrot.slane %v4640_v8, %v8482_v54 }
 0x497   : > { %v5020_v0 = vmax.f32 %v5018_v38, %v5019_v49  ;;  %v9851_v44 = vmax.f32 %v4950_v55, %v4951_v30  ;;  %v5033_v37 = vrot.slane %v5032_v51, 2  ;;  %v5121_v61 = vrot.slane %v5113_v57, 7 }
 0x498   : > { %v5027_v12 = vmax.f32 %v5025_v24, %v5026_v15  ;;  %v5040_v6 = vrot.slane %v5039_v36, 2  ;;  %v4750_v27 = vrot.slane %v4736_v2, %v8482_v54  ;;  %v4751_v13 = vcombine.high %v4743_v62, %v4743_v62 }
 0x499   : > { %v5021_v41 = vrot.slane %v5020_v0, 1  ;;  %v5034_v21 = vmax.f32 %v5032_v51, %v5033_v37  ;;  %v4960_v22 = vsel %vm4819_vm1, %v4743_v62, -inf  ;;  %v5128_v29 = vsel %vm450_vm0, 0.0, %v5120_v26 }
 0x49a   : > { %v5028_v17 = vrot.slane %v5027_v12, 1  ;;  %v5041_v31 = vmax.f32 %v5039_v36, %v5040_v6  ;;  %v4752_v1 = vcombine.high %v4750_v27, %v4750_v27  ;;  %v4961_v16 = vrot.slane %v4960_v22, 4 }
 0x49b   : > { %v5022_v59 = vmax.f32 %v5020_v0, %v5021_v41  ;;  %v5035_v58 = vrot.slane %v5034_v21, 1  ;;  %v4967_v14 = vsel %vm4819_vm1, %v4751_v13, -inf  ;;  %v4974_v35 = vsel %vm4819_vm1, %v4750_v27, -inf }
 0x49c   : > { %v5029_v40 = vmax.f32 %v5027_v12, %v5028_v17  ;;  %v5042_v55 = vrot.slane %v5041_v31, 1  ;;  %v4962_v3 = vmax.f32 %v4960_v22, %v4961_v16  ;;  %v4968_v4 = vrot.slane %v4967_v14, 4 }
 0x49d   : > { %v5081_v54 = vsel %vm4288_vm11, %v5022_v59, -inf  ;;  %v5036_v46 = vmax.f32 %v5034_v21, %v5035_v58  ;;  %v4975_v43 = vrot.slane %v4974_v35, 4  ;;  %v4981_v38 = vsel %vm4819_vm1, %v4752_v1, -inf }
 0x49e   : > { %v5082_v45 = vmax.f32 %v9824_v18, %v5081_v54  ;;  %v5084_v11 = vsel %vm4288_vm11, %v5029_v40, -inf  ;;  %v5043_v32 = vmax.f32 %v5041_v31, %v5042_v55  ;;  %v4963_v52 = vrot.slane %v4962_v3, 2 }
 0x49f   : > { %v5085_v10 = vmax.f32 %v9828_v19, %v5084_v11  ;;  %v4969_v53 = vmax.f32 %v4967_v14, %v4968_v4  ;;  %v5087_v30 = vsel %vm4288_vm11, %v5036_v46, -inf  ;;  %v4976_v56 = vmax.f32 %v4974_v35, %v4975_v43 }
 0x4a0   : > { %v9865_v5 = vsel %vm1902_vm4, %v5128_v29, 0.0  ;;  %v5088_v18 = vmax.f32 %v9834_v48, %v5087_v30  ;;  %v5090_v50 = vsel %vm4288_vm11, %v5043_v32, -inf  ;;  %v4964_v24 = vmax.f32 %v4962_v3, %v4963_v52  ;;  %v7186_v52 = vld [vmem:[%s10151_s5 + $0xd0] sm:$0xff]  }
 0x4a1   : > { %v5117_v34 = vsel %vm3959_vm3, %v5085_v10, %v5082_v45  ;;  %v5091_v19 = vmax.f32 %v9838_v63, %v5090_v50  ;;  %v4970_v25 = vrot.slane %v4969_v53, 2  ;;  %v4977_v49 = vrot.slane %v4976_v56, 2  ;;  %6181 = vmatprep.subr.bf16.mxu1 %v7186_v52 }
 0x4a2   : > { %v4982_v9 = vrot.slane %v4981_v38, 4  ;;  %v4958_v8 = vrot.slane %v9840_v39, 1  ;;  %v5118_v7 = vsel %vm3961_vm5, %v5088_v18, %v5117_v34  ;;  %v4965_v15 = vrot.slane %v4964_v24, 1  ;;  %v7189_v18 = vld [vmem:[%s10151_s5] sm:$0xff]  }
 0x4a3   : > { %v5129_v51 = vsel %vm450_vm0, 0.0, %v5121_v61  ;;  %v4971_v48 = vmax.f32 %v4969_v53, %v4970_v25  ;;  %v4978_v57 = vmax.f32 %v4976_v56, %v4977_v49  ;;  %v5119_v0 = vsel %vm3963_vm6, %v5091_v19, %v5118_v7  ;;  %v7187_v53 = vld [vmem:[%s10151_s5 + $0x40] sm:$0xff]  }
 0x4a4   : > { %v4983_v26 = vmax.f32 %v4981_v38, %v4982_v9  ;;  %v4945_v36 = vmax.f32 %v9830_v47, %v4944_v20  ;;  %v4966_v63 = vmax.f32 %v4964_v24, %v4965_v15  ;;  %v5123_v2 = vrot.slane %v5119_v0, 7  ;;  %6163 = vmatprep.subr.bf16.mxu0 %v7187_v53 }
 0x4a5   : > { %v5142_v62 = vcombine.high %v9865_v5, %v9865_v5  ;;  %v4972_v12 = vrot.slane %v4971_v48, 1  ;;  %v4979_v37 = vrot.slane %v4978_v57, 1  ;;  %v9881_v6 = vsel %vm1902_vm4, %v5129_v51, 0.0  ;;  %6164 = vmatpush3.bf16.msra.mxu0 %v7189_v18 }
 0x4a6   : > { %v4984_v41 = vrot.slane %v4983_v26, 2  ;;  %v4959_v61 = vmax.f32 %v9840_v39, %v4958_v8  ;;  %v5068_v27 = vsel %vm4288_vm11, %v9845_v28, -inf  ;;  %v5074_v13 = vsel %vm4288_vm11, %v9851_v44, -inf }
 0x4a7   : > { %v5131_v47 = vsel %vm450_vm0, 0.0, %v5123_v2  ;;  %v4973_v20 = vmax.f32 %v4971_v48, %v4972_v12  ;;  %v4980_v17 = vmax.f32 %v4978_v57, %v4979_v37  ;;  %v5069_v22 = vsel %vm4288_vm11, %v4966_v63, -inf  ;;  %v7190_v48 = vld [vmem:[%s10151_s5 + $0xc8] sm:$0xff]  }
 0x4a8   : > { %v4985_v21 = vmax.f32 %v4983_v26, %v4984_v41  ;;  %v5071_v29 = vsel %vm4288_vm11, %v4945_v36, -inf  ;;  %v9892_v59 = vsel %vm1902_vm4, %v5131_v47, 0.0  ;;  %v5143_v39 = vcombine.high %v9881_v6, %v9881_v6 }
 0x4a9   : > { %v5173_v31 = vrot.slane %v5142_v62, 6  ;;  %v5072_v1 = vsel %vm4288_vm11, %v4973_v20, -inf  ;;  %v5075_v44 = vsel %vm4288_vm11, %v4980_v17, -inf  ;;  %v6023_v16 = vrot.slane %v9865_v5, 10 }
 0x4aa   : > { %v4986_v28 = vrot.slane %v4985_v21, 1  ;;  %v5070_v40 = vmax.f32 %v5068_v27, %v5069_v22  ;;  %v5073_v58 = vmax.f32 %v5071_v29, %v5072_v1  ;;  %v5076_v14 = vmax.f32 %v5074_v13, %v5075_v44  ;;  %v7192_v27 = vld [vmem:[%s10151_s5 + $0xc0] sm:$0xff]  }
 0x4ab   : > { %v5184_v55 = vcombine.high %v9892_v59, %v9892_v59  ;;  %v6019_v4 = vrot.slane %v9865_v5, 9  ;;  %v5154_v46 = vrot.slane %v5142_v62, 5  ;;  %v9920_v45 = vsel %vm9901_vm7, %v6022_v33, %v5169_v60  ;;  %v7188_v33 = vld [vmem:[%s10151_s5 + $0x90] sm:$0xff]  }
 0x4ac   : > { %v4987_v54 = vmax.f32 %v4985_v21, %v4986_v28  ;;  %v5114_v11 = vsel %vm3959_vm3, %v5073_v58, %v5070_v40  ;;  %v9925_v43 = vsel %vm9901_vm7, %v6023_v16, %v5173_v31  ;;  %v6020_v32 = vrot.slane %v9881_v6, 9  ;;  %6182 = vmatpush3.bf16.msra.mxu1 %v7188_v33 }
 0x4ad   : > { %v5158_v10 = vrot.slane %v5143_v39, 5  ;;  %v5077_v60 = vsel %vm4288_vm11, %v4959_v61, -inf  ;;  %v5115_v56 = vsel %vm3961_vm5, %v5076_v14, %v5114_v11  ;;  %v9942_v38 = vsel %vm9909_vm8, %v6019_v4, %v5154_v46  ;;  %6183 = vmatprep.subr.bf16.mxu1 %v7190_v48  ;;  %v7191_v61 = vld [vmem:[%s10151_s5 + $0x88] sm:$0xff]   ;;  %v7199_v48 = vld [vmem:[%s10153_s7 + $0x30] sm:$0xff]  }
 0x4ae   : > { %v5078_v30 = vsel %vm4288_vm11, %v4987_v54, -inf  ;;  %v5187_v34 = vrot.slane %v5184_v55, 5  ;;  %v6027_v19 = vrot.slane %v9892_v59, 10  ;;  %v5191_v25 = vrot.slane %v5184_v55, 6 }
 0x4af   : > { %v5079_v50 = vmax.f32 %v5077_v60, %v5078_v30  ;;  %v9949_v24 = vsel %vm9909_vm8, %v6020_v32, %v5158_v10  ;;  %v5205_v49 = vcombine.low %v9920_v45, %v9925_v43  ;;  %v6018_v7 = vrot.slane %v9653_v42, 9 }
 0x4b0   : > { %v5217_v9 = vcombine.low %v9942_v38, %v9949_v24  ;;  %v5150_v15 = vrot.slane %v9683_v23, 5  ;;  %v6026_v51 = vrot.slane %v9892_v59, 9  ;;  %v5177_v26 = vrot.slane %v5143_v39, 6  ;;  %6184 = vmatpush3.bf16.msra.mxu1 %v7191_v61  ;;  %v7193_v39 = vld [vmem:[%s10151_s5 + $0x80] sm:$0xff]   ;;  %v7210_v61 = vld [vmem:[%s10155_s9 + $0x18] sm:$0xff]  }
 0x4b1   : > { %v5116_v8 = vsel %vm3963_vm6, %v5079_v50, %v5115_v56  ;;  %v5192_v0 = vsel %vm9901_vm7, %v6027_v19, %v5191_v25  ;;  %v10196_v36 = vmov 0.0   ;;  %v6024_v62 = vrot.slane %v9881_v6, 10  ;;  %6185 = vmatprep.subr.bf16.mxu1 %v7192_v27  ;;  %v7211_v27 = vld [vmem:[%s10155_s9 + $0x10] sm:$0xff]  }
 0x4b2   : > { %v5122_v57 = vrot.slane %v5116_v8, 7  ;;  %6262 = vmatprep.subr.bf16.mxu0 %v10196_v36  ;;  %v9968_v63 = vsel %vm9909_vm8, %v6026_v51, %v5187_v34  ;;  %v5235_v23 = vcombine.low %v5192_v0, %v9920_v45  ;;  %v5209_v37 = vcombine.low %v9865_v5, %v9881_v6  ;;  %v7195_v51 = vld [vmem:[%s10151_s5 + $0x110] sm:$0xff]  }
 0x4b3   : > { %v5151_v41 = vsel %vm9909_vm8, %v6018_v7, %v5150_v15  ;;  %v5178_v47 = vsel %vm9901_vm7, %v6024_v62, %v5177_v26  ;;  %v5229_v60 = vcombine.low %v9892_v59, %v9653_v42  ;;  %v5193_v56 = vcombine.low %v9653_v42, %v9865_v5  ;;  %v7201_v26 = vld [vmem:[%s10153_s7 + $0x20] sm:$0xff]   ;;  %v7204_v62 = vld [vmem:[%s10153_s7 + $0x8] sm:$0xff]  }
 0x4b4   : > { %v5130_v2 = vsel %vm450_vm0, 0.0, %v5122_v57  ;;  %v5231_v20 = vcombine.low %v9968_v63, %v5151_v41  ;;  %v5221_v21 = vcombine.low %v9925_v43, %v5178_v47  ;;  %6186 = vmatpush3.bf16.msra.mxu1 %v7193_v39  ;;  %vm7294_vm0 = vmmov 0   ;;  %v7200_v57 = vld [vmem:[%s10153_s7 + $0x28] sm:$0xff]  }
 0x4b5   : > { %v5135_v12 = vsel %vm1902_vm4, %v5130_v2, 0.0  ;;  %6294 = vmatprep.subr.bf16.mxu1 %v10196_v36  ;;  %v7207_v2 = vld [vmem:[%s10155_s9 + $0x30] sm:$0xff]   ;;  %vm5895_vm4 = vcmask 516096  }
 0x4b6   : > { %v5210_v13 = vcombine.low %v5135_v12, %v9892_v59  ;;  %v5144_v17 = vcombine.high %v5135_v12, %v5135_v12  ;;  %v6021_v22 = vrot.slane %v5135_v12, 9  ;;  %v5194_v29 = vcombine.low %v9881_v6, %v5135_v12 }
 0x4b7   : > { %v6025_v1 = vrot.slane %v5135_v12, 10  ;;  %v7138_v16 = vpack.i.bf16 %v5221_v21, %v5231_v20  ;;  %v5197_v6 = vcombine.low %v5151_v41, %v9942_v38  ;;  %v7196_v38 = vld [vmem:[%s10151_s5 + $0x108] sm:$0xff]   ;;  %v7209_v41 = vld [vmem:[%s10155_s9 + $0x20] sm:$0xff]  }
 0x4b8   : > { %v7128_v31 = vpack.i.bf16 %v5210_v13, %v5209_v37  ;;  %v5162_v28 = vrot.slane %v5144_v17, 5  ;;  %v5181_v44 = vrot.slane %v5144_v17, 6  ;;  %v7208_v12 = vld [vmem:[%s10155_s9 + $0x28] sm:$0xff]   ;;  %v7205_v37 = vld [vmem:[%s10153_s7] sm:$0xff]  }
 0x4ba   : > { %7129 = vrot.lane.b32.xlu0 %v7128_v31, %s10197_s12  ;;  %v5163_v40 = vsel %vm9909_vm8, %v6021_v22, %v5162_v28  ;;  %v5182_v58 = vsel %vm9901_vm7, %v6025_v1, %v5181_v44  ;;  %v6028_v31 = vld [vmem:[%s10152_s6] ss:$0 sm:$0xff] }
 0x4bb   : > { %v5198_v14 = vcombine.low %v9949_v24, %v5163_v40  ;;  %v5206_v55 = vcombine.low %v5178_v47, %v5182_v58  ;;  %v5218_v54 = vcombine.low %v5163_v40, %v9968_v63  ;;  %v5222_v3 = vcombine.low %v5182_v58, %v5192_v0  ;;  %v7197_v24 = vld [vmem:[%s10151_s5 + $0x100] sm:$0xff]   ;;  %v7202_v0 = vld [vmem:[%s10153_s7 + $0x18] sm:$0xff]  }
 0x4bc   : > { %v7206_v63 = vld [vmem:[%s10155_s9 + $0x38] sm:$0xff]  }
 0x4bd   : > { %v7133_v4 = vpack.i.bf16 %v5198_v14, %v5197_v6  ;;  %v5248_v46 = vpack.c.bf16 %v5235_v23, %v5206_v55  ;;  %v7203_v23 = vld [vmem:[%s10153_s7 + $0x10] sm:$0xff]  }
 0x4be   : > { %7139 = vrot.lane.b32.xlu0 %v7138_v16, %s10197_s12 }
 0x4bf   : > { %7134 = vrot.lane.b32.xlu1 %v7133_v4, %s10197_s12 }
 0x4c3   : > { %5225 = vrot.lane.b32.xlu1 %v5222_v3, %s10197_s12  ;;  %s5916_s12 = sshll.u32 %s378_s29, 4  ;;  %s5917_s12 = int_to_ptr.vmem [resolvable:$true] %s5916_s12 }
 0x4c4   : > { %s7218_s30 = scalar_lea.vmem %s5917_s12, 16  ;;  %p7225_p0 = scmp.lt.s32.totalorder %s5917_s12, %s7223_s0 }
 0x4c5   : > { %p7219_p11 = scmp.ne.s32.totalorder %s5917_s12, %s7218_s30  ;;  %p7226_p1 = scmp.lt.s32.totalorder %s7224_s21, %s7218_s30 }
 0x4c7   : > { %p7220_p12 = pnand %p7219_p11, %p7394_p5  ;;  %p7227_p2 = por %p7226_p1, %p7225_p0 }
 0x4c9   : > { %p7221_p13 = pneg %p7220_p12 }
 0x4cb   : > { %p7228_p3 = pnand %p7227_p2, %p7221_p13 }
 0x52c   : > { %v7130_v35 = vpop.permute.xlu0 %7129 }
 0x52d   : > { %v7132_v45 = vunpack.i.h.bf16 %v7130_v35  ;;  %v7131_v11 = vunpack.i.l.bf16 %v7130_v35 }
 0x52f   : > { %v5239_v43 = vsel %vm4288_vm11, %v5205_v49, %v7131_v11  ;;  %v5240_v32 = vsel %vm4288_vm11, %v5206_v55, %v7132_v45  ;;  %v7194_v49 = vld [vmem:[%s10151_s5 + $0x118] sm:$0xff]  }
 0x530   : > { %v7140_v10 = vpop.permute.xlu0 %7139  ;;  %v5245_v52 = vpack.c.bf16 %v5240_v32, %v5239_v43 }
 0x531   : > { %v7141_v53 = vunpack.i.l.bf16 %v7140_v10  ;;  %v7135_v33 = vpop.permute.xlu1 %7134  ;;  %v7142_v30 = vunpack.i.h.bf16 %v7140_v10 }
 0x532   : > { %v7137_v18 = vunpack.i.h.bf16 %v7135_v33  ;;  %v7136_v50 = vunpack.i.l.bf16 %v7135_v33  ;;  %5579 = vmatprep.mubr.bf16.mxu0 %v5245_v52 }
 0x533   : > { %v5243_v34 = vsel %vm4288_vm11, %v5229_v60, %v7141_v53  ;;  %v5241_v42 = vsel %vm4288_vm11, %v5217_v9, %v7142_v30  ;;  %v7198_v9 = vld [vmem:[%s10153_s7 + $0x38] sm:$0xff]  }
 0x534   : > { %v5238_v19 = vsel %vm4288_vm11, %v5194_v29, %v7137_v18  ;;  %v5237_v25 = vsel %vm4288_vm11, %v5193_v56, %v7136_v50  ;;  %v7212_v18 = vld [vmem:[%s10155_s9 + $0x8] sm:$0xff]   ;;  %v7213_v50 = vld [vmem:[%s10155_s9] sm:$0xff]  }
 0x535   : > { %v5244_v8 = vpack.c.bf16 %v5238_v19, %v5237_v25  ;;  %v5226_v7 = vpop.permute.xlu1 %5225  ;;  %v5247_v59 = vpack.c.bf16 %v5243_v34, %v5238_v19  ;;  %v5698_v34 = vld [vmem:[%s10154_s8] sm:$0x1] }
 0x536   : > { %v5242_v5 = vsel %vm4288_vm11, %v5218_v54, %v5226_v7 }
 0x537   : > { %v5246_v15 = vpack.c.bf16 %v5242_v5, %v5241_v42  ;;  %5580 = vmatmul.mubr.bf16.vlgmr.msra.gmra.mxu0 %v5244_v8  ;;  %5620 = vmatprep.mubr.bf16.mxu1 %v5247_v59  ;;  %v5805_v5 = vld [vmem:[%s10156_s10] sm:$0x1] }
 0x538   : > { %6263 = vmatpush3.bf16.msra.mxu0 %v7194_v49  ;;  %6270 = vmatprep.mubr.msk.bf16.mxu0 %vm7294_vm0, %v10196_v36 }
 0x539   : > { %5621 = vmatmul.mubr.bf16.vlgmr.msra.gmra.mxu1 %v5246_v15  ;;  %6264 = vmatprep.subr.bf16.mxu0 %v10196_v36 }
 0x53a   : > { %6310 = vmatprep.mubr.msk.bf16.mxu1 %vm7294_vm0, %v10196_v36  ;;  %6295 = vmatpush3.bf16.msra.mxu1 %v7206_v63 }
 0x53b   : > { %6296 = vmatprep.subr.bf16.mxu1 %v10196_v36 }
 0x53c   : > { %6265 = vmatpush3.bf16.msra.mxu0 %v7195_v51 }
 0x53d   : > { %6266 = vmatprep.subr.bf16.mxu0 %v10196_v36 }
 0x53e   : > { %6297 = vmatpush3.bf16.msra.mxu1 %v7207_v2 }
 0x53f   : > { %6298 = vmatprep.subr.bf16.mxu1 %v10196_v36 }
 0x540   : > { %6267 = vmatpush3.bf16.msra.mxu0 %v7196_v38 }
 0x541   : > { %6268 = vmatprep.subr.bf16.mxu0 %v10196_v36 }
 0x542   : > { %6299 = vmatpush3.bf16.msra.mxu1 %v7208_v12 }
 0x543   : > { %6300 = vmatprep.subr.bf16.mxu1 %v10196_v36 }
 0x544   : > { %6269 = vmatpush3.bf16.msra.mxu0 %v7197_v24 }
 0x545   : > { %6274 = vmatprep.subr.bf16.mxu0 %v10196_v36 }
 0x546   : > { %6301 = vmatpush3.bf16.msra.mxu1 %v7209_v41 }
 0x547   : > { %6271 = vmatmul.mubr.msk.bf16.vlgmr.msra.gmra.mxu0 %vm4288_vm11, %v5248_v46  ;;  %6302 = vmatprep.subr.bf16.mxu1 %v10196_v36 }
 0x548   : > { %6290 = vmatprep.mubr.msk.bf16.mxu0 %vm7294_vm0, %v10196_v36  ;;  %6275 = vmatpush3.bf16.msra.mxu0 %v7198_v9 }
 0x549   : > { %6276 = vmatprep.subr.bf16.mxu0 %v10196_v36 }
 0x54a   : > { %6303 = vmatpush3.bf16.msra.mxu1 %v7210_v61 }
 0x54b   : > { %6304 = vmatprep.subr.bf16.mxu1 %v10196_v36 }
 0x54c   : > { %6277 = vmatpush3.bf16.msra.mxu0 %v7199_v48 }
 0x54d   : > { %6278 = vmatprep.subr.bf16.mxu0 %v10196_v36 }
 0x54e   : > { %6305 = vmatpush3.bf16.msra.mxu1 %v7211_v27 }
 0x54f   : > { %6306 = vmatprep.subr.bf16.mxu1 %v10196_v36 }
 0x550   : > { %6279 = vmatpush3.bf16.msra.mxu0 %v7200_v57 }
 0x551   : > { %6280 = vmatprep.subr.bf16.mxu0 %v10196_v36 }
 0x552   : > { %6307 = vmatpush3.bf16.msra.mxu1 %v7212_v18 }
 0x553   : > { %6308 = vmatprep.subr.bf16.mxu1 %v10196_v36 }
 0x554   : > { %6281 = vmatpush3.bf16.msra.mxu0 %v7201_v26 }
 0x555   : > { %6282 = vmatprep.subr.bf16.mxu0 %v10196_v36 }
 0x556   : > { %6309 = vmatpush3.bf16.msra.mxu1 %v7213_v50 }
 0x558   : > { %6283 = vmatpush3.bf16.msra.mxu0 %v7202_v0 }
 0x559   : > { %6284 = vmatprep.subr.bf16.mxu0 %v10196_v36 }
 0x55c   : > { %6285 = vmatpush3.bf16.msra.mxu0 %v7203_v23 }
 0x55d   : > { %6286 = vmatprep.subr.bf16.mxu0 %v10196_v36 }
 0x560   : > { %6287 = vmatpush3.bf16.msra.mxu0 %v7204_v62 }
 0x561   : > { %6288 = vmatprep.subr.bf16.mxu0 %v10196_v36 }
 0x564   : > { %6289 = vmatpush3.bf16.msra.mxu0 %v7205_v37 }
 0x5f7   : > { %v6165_v13 = vpop.f32.mrf.mxu0 }
 0x5f9   : > { %v6166_v47 = vpop.f32.mrf.mxu0  ;;  %v6187_v20 = vpop.f32.mrf.mxu1 }
 0x5fa   : > { %v6167_v39 = vadd.f32 %v6166_v47, %v6165_v13 }
 0x5fb   : > { %v6168_v17 = vpop.f32.mrf.mxu0  ;;  %v6188_v21 = vpop.f32.mrf.mxu1 }
 0x5fc   : > { %v5582_v44 = vadd.f32 %v6167_v39, %v6028_v31  ;;  %v6189_v16 = vadd.f32 %v6188_v21, %v6187_v20 }
 0x5fd   : > { %v6169_v22 = vpop.f32.mrf.mxu0  ;;  %v6190_v29 = vpop.f32.mrf.mxu1 }
 0x5fe   : > { %v6170_v28 = vadd.f32 %v6169_v22, %v6168_v17  ;;  %v5623_v14 = vadd.f32 %v6189_v16, %v5582_v44 }
 0x5ff   : > { %v6191_v1 = vpop.f32.mrf.mxu1 }
 0x600   : > { %v5585_v40 = vadd.f32 %v6170_v28, %v6028_v31  ;;  %v6192_v58 = vadd.f32 %v6191_v1, %v6190_v29 }
 0x602   : > { %v5626_v4 = vadd.f32 %v6192_v58, %v5585_v40 }
 0x607   : > { %v5663_v6 = vpop.f32.mrf.mxu0 }
 0x608   : > { %v5664_v54 = vadd.f32 %v5663_v6, %v5623_v14 }
 0x609   : > { %v6272_v55 = vpop.f32.mrf.mxu0 }
 0x60a   : > { %v5670_v45 = vmax.f32 %v5664_v54, 0.0 }
 0x60b   : > { %v5666_v46 = vpop.f32.mrf.mxu0 }
 0x60c   : > { %v5667_v3 = vadd.f32 %v5666_v46, %v5626_v4 }
 0x60d   : > { %v6273_v35 = vpop.f32.mrf.mxu0 }
 0x60e   : > { %v5671_v11 = vmax.f32 %v5667_v3, 0.0 }
 0x610   : > { %v5672_v43 = vadd.f32 %v5671_v11, %v5670_v45 }
 0x612   : > { %v5673_v32 = vrot.slane %v5672_v43, 4 }
 0x614   : > { %v5674_v10 = vadd.f32 %v5673_v32, %v5672_v43 }
 0x616   : > { %v5675_v52 = vrot.slane %v5674_v10, 2 }
 0x618   : > { %v5676_v53 = vadd.f32 %v5675_v52, %v5674_v10 }
 0x61a   : > { %v5677_v33 = vrot.slane %v5676_v53, 1 }
 0x61c   : > { %v5678_v60 = vadd.f32 %v5677_v33, %v5676_v53 }
 0x61e   : > { %v5680_v30 = vmul.f32 0.0625, %v5678_v60 }
 0x620   : > { %v5681_v56 = vpack.c.bf16 %v5680_v30, %v5680_v30 }
 0x622   : > { %6291 = vmatmul.mubr.bf16.vlgmr.msra.gmra.mxu0 %v5681_v56 }
 0x6e2   : > { %v5781_v19 = vpop.f32.mrf.mxu0 }
 0x6e3   : > { %v5782_v25 = vadd.f32 %v5781_v19, %v5698_v34 }
 0x6e4   : > { %v6292_v49 = vpop.f32.mrf.mxu0 }
 0x6e5   : > { %v5787_v8 = vmax.f32 %v5782_v25, 0.0 }
 0x6e6   : > { %v5784_v7 = vpop.f32.mrf.mxu0 }
 0x6e7   : > { %v5788_v59 = vpack.c.bf16 %v5787_v8, %v5787_v8 }
 0x6e8   : > { %v6293_v42 = vpop.f32.mrf.mxu0 }
 0x6e9   : > { %6311 = vmatmul.mubr.bf16.vlgmr.msra.gmra.mxu1 %v5788_v59 }
 0x7a9   : > { %v5888_v36 = vpop.f32.mrf.mxu1 }
 0x7aa   : > { %v5889_v15 = vadd.f32 %v5888_v36, %v5805_v5 }
 0x7ab   : > { %v6312_v51 = vpop.f32.mrf.mxu1 }
 0x7ac   : > { %v5894_v38 = vmul.f32 %v5889_v15, %v5889_v15 }
 0x7ad   : > { %v5891_v24 = vpop.f32.mrf.mxu1 }
 0x7ae   : > { %v5896_v9 = vsel %vm5895_vm4, %v5894_v38, 0.0 }
 0x7af   : > { %5897 = vadd.xlane.f32.xlu0 %v5896_v9  ;;  %v6313_v48 = vpop.f32.mrf.mxu1 }
 0x838   : > { %v5898_v57 = vpop.xlane.xlu0 %5897 }
 0x839   : > { %v5899_v26 = vmax.f32 %v5898_v57, 1e-24 }
 0x83b   : > { %7214 = vrsqrt.f32 %v5899_v26 }
 0x848   : > { %v7215_v0 = vpop.eup %7214 }
 0x849   : > { %v5901_v63 = vmul.f32 %v7215_v0, %v5889_v15 }
 0x84b   : > { %5902 = vst.msk [vmem:[%s378_s29] sm:$0x1] %vm5895_vm4, %v5901_v63 }
 0x84c   : > { %7231 = shalt.err (!%p7228_p3)
}
 0x84d   : > { %s7232_s22 = scalar_lea.hbm %s5914_s24, 16  ;;  %s7236_s29 = scalar_lea.hbm %s10157_s11, 32 }
 0x84e   : > { %p7233_p4 = scmp.ne.s32.totalorder %s5914_s24, %s7232_s22  ;;  %p7237_p9 = scmp.lt.s32.totalorder %s5914_s24, %s10157_s11 }
 0x84f   : > { %p7238_p10 = scmp.lt.s32.totalorder %s7236_s29, %s7232_s22 }
 0x850   : > { %p7234_p7 = pnand %p7233_p4, %p7394_p5 }
 0x851   : > { %p7239_p11 = por %p7238_p10, %p7237_p9 }
 0x852   : > { %p7235_p8 = pneg %p7234_p7 }
 0x854   : > { %p7240_p12 = pnand %p7239_p11, %p7235_p8 }
 0x856   : > { %7243 = shalt.err (!%p7240_p12)
}
 0x857   : > { %6314 = dma.vmem_to_hbm [thread:$0]  (%p7394_p5), %s5917_s12, 16, %s5914_s24, %s5904_s16  }
 0x858 PF: > { %p6320_p13 = scmp.ge.s32.totalorder %s7278_s20, 2  ;;  %s5928_s0 = sand.u32 1, %s7266_s17  }
 0x859   : > { %s5929_s30 = scalar_lea.sflag [#allocation3], %s5928_s0 }
 0x85a   : > { %p6317_p0 = pnand %p6320_p13, %p7398_p6 }
 0x85c   : > { %p6318_p1 = pneg %p6317_p0 }
 0x85e   : > { %7261 = dma.done.wait (%p6318_p1), %s5929_s30, 16  }
 0x85f   : > { %7263 = vsyncadd (%p6318_p1), %s5929_s30, 4294967280  ;;  %p21_p2 = scmp.ge.s32.totalorder %s7381_s23, 4   ;;  %s10198_s17 = smov %s7270_s18 }
 0x860   : > { %s10199_s18 = smov %s7274_s19  ;;  %s10200_s19 = smov %s7392_s26 }
 0x861   : > { %s10201_s20 = smov %s7381_s23  ;;  %23 = sbr.rel (!%p21_p2) target bundleno = 6 (0x6), region = 99 }
 0x866   :  { %5933 = vsyncpa [#allocation3], 1 }
 0x867   :  { %5935 = vsyncpa [#allocation3 + $0x1], 1 }

</bundles_post_ra>
